<compile_context>
chip_gen: v7x
topology: tpu7x:2x2x1
jax: 0.10.0
libtpu: 0.0.40
codegen_flags: <defaults>
</compile_context>

<pallas_src>
import functools

import jax
import jax.numpy as jnp
from jax.experimental import pallas as pl
from jax.experimental.pallas import tpu as pltpu


# ---------------------------------------------------------------------------
# Fused AFF kernel
# ---------------------------------------------------------------------------
def _aff_kernel(x_ref, w1_ref, b1_ref, bk_ref, b2_ref, s_ref, st_ref, bn_ref,
                o_ref, *, H, W, cout, eps):
    # x_ref : (N*H, W*Cin)           flattened NHWC input
    # w1_ref: (W*Cin, 2*W*Cout)      block-diag 1x1 weights, [feature | mask]
    # b1_ref: (1, 2*W*Cout)          lane-tiled biases
    # bk_ref: (3, W*Cout, 2*W*Cout)  banded 3x3 weights, one per kernel row kh
    # b2_ref: (1, 2*W*Cout)
    # s_ref : (W*Cout, Cout)         lane -> channel reduction map
    # st_ref: (Cout, W*Cout)         channel -> lane broadcast map
    # bn_ref: (4, Cout)              rows: gamma1, beta1, gamma2, beta2
    # o_ref : (N*H, W*Cout)
    NH = x_ref.shape[0]
    n_pix = NH * W                     # N*H*W pixels entering each BatchNorm
    wco = W * cout

    s_mat = s_ref[...]
    st_mat = st_ref[...]

    def batchnorm(y, gamma, beta):
        # Training-mode BatchNorm2d: batch mean / biased variance per channel.
        col_sum = jnp.sum(y, axis=0, keepdims=True)                  # (1, W*Cout)
        col_sq = jnp.sum(y * y, axis=0, keepdims=True)
        ch_sum = jnp.dot(col_sum, s_mat, preferred_element_type=jnp.float32)
        ch_sq = jnp.dot(col_sq, s_mat, preferred_element_type=jnp.float32)
        mean = ch_sum / n_pix
        var = ch_sq / n_pix - mean * mean
        scale = gamma * jax.lax.rsqrt(var + eps)
        shift = beta - mean * scale
        scale_l = jnp.dot(scale, st_mat, preferred_element_type=jnp.float32)
        shift_l = jnp.dot(shift, st_mat, preferred_element_type=jnp.float32)
        return y * scale_l + shift_l

    def sigmoid(v):
        # exp and the approximate reciprocal both issue on the EUP slot.
        return pl.reciprocal(1.0 + jnp.exp(-v), approx=True)

    def elu(v):
        # ELU(alpha=1). expm1 computed as exp(v)-1 with a 3rd-order Taylor
        # fallback for small |v| to avoid the cancellation loss (torch.expm1
        # precision using only plainly-supported primitives).
        taylor = v * (1.0 + 0.5 * v * (1.0 + v / 3.0))
        neg = jnp.where(jnp.abs(v) < 1e-2, taylor, jnp.exp(v) - 1.0)
        return jnp.where(v > 0.0, v, neg)

    # -------- GatedConv #1: 1x1, relu=True (ELU on features), + BatchNorm ----
    x = x_ref[...]
    r1 = jnp.dot(x, w1_ref[...], preferred_element_type=jnp.float32) + b1_ref[...]
    y1 = elu(r1[:, :wco]) * sigmoid(r1[:, wco:])
    y1 = batchnorm(y1, bn_ref[0:1, :], bn_ref[1:2, :])

    # -------- GatedConv #2: 3x3 zero-pad 1, relu=False, + BatchNorm ----------
    # Vertical taps = masked sublane row shifts (zero rows at image boundaries,
    # which also blocks cross-batch leakage); horizontal taps + zero padding are
    # already folded into the banded weight matrices bk_ref[kh].
    row = jax.lax.broadcasted_iota(jnp.int32, (NH, 1), 0)
    h = row % H
    zrow = jnp.zeros((1, wco), jnp.float32)
    y_up = jnp.where(h >= 1, jnp.concatenate([zrow, y1[:-1, :]], axis=0), 0.0)
    y_dn = jnp.where(h <= H - 2, jnp.concatenate([y1[1:, :], zrow], axis=0), 0.0)

    r2 = jnp.dot(y_up, bk_ref[0], preferred_element_type=jnp.float32)
    r2 = r2 + jnp.dot(y1, bk_ref[1], preferred_element_type=jnp.float32)
    r2 = r2 + jnp.dot(y_dn, bk_ref[2], preferred_element_type=jnp.float32)
    r2 = r2 + b2_ref[...]
    y2 = r2[:, :wco] * sigmoid(r2[:, wco:])        # relu=False -> identity on features

    o_ref[...] = batchnorm(y2, bn_ref[2:3, :], bn_ref[3:4, :]).astype(o_ref.dtype)


def _aff_pallas(xf, prep, *, N, H, W, cin, cout):
    NH = N * H
    kernel = functools.partial(_aff_kernel, H=H, W=W, cout=cout, eps=1e-5)
    return pl.pallas_call(
        kernel,
        out_shape=jax.ShapeDtypeStruct((NH, W * cout), jnp.float32),
        grid_spec=pltpu.PrefetchScalarGridSpec(
            num_scalar_prefetch=0,
            grid=(1,),
            in_specs=[
                pl.BlockSpec((NH, W * cin), lambda i: (0, 0)),
                pl.BlockSpec((W * cin, 2 * W * cout), lambda i: (0, 0)),
                pl.BlockSpec((1, 2 * W * cout), lambda i: (0, 0)),
                pl.BlockSpec((3, W * cout, 2 * W * cout), lambda i: (0, 0, 0)),
                pl.BlockSpec((1, 2 * W * cout), lambda i: (0, 0)),
                pl.BlockSpec((W * cout, cout), lambda i: (0, 0)),
                pl.BlockSpec((cout, W * cout), lambda i: (0, 0)),
                pl.BlockSpec((4, cout), lambda i: (0, 0)),
            ],
            out_specs=pl.BlockSpec((NH, W * cout), lambda i: (0, 0)),
        ),
        compiler_params=pltpu.CompilerParams(dimension_semantics=("arbitrary",)),
    )(xf, prep["w1"], prep["b1"], prep["bk"], prep["b2"],
      prep["s"], prep["st"], prep["bnp"])


# ---------------------------------------------------------------------------
# Parameter preprocessing (one-time, tiny, pure jnp)
# ---------------------------------------------------------------------------
def preprocess_params(params, H, W):
    cin, cout = params["w1f"].shape
    del H  # only W enters the lane-fused layout
    eye = jnp.eye(W, dtype=jnp.float32)

    # 1x1 conv -> block-diagonal matmul on (N*H, W*Cin); feature|mask fused.
    w1 = jnp.concatenate([jnp.kron(eye, params["w1f"]),
                          jnp.kron(eye, params["w1m"])], axis=1)
    b1 = jnp.concatenate([jnp.tile(params["b1f"][None, :], (1, W)),
                          jnp.tile(params["b1m"][None, :], (1, W))], axis=1)

    # 3x3 conv -> one banded matrix per kernel row kh; the band along W encodes
    # the three horizontal taps and the zero padding.
    def banded(w_kh):                      # w_kh: (3, Cout, Cout) for fixed kh
        src = jnp.arange(W)[:, None]       # source column w'
        dst = jnp.arange(W)[None, :]       # output column w
        kw = src - dst + 1                 # tap index, valid in [0, 2]
        valid = (kw >= 0) & (kw <= 2)
        blocks = w_kh[jnp.clip(kw, 0, 2)]  # (W, W, Cout, Cout)
        blocks = jnp.where(valid[:, :, None, None], blocks, 0.0)
        return blocks.transpose(0, 2, 1, 3).reshape(W * cout, W * cout)

    bk = jnp.stack(
        [jnp.concatenate([banded(params["w2f"][kh]), banded(params["w2m"][kh])],
                         axis=1)
         for kh in range(3)], axis=0)
    b2 = jnp.concatenate([jnp.tile(params["b2f"][None, :], (1, W)),
                          jnp.tile(params["b2m"][None, :], (1, W))], axis=1)

    # Channel <-> lane maps for the in-kernel BatchNorm reductions / broadcasts.
    s = jnp.kron(jnp.ones((W, 1), jnp.float32), jnp.eye(cout, dtype=jnp.float32))
    bnp = jnp.stack([params["g1"], params["be1"], params["g2"], params["be2"]],
                    axis=0)

    return {
        "w1": w1.astype(jnp.float32), "b1": b1.astype(jnp.float32),
        "bk": bk.astype(jnp.float32), "b2": b2.astype(jnp.float32),
        "s": s, "st": s.T, "bnp": bnp.astype(jnp.float32),
    }


# ---------------------------------------------------------------------------
# AFF forward (public wrapper: NCHW in / NCHW out, like the PyTorch module)
# ---------------------------------------------------------------------------
@jax.jit
def aff_forward(prep, x1, x2, x3, x4):
    N, _, H, W = x1.shape
    x = jnp.concatenate([x1, x2, x3, x4], axis=1)          # (N, Cin, H, W)
    cin = x.shape[1]
    cout = prep["bnp"].shape[1]
    xf = jnp.transpose(x, (0, 2, 3, 1)).reshape(N * H, W * cin).astype(jnp.float32)
    out = _aff_pallas(xf, prep, N=N, H=H, W=W, cin=cin, cout=cout)
    return jnp.transpose(out.reshape(N, H, W, cout), (0, 3, 1, 2))


# ---------------------------------------------------------------------------
# Raw parameters + pure-JAX reference (for a structural correctness check)
# ---------------------------------------------------------------------------
def init_params(key, in_channel, out_channel):
    ks = jax.random.split(key, 8)
    w = lambda k, shape, s: (s * jax.random.normal(k, shape)).astype(jnp.float32)
    return {
        "w1f": w(ks[0], (in_channel, out_channel), 0.1),
        "b1f": w(ks[1], (out_channel,), 0.05),
        "w1m": w(ks[2], (in_channel, out_channel), 0.1),
        "b1m": w(ks[3], (out_channel,), 0.05),
        "g1": jnp.ones((out_channel,), jnp.float32),
        "be1": jnp.zeros((out_channel,), jnp.float32),
        "w2f": w(ks[4], (3, 3, out_channel, out_channel), 0.1),
        "b2f": w(ks[5], (out_channel,), 0.05),
        "w2m": w(ks[6], (3, 3, out_channel, out_channel), 0.1),
        "b2m": w(ks[7], (out_channel,), 0.05),
        "g2": jnp.ones((out_channel,), jnp.float32),
        "be2": jnp.zeros((out_channel,), jnp.float32),
    }


def aff_reference(params, x1, x2, x3, x4, eps=1e-5):
    hp = jax.lax.Precision.HIGHEST
    x = jnp.transpose(jnp.concatenate([x1, x2, x3, x4], axis=1), (0, 2, 3, 1))
    N, H, W, _ = x.shape

    def bn(y, g, b):
        mean = y.mean(axis=(0, 1, 2))
        var = ((y - mean) ** 2).mean(axis=(0, 1, 2))
        return (y - mean) * jax.lax.rsqrt(var + eps) * g + b

    f = jnp.einsum("nhwi,io->nhwo", x, params["w1f"], precision=hp) + params["b1f"]
    f = jnp.where(f > 0, f, jnp.expm1(f))
    m = jax.nn.sigmoid(
        jnp.einsum("nhwi,io->nhwo", x, params["w1m"], precision=hp) + params["b1m"])
    y = bn(f * m, params["g1"], params["be1"])

    yp = jnp.pad(y, ((0, 0), (1, 1), (1, 1), (0, 0)))

    def conv3(w, b):
        out = jnp.zeros((N, H, W, w.shape[-1]), jnp.float32) + b
        for kh in range(3):
            for kw in range(3):
                out = out + jnp.einsum("nhwi,io->nhwo",
                                       yp[:, kh:kh + H, kw:kw + W, :], w[kh, kw],
                                       precision=hp)
        return out

    f2 = conv3(params["w2f"], params["b2f"])
    m2 = jax.nn.sigmoid(conv3(params["w2m"], params["b2m"]))
    y2 = bn(f2 * m2, params["g2"], params["be2"])
    return jnp.transpose(y2, (0, 3, 1, 2))


if __name__ == "__main__":
    key = jax.random.PRNGKey(0)
    N, c_each, H, W = 2, 8, 16, 16          # x1..x4 each NCHW (2, 8, 16, 16)
    in_channel, out_channel = 4 * c_each, 16

    kx1, kx2, kx3, kx4, kp = jax.random.split(key, 5)
    x1 = jax.random.normal(kx1, (N, c_each, H, W), jnp.float32)
    x2 = jax.random.normal(kx2, (N, c_each, H, W), jnp.float32)
    x3 = jax.random.normal(kx3, (N, c_each, H, W), jnp.float32)
    x4 = jax.random.normal(kx4, (N, c_each, H, W), jnp.float32)

    params = init_params(kp, in_channel, out_channel)
    prep = preprocess_params(params, H, W)

    out = aff_forward(prep, x1, x2, x3, x4)
    jax.block_until_ready(out)

    assert out.shape == (N, out_channel, H, W)
    assert jnp.all(jnp.isfinite(out))
    ref = aff_reference(params, x1, x2, x3, x4)
    err = float(jnp.max(jnp.abs(out - ref)))
    assert err < 5e-2, f"max abs error vs reference: {err}"
    print("KERNEL_OK")
</pallas_src>

<mosaic_0001>
module attributes {stable_mosaic.version = 11 : i64} {
  func.func @_aff_kernel(%arg0: i32, %arg1: memref<32x512xf32, #tpu.memory_space<vmem>>, %arg2: memref<512x512xf32, #tpu.memory_space<vmem>>, %arg3: memref<1x512xf32, #tpu.memory_space<vmem>>, %arg4: memref<3x256x512xf32, #tpu.memory_space<vmem>>, %arg5: memref<1x512xf32, #tpu.memory_space<vmem>>, %arg6: memref<256x16xf32, #tpu.memory_space<vmem>>, %arg7: memref<16x256xf32, #tpu.memory_space<vmem>>, %arg8: memref<4x16xf32, #tpu.memory_space<vmem>>, %arg9: memref<32x256xf32, #tpu.memory_space<vmem>>) attributes {dimension_semantics = [#tpu.dimension_semantics<arbitrary>], iteration_bounds = array<i64: 1>, scalar_prefetch = 0 : i64, scratch_operands = 0 : i64, tpu.core_type = #tpu.core_type<tc>, window_params = [{pipeline_mode = #tpu.pipeline_mode<synchronous>, transform_indices = @transform_0, window_bounds = array<i64: 32, 512>}, {pipeline_mode = #tpu.pipeline_mode<synchronous>, transform_indices = @transform_1, window_bounds = array<i64: 512, 512>}, {pipeline_mode = #tpu.pipeline_mode<synchronous>, transform_indices = @transform_2, window_bounds = array<i64: 1, 512>}, {pipeline_mode = #tpu.pipeline_mode<synchronous>, transform_indices = @transform_3, window_bounds = array<i64: 3, 256, 512>}, {pipeline_mode = #tpu.pipeline_mode<synchronous>, transform_indices = @transform_4, window_bounds = array<i64: 1, 512>}, {pipeline_mode = #tpu.pipeline_mode<synchronous>, transform_indices = @transform_5, window_bounds = array<i64: 256, 16>}, {pipeline_mode = #tpu.pipeline_mode<synchronous>, transform_indices = @transform_6, window_bounds = array<i64: 16, 256>}, {pipeline_mode = #tpu.pipeline_mode<synchronous>, transform_indices = @transform_7, window_bounds = array<i64: 4, 16>}, {pipeline_mode = #tpu.pipeline_mode<synchronous>, transform_indices = @transform_8, window_bounds = array<i64: 32, 256>}]} {
    %c0 = arith.constant 0 : index
    %c0_0 = arith.constant 0 : index
    %0 = vector.load %arg6[%c0, %c0_0] : memref<256x16xf32, #tpu.memory_space<vmem>>, vector<256x16xf32>
    %c0_1 = arith.constant 0 : index
    %c0_2 = arith.constant 0 : index
    %1 = vector.load %arg7[%c0_1, %c0_2] : memref<16x256xf32, #tpu.memory_space<vmem>>, vector<16x256xf32>
    %c0_3 = arith.constant 0 : index
    %c0_4 = arith.constant 0 : index
    %2 = vector.load %arg1[%c0_3, %c0_4] : memref<32x512xf32, #tpu.memory_space<vmem>>, vector<32x512xf32>
    %c0_5 = arith.constant 0 : index
    %c0_6 = arith.constant 0 : index
    %3 = vector.load %arg2[%c0_5, %c0_6] : memref<512x512xf32, #tpu.memory_space<vmem>>, vector<512x512xf32>
    %cst = arith.constant dense<0.000000e+00> : vector<32x512xf32>
    %4 = tpu.matmul %2, %3, %cst {dimension_numbers = #tpu.dot_dimension_numbers<[1], [0], [0], [1], [0, 0, 1, 1], [], []>} : vector<32x512xf32>, vector<512x512xf32>, vector<32x512xf32> -> vector<32x512xf32>
    %c0_7 = arith.constant 0 : index
    %c0_8 = arith.constant 0 : index
    %5 = vector.load %arg3[%c0_7, %c0_8] : memref<1x512xf32, #tpu.memory_space<vmem>>, vector<1x512xf32>
    %6 = vector.broadcast %5 : vector<1x512xf32> to vector<32x512xf32>
    %7 = arith.addf %4, %6 : vector<32x512xf32>
    %8 = vector.extract_strided_slice %7 {offsets = [0, 0], sizes = [32, 256], strides = [1, 1]} : vector<32x512xf32> to vector<32x256xf32>
    %cst_9 = arith.constant 5.000000e-01 : f32
    %9 = vector.broadcast %cst_9 : f32 to vector<32x256xf32>
    %10 = arith.mulf %9, %8 : vector<32x256xf32>
    %cst_10 = arith.constant 3.000000e+00 : f32
    %11 = vector.broadcast %cst_10 : f32 to vector<32x256xf32>
    %12 = arith.divf %8, %11 : vector<32x256xf32>
    %cst_11 = arith.constant 1.000000e+00 : f32
    %13 = vector.broadcast %cst_11 : f32 to vector<32x256xf32>
    %14 = arith.addf %13, %12 : vector<32x256xf32>
    %15 = arith.mulf %10, %14 : vector<32x256xf32>
    %cst_12 = arith.constant 1.000000e+00 : f32
    %16 = vector.broadcast %cst_12 : f32 to vector<32x256xf32>
    %17 = arith.addf %16, %15 : vector<32x256xf32>
    %18 = arith.mulf %8, %17 : vector<32x256xf32>
    %19 = math.absf %8 : vector<32x256xf32>
    %cst_13 = arith.constant 0.00999999977 : f32
    %20 = vector.broadcast %cst_13 : f32 to vector<32x256xf32>
    %21 = arith.cmpf olt, %19, %20 : vector<32x256xf32>
    %22 = math.exp %8 : vector<32x256xf32>
    %cst_14 = arith.constant 1.000000e+00 : f32
    %23 = vector.broadcast %cst_14 : f32 to vector<32x256xf32>
    %24 = arith.subf %22, %23 : vector<32x256xf32>
    %25 = arith.select %21, %18, %24 : vector<32x256xi1>, vector<32x256xf32>
    %cst_15 = arith.constant 0.000000e+00 : f32
    %26 = vector.broadcast %cst_15 : f32 to vector<32x256xf32>
    %27 = arith.cmpf ogt, %8, %26 : vector<32x256xf32>
    %28 = arith.select %27, %8, %25 : vector<32x256xi1>, vector<32x256xf32>
    %29 = vector.extract_strided_slice %7 {offsets = [0, 256], sizes = [32, 256], strides = [1, 1]} : vector<32x512xf32> to vector<32x256xf32>
    %cst_16 = arith.constant 0.000000e+00 : f32
    %30 = vector.broadcast %cst_16 : f32 to vector<32x256xf32>
    %31 = arith.subf %30, %29 : vector<32x256xf32>
    %32 = math.exp %31 : vector<32x256xf32>
    %cst_17 = arith.constant 1.000000e+00 : f32
    %33 = vector.broadcast %cst_17 : f32 to vector<32x256xf32>
    %34 = arith.addf %33, %32 : vector<32x256xf32>
    %35 = tpu.reciprocal %34 {approx = true} : vector<32x256xf32> -> vector<32x256xf32>
    %36 = arith.mulf %28, %35 : vector<32x256xf32>
    %c0_18 = arith.constant 0 : index
    %c0_19 = arith.constant 0 : index
    %37 = vector.load %arg8[%c0_18, %c0_19] : memref<4x16xf32, #tpu.memory_space<vmem>>, vector<1x16xf32>
    %c1 = arith.constant 1 : index
    %c0_20 = arith.constant 0 : index
    %38 = vector.load %arg8[%c1, %c0_20] : memref<4x16xf32, #tpu.memory_space<vmem>>, vector<1x16xf32>
    %cst_21 = arith.constant dense<0.000000e+00> : vector<256xf32>
    %39 = vector.multi_reduction <add>, %36, %cst_21 [0] : vector<32x256xf32> to vector<256xf32>
    %40 = vector.shape_cast %39 : vector<256xf32> to vector<1x256xf32>
    %41 = arith.mulf %36, %36 : vector<32x256xf32>
    %cst_22 = arith.constant dense<0.000000e+00> : vector<256xf32>
    %42 = vector.multi_reduction <add>, %41, %cst_22 [0] : vector<32x256xf32> to vector<256xf32>
    %43 = vector.shape_cast %42 : vector<256xf32> to vector<1x256xf32>
    %cst_23 = arith.constant dense<0.000000e+00> : vector<1x16xf32>
    %44 = tpu.matmul %40, %0, %cst_23 {dimension_numbers = #tpu.dot_dimension_numbers<[1], [0], [0], [1], [0, 0, 1, 1], [], []>} : vector<1x256xf32>, vector<256x16xf32>, vector<1x16xf32> -> vector<1x16xf32>
    %cst_24 = arith.constant dense<0.000000e+00> : vector<1x16xf32>
    %45 = tpu.matmul %43, %0, %cst_24 {dimension_numbers = #tpu.dot_dimension_numbers<[1], [0], [0], [1], [0, 0, 1, 1], [], []>} : vector<1x256xf32>, vector<256x16xf32>, vector<1x16xf32> -> vector<1x16xf32>
    %cst_25 = arith.constant 5.120000e+02 : f32
    %46 = vector.broadcast %cst_25 : f32 to vector<1x16xf32>
    %47 = arith.divf %44, %46 : vector<1x16xf32>
    %cst_26 = arith.constant 5.120000e+02 : f32
    %48 = vector.broadcast %cst_26 : f32 to vector<1x16xf32>
    %49 = arith.divf %45, %48 : vector<1x16xf32>
    %50 = arith.mulf %47, %47 : vector<1x16xf32>
    %51 = arith.subf %49, %50 : vector<1x16xf32>
    %cst_27 = arith.constant 9.99999974E-6 : f32
    %52 = vector.broadcast %cst_27 : f32 to vector<1x16xf32>
    %53 = arith.addf %51, %52 : vector<1x16xf32>
    %54 = math.rsqrt %53 : vector<1x16xf32>
    %55 = arith.mulf %37, %54 : vector<1x16xf32>
    %56 = arith.mulf %47, %55 : vector<1x16xf32>
    %57 = arith.subf %38, %56 : vector<1x16xf32>
    %cst_28 = arith.constant dense<0.000000e+00> : vector<1x256xf32>
    %58 = tpu.matmul %55, %1, %cst_28 {dimension_numbers = #tpu.dot_dimension_numbers<[1], [0], [0], [1], [0, 0, 1, 1], [], []>} : vector<1x16xf32>, vector<16x256xf32>, vector<1x256xf32> -> vector<1x256xf32>
    %cst_29 = arith.constant dense<0.000000e+00> : vector<1x256xf32>
    %59 = tpu.matmul %57, %1, %cst_29 {dimension_numbers = #tpu.dot_dimension_numbers<[1], [0], [0], [1], [0, 0, 1, 1], [], []>} : vector<1x16xf32>, vector<16x256xf32>, vector<1x256xf32> -> vector<1x256xf32>
    %60 = vector.broadcast %58 : vector<1x256xf32> to vector<32x256xf32>
    %61 = arith.mulf %36, %60 : vector<32x256xf32>
    %62 = vector.broadcast %59 : vector<1x256xf32> to vector<32x256xf32>
    %63 = arith.addf %61, %62 : vector<32x256xf32>
    %64 = tpu.iota {dimensions = array<i32: 0>} : vector<32x1xi32>
    %c16_i32 = arith.constant 16 : i32
    %c0_i32 = arith.constant 0 : i32
    %65 = arith.cmpi eq, %c16_i32, %c0_i32 : i32
    %c1_i32 = arith.constant 1 : i32
    %66 = arith.select %65, %c1_i32, %c16_i32 : i32
    %67 = vector.broadcast %66 : i32 to vector<32x1xi32>
    %68 = arith.remsi %64, %67 : vector<32x1xi32>
    %c0_i32_30 = arith.constant 0 : i32
    %69 = vector.broadcast %c0_i32_30 : i32 to vector<32x1xi32>
    %70 = arith.cmpi ne, %68, %69 : vector<32x1xi32>
    %c0_i32_31 = arith.constant 0 : i32
    %71 = vector.broadcast %c0_i32_31 : i32 to vector<32x1xi32>
    %72 = arith.cmpi slt, %68, %71 : vector<32x1xi32>
    %c0_i32_32 = arith.constant 0 : i32
    %73 = arith.cmpi slt, %66, %c0_i32_32 : i32
    %74 = vector.broadcast %73 : i1 to vector<32x1xi1>
    %75 = vector.broadcast %74 : vector<32x1xi1> to vector<32x1xi1>
    %76 = arith.xori %72, %75 : vector<32x1xi1>
    %77 = arith.andi %76, %70 : vector<32x1xi1>
    %78 = vector.broadcast %66 : i32 to vector<32x1xi32>
    %79 = arith.addi %68, %78 : vector<32x1xi32>
    %80 = arith.select %77, %79, %68 : vector<32x1xi1>, vector<32x1xi32>
    %cst_33 = arith.constant 0.000000e+00 : f32
    %81 = vector.broadcast %cst_33 : f32 to vector<1x256xf32>
    %c1_i32_34 = arith.constant 1 : i32
    %82 = vector.broadcast %c1_i32_34 : i32 to vector<32x1xi32>
    %83 = arith.cmpi sge, %80, %82 : vector<32x1xi32>
    %84 = vector.extract_strided_slice %63 {offsets = [0, 0], sizes = [31, 256], strides = [1, 1]} : vector<32x256xf32> to vector<31x256xf32>
    %85 = tpu.concatenate %81, %84 in 0 : vector<1x256xf32>, vector<31x256xf32> -> vector<32x256xf32>
    %cst_35 = arith.constant 0.000000e+00 : f32
    %86 = vector.shape_cast %83 : vector<32x1xi1> to vector<32x1xi1>
    %87 = vector.broadcast %86 : vector<32x1xi1> to vector<32x256xi1>
    %88 = vector.broadcast %cst_35 : f32 to vector<32x256xf32>
    %89 = arith.select %87, %85, %88 : vector<32x256xi1>, vector<32x256xf32>
    %c14_i32 = arith.constant 14 : i32
    %90 = vector.broadcast %c14_i32 : i32 to vector<32x1xi32>
    %91 = arith.cmpi sle, %80, %90 : vector<32x1xi32>
    %92 = vector.extract_strided_slice %63 {offsets = [1, 0], sizes = [31, 256], strides = [1, 1]} : vector<32x256xf32> to vector<31x256xf32>
    %93 = tpu.concatenate %92, %81 in 0 : vector<31x256xf32>, vector<1x256xf32> -> vector<32x256xf32>
    %cst_36 = arith.constant 0.000000e+00 : f32
    %94 = vector.shape_cast %91 : vector<32x1xi1> to vector<32x1xi1>
    %95 = vector.broadcast %94 : vector<32x1xi1> to vector<32x256xi1>
    %96 = vector.broadcast %cst_36 : f32 to vector<32x256xf32>
    %97 = arith.select %95, %93, %96 : vector<32x256xi1>, vector<32x256xf32>
    %c0_37 = arith.constant 0 : index
    %c0_38 = arith.constant 0 : index
    %c0_39 = arith.constant 0 : index
    %98 = vector.load %arg4[%c0_37, %c0_38, %c0_39] : memref<3x256x512xf32, #tpu.memory_space<vmem>>, vector<1x256x512xf32>
    %99 = vector.shape_cast %98 : vector<1x256x512xf32> to vector<256x512xf32>
    %cst_40 = arith.constant dense<0.000000e+00> : vector<32x512xf32>
    %100 = tpu.matmul %89, %99, %cst_40 {dimension_numbers = #tpu.dot_dimension_numbers<[1], [0], [0], [1], [0, 0, 1, 1], [], []>} : vector<32x256xf32>, vector<256x512xf32>, vector<32x512xf32> -> vector<32x512xf32>
    %c1_41 = arith.constant 1 : index
    %c0_42 = arith.constant 0 : index
    %c0_43 = arith.constant 0 : index
    %101 = vector.load %arg4[%c1_41, %c0_42, %c0_43] : memref<3x256x512xf32, #tpu.memory_space<vmem>>, vector<1x256x512xf32>
    %102 = vector.shape_cast %101 : vector<1x256x512xf32> to vector<256x512xf32>
    %cst_44 = arith.constant dense<0.000000e+00> : vector<32x512xf32>
    %103 = tpu.matmul %63, %102, %cst_44 {dimension_numbers = #tpu.dot_dimension_numbers<[1], [0], [0], [1], [0, 0, 1, 1], [], []>} : vector<32x256xf32>, vector<256x512xf32>, vector<32x512xf32> -> vector<32x512xf32>
    %104 = arith.addf %100, %103 : vector<32x512xf32>
    %c2 = arith.constant 2 : index
    %c0_45 = arith.constant 0 : index
    %c0_46 = arith.constant 0 : index
    %105 = vector.load %arg4[%c2, %c0_45, %c0_46] : memref<3x256x512xf32, #tpu.memory_space<vmem>>, vector<1x256x512xf32>
    %106 = vector.shape_cast %105 : vector<1x256x512xf32> to vector<256x512xf32>
    %cst_47 = arith.constant dense<0.000000e+00> : vector<32x512xf32>
    %107 = tpu.matmul %97, %106, %cst_47 {dimension_numbers = #tpu.dot_dimension_numbers<[1], [0], [0], [1], [0, 0, 1, 1], [], []>} : vector<32x256xf32>, vector<256x512xf32>, vector<32x512xf32> -> vector<32x512xf32>
    %108 = arith.addf %104, %107 : vector<32x512xf32>
    %c0_48 = arith.constant 0 : index
    %c0_49 = arith.constant 0 : index
    %109 = vector.load %arg5[%c0_48, %c0_49] : memref<1x512xf32, #tpu.memory_space<vmem>>, vector<1x512xf32>
    %110 = vector.broadcast %109 : vector<1x512xf32> to vector<32x512xf32>
    %111 = arith.addf %108, %110 : vector<32x512xf32>
    %112 = vector.extract_strided_slice %111 {offsets = [0, 0], sizes = [32, 256], strides = [1, 1]} : vector<32x512xf32> to vector<32x256xf32>
    %113 = vector.extract_strided_slice %111 {offsets = [0, 256], sizes = [32, 256], strides = [1, 1]} : vector<32x512xf32> to vector<32x256xf32>
    %cst_50 = arith.constant 0.000000e+00 : f32
    %114 = vector.broadcast %cst_50 : f32 to vector<32x256xf32>
    %115 = arith.subf %114, %113 : vector<32x256xf32>
    %116 = math.exp %115 : vector<32x256xf32>
    %cst_51 = arith.constant 1.000000e+00 : f32
    %117 = vector.broadcast %cst_51 : f32 to vector<32x256xf32>
    %118 = arith.addf %117, %116 : vector<32x256xf32>
    %119 = tpu.reciprocal %118 {approx = true} : vector<32x256xf32> -> vector<32x256xf32>
    %120 = arith.mulf %112, %119 : vector<32x256xf32>
    %c2_52 = arith.constant 2 : index
    %c0_53 = arith.constant 0 : index
    %121 = vector.load %arg8[%c2_52, %c0_53] : memref<4x16xf32, #tpu.memory_space<vmem>>, vector<1x16xf32>
    %c3 = arith.constant 3 : index
    %c0_54 = arith.constant 0 : index
    %122 = vector.load %arg8[%c3, %c0_54] : memref<4x16xf32, #tpu.memory_space<vmem>>, vector<1x16xf32>
    %cst_55 = arith.constant dense<0.000000e+00> : vector<256xf32>
    %123 = vector.multi_reduction <add>, %120, %cst_55 [0] : vector<32x256xf32> to vector<256xf32>
    %124 = vector.shape_cast %123 : vector<256xf32> to vector<1x256xf32>
    %125 = arith.mulf %120, %120 : vector<32x256xf32>
    %cst_56 = arith.constant dense<0.000000e+00> : vector<256xf32>
    %126 = vector.multi_reduction <add>, %125, %cst_56 [0] : vector<32x256xf32> to vector<256xf32>
    %127 = vector.shape_cast %126 : vector<256xf32> to vector<1x256xf32>
    %cst_57 = arith.constant dense<0.000000e+00> : vector<1x16xf32>
    %128 = tpu.matmul %124, %0, %cst_57 {dimension_numbers = #tpu.dot_dimension_numbers<[1], [0], [0], [1], [0, 0, 1, 1], [], []>} : vector<1x256xf32>, vector<256x16xf32>, vector<1x16xf32> -> vector<1x16xf32>
    %cst_58 = arith.constant dense<0.000000e+00> : vector<1x16xf32>
    %129 = tpu.matmul %127, %0, %cst_58 {dimension_numbers = #tpu.dot_dimension_numbers<[1], [0], [0], [1], [0, 0, 1, 1], [], []>} : vector<1x256xf32>, vector<256x16xf32>, vector<1x16xf32> -> vector<1x16xf32>
    %cst_59 = arith.constant 5.120000e+02 : f32
    %130 = vector.broadcast %cst_59 : f32 to vector<1x16xf32>
    %131 = arith.divf %128, %130 : vector<1x16xf32>
    %cst_60 = arith.constant 5.120000e+02 : f32
    %132 = vector.broadcast %cst_60 : f32 to vector<1x16xf32>
    %133 = arith.divf %129, %132 : vector<1x16xf32>
    %134 = arith.mulf %131, %131 : vector<1x16xf32>
    %135 = arith.subf %133, %134 : vector<1x16xf32>
    %cst_61 = arith.constant 9.99999974E-6 : f32
    %136 = vector.broadcast %cst_61 : f32 to vector<1x16xf32>
    %137 = arith.addf %135, %136 : vector<1x16xf32>
    %138 = math.rsqrt %137 : vector<1x16xf32>
    %139 = arith.mulf %121, %138 : vector<1x16xf32>
    %140 = arith.mulf %131, %139 : vector<1x16xf32>
    %141 = arith.subf %122, %140 : vector<1x16xf32>
    %cst_62 = arith.constant dense<0.000000e+00> : vector<1x256xf32>
    %142 = tpu.matmul %139, %1, %cst_62 {dimension_numbers = #tpu.dot_dimension_numbers<[1], [0], [0], [1], [0, 0, 1, 1], [], []>} : vector<1x16xf32>, vector<16x256xf32>, vector<1x256xf32> -> vector<1x256xf32>
    %cst_63 = arith.constant dense<0.000000e+00> : vector<1x256xf32>
    %143 = tpu.matmul %141, %1, %cst_63 {dimension_numbers = #tpu.dot_dimension_numbers<[1], [0], [0], [1], [0, 0, 1, 1], [], []>} : vector<1x16xf32>, vector<16x256xf32>, vector<1x256xf32> -> vector<1x256xf32>
    %144 = vector.broadcast %142 : vector<1x256xf32> to vector<32x256xf32>
    %145 = arith.mulf %120, %144 : vector<32x256xf32>
    %146 = vector.broadcast %143 : vector<1x256xf32> to vector<32x256xf32>
    %147 = arith.addf %145, %146 : vector<32x256xf32>
    %c0_64 = arith.constant 0 : index
    %c0_65 = arith.constant 0 : index
    %148 = vector.load %arg9[%c0_64, %c0_65] : memref<32x256xf32, #tpu.memory_space<vmem>>, vector<32x256xf32>
    tpu.vector_store %arg9[%c0_64, %c0_65], %147 {strides = array<i32>} : memref<32x256xf32, #tpu.memory_space<vmem>>, vector<32x256xf32>,
    return
  }
  func.func @transform_0(%arg0: i32) -> (i32, i32) {
    %c0_i32 = arith.constant 0 : i32
    %c0_i32_0 = arith.constant 0 : i32
    %c0_i32_1 = arith.constant 0 : i32
    return %c0_i32, %c0_i32_0 : i32, i32
  }
  func.func @transform_1(%arg0: i32) -> (i32, i32) {
    %c0_i32 = arith.constant 0 : i32
    %c0_i32_0 = arith.constant 0 : i32
    %c0_i32_1 = arith.constant 0 : i32
    return %c0_i32, %c0_i32_0 : i32, i32
  }
  func.func @transform_2(%arg0: i32) -> (i32, i32) {
    %c0_i32 = arith.constant 0 : i32
    %c0_i32_0 = arith.constant 0 : i32
    %c0_i32_1 = arith.constant 0 : i32
    return %c0_i32, %c0_i32_0 : i32, i32
  }
  func.func @transform_3(%arg0: i32) -> (i32, i32, i32) {
    %c0_i32 = arith.constant 0 : i32
    %c0_i32_0 = arith.constant 0 : i32
    %c0_i32_1 = arith.constant 0 : i32
    %c0_i32_2 = arith.constant 0 : i32
    return %c0_i32, %c0_i32_0, %c0_i32_1 : i32, i32, i32
  }
  func.func @transform_4(%arg0: i32) -> (i32, i32) {
    %c0_i32 = arith.constant 0 : i32
    %c0_i32_0 = arith.constant 0 : i32
    %c0_i32_1 = arith.constant 0 : i32
    return %c0_i32, %c0_i32_0 : i32, i32
  }
  func.func @transform_5(%arg0: i32) -> (i32, i32) {
    %c0_i32 = arith.constant 0 : i32
    %c0_i32_0 = arith.constant 0 : i32
    %c0_i32_1 = arith.constant 0 : i32
    return %c0_i32, %c0_i32_0 : i32, i32
  }
  func.func @transform_6(%arg0: i32) -> (i32, i32) {
    %c0_i32 = arith.constant 0 : i32
    %c0_i32_0 = arith.constant 0 : i32
    %c0_i32_1 = arith.constant 0 : i32
    return %c0_i32, %c0_i32_0 : i32, i32
  }
  func.func @transform_7(%arg0: i32) -> (i32, i32) {
    %c0_i32 = arith.constant 0 : i32
    %c0_i32_0 = arith.constant 0 : i32
    %c0_i32_1 = arith.constant 0 : i32
    return %c0_i32, %c0_i32_0 : i32, i32
  }
  func.func @transform_8(%arg0: i32) -> (i32, i32) {
    %c0_i32 = arith.constant 0 : i32
    %c0_i32_0 = arith.constant 0 : i32
    %c0_i32_1 = arith.constant 0 : i32
    return %c0_i32, %c0_i32_0 : i32, i32
  }
}

</mosaic_0001>

<bundles_post_ra>
// kernel: aff_forward.1
= control target key start
LH: loop header
LB: loop body
LE: loop exit
PB: predicated region body
PF: predicated region fallthrough
CT: control target
= control target key end

     0   :  { %13 = vsyncpa [#allocation3], 0  ;;  %s4212_s27 = smov [#allocation2]   ;;  %s6234_s0 = inlined_call_operand.vmem [shape: f32[32,512], index: 0, kind: input, shape index: {}]   ;;  %s6235_s1 = inlined_call_operand.hbm [shape: f32[512,512], index: 1, kind: input, shape index: {}]   ;;  %s6236_s2 = inlined_call_operand.vmem [shape: f32[1,512], index: 2, kind: input, shape index: {}]   ;;  %s6237_s3 = inlined_call_operand.vmem [shape: f32[3,256,512], index: 3, kind: input, shape index: {}]   ;;  %s6238_s4 = inlined_call_operand.vmem [shape: f32[1,512], index: 4, kind: input, shape index: {}]   ;;  %s6239_s5 = inlined_call_operand.vmem [shape: f32[256,16], index: 5, kind: input, shape index: {}]   ;;  %s6240_s6 = inlined_call_operand.vmem [shape: f32[16,256], index: 6, kind: input, shape index: {}]   ;;  %s6241_s7 = inlined_call_operand.vmem [shape: f32[4,16], index: 7, kind: input, shape index: {}]   ;;  %s6242_s8 = inlined_call_operand.vmem [shape: f32[32,256], index: 8, kind: output, shape index: {}]  }
   0x1   :  { %s21_s28 = sshll.u32 %s4212_s27, 4  ;;  %s4188_s9 = scalar_lea.hbm %s6235_s1, 32768  ;;  %s22_s28 = int_to_ptr.vmem [resolvable:$true] %s21_s28 }
   0x2   :  { %p4189_p0 = scmp.ne.s32.totalorder %s6235_s1, %s4188_s9  ;;  %p4192_p1 = scmp.lt.u32.totalorder %s4188_s9, %s6235_s1 }
   0x4   :  { %p4194_p2 = pnand %p4192_p1, %p4189_p0 }
   0x6   :  { %4197 = shalt.err (!%p4194_p2)
}
   0x7   :  { %s4198_s14 = scalar_lea.vmem %s22_s28, 32768  ;;  %p4203_p4 = scmp.lt.s32.totalorder %s22_s28, %s22_s28 }
   0x8   :  { %p4199_p3 = scmp.ne.s32.totalorder %s22_s28, %s4198_s14  ;;  %p4204_p5 = scmp.lt.s32.totalorder %s4198_s14, %s4198_s14 }
   0xa   :  { %p4205_p6 = por %p4204_p5, %p4203_p4 }
   0xc   :  { %p4206_p7 = pnand %p4205_p6, %p4199_p3 }
   0xe   :  { %4209 = shalt.err (!%p4206_p7)
}
   0xf   :  { %s4213_s15 = smov 512   ;;  %s4214_s16 = smov 32  }
  0x10   :  { %27 = dma.hbm_to_vmem [thread:$0]  %s6235_s1, 32768, %s22_s28, [#allocation3], %s4213_s15, %s4213_s15, %s4214_s16  }
  0x11   :  { %4210 = dma.done.wait [#allocation3], 32768  }
  0x12   :  { %4211 = vsyncadd [#allocation3], 4294934528  ;;  %v96_v0 = vld [vmem:[#allocation2 + $0x8] sm:$0xff]  ;;  %v98_v2 = vld [vmem:[#allocation2 + $0x18] sm:$0xff] }
  0x13   :  { %v100_v1 = vld [vmem:[#allocation2 + $0x28] sm:$0xff]  ;;  %v102_v4 = vld [vmem:[#allocation2 + $0x38] sm:$0xff]  ;;  %v95_v5 = vld [vmem:[#allocation2] sm:$0xff] }
  0x14   :  { %v3252_v3 = vpack.c.bf16 %v100_v1, %v96_v0  ;;  %v99_v6 = vld [vmem:[#allocation2 + $0x20] sm:$0xff]  ;;  %v3380_v7 = vpack.c.bf16 %v102_v4, %v98_v2  ;;  %v97_v9 = vld [vmem:[#allocation2 + $0x10] sm:$0xff]  ;;  %v104_v11 = vld [vmem:[#allocation2 + $0x48] sm:$0xff] }
  0x15   :  { %v3254_v8 = vpack.c.bf16 %v99_v6, %v95_v5  ;;  %v101_v10 = vld [vmem:[#allocation2 + $0x30] sm:$0xff]  ;;  %v108_v13 = vld [vmem:[#allocation2 + $0x68] sm:$0xff]  ;;  %v106_v14 = vld [vmem:[#allocation2 + $0x58] sm:$0xff] }
  0x16   :  { %3253 = vmatprep.subr.bf16.mxu0 %v3252_v3  ;;  %v3382_v12 = vpack.c.bf16 %v101_v10, %v97_v9  ;;  %v110_v15 = vld [vmem:[#allocation2 + $0x78] sm:$0xff]  ;;  %3381 = vmatprep.subr.bf16.mxu1 %v3380_v7  ;;  %v3256_v16 = vpack.c.bf16 %v108_v13, %v104_v11  ;;  %v103_v18 = vld [vmem:[#allocation2 + $0x40] sm:$0xff]  ;;  %v105_v20 = vld [vmem:[#allocation2 + $0x50] sm:$0xff] }
  0x17   :  { %3255 = vmatpush1.bf16.msra.mxu0 %v3254_v8  ;;  %v3384_v17 = vpack.c.bf16 %v110_v15, %v106_v14  ;;  %v107_v19 = vld [vmem:[#allocation2 + $0x60] sm:$0xff]  ;;  %v109_v22 = vld [vmem:[#allocation2 + $0x70] sm:$0xff]  ;;  %v112_v23 = vld [vmem:[#allocation2 + $0x88] sm:$0xff] }
  0x18   :  { %3383 = vmatpush1.bf16.msra.mxu1 %v3382_v12  ;;  %v3258_v21 = vpack.c.bf16 %v107_v19, %v103_v18  ;;  %v116_v24 = vld [vmem:[#allocation2 + $0xa8] sm:$0xff]  ;;  %3257 = vmatprep.subr.bf16.mxu0 %v3256_v16  ;;  %v3386_v25 = vpack.c.bf16 %v109_v22, %v105_v20  ;;  %v114_v27 = vld [vmem:[#allocation2 + $0x98] sm:$0xff]  ;;  %v111_v29 = vld [vmem:[#allocation2 + $0x80] sm:$0xff] }
  0x19   :  { %3385 = vmatprep.subr.bf16.mxu1 %v3384_v17  ;;  %v3260_v26 = vpack.c.bf16 %v116_v24, %v112_v23  ;;  %v118_v28 = vld [vmem:[#allocation2 + $0xb8] sm:$0xff]  ;;  %v115_v31 = vld [vmem:[#allocation2 + $0xa0] sm:$0xff]  ;;  %v113_v32 = vld [vmem:[#allocation2 + $0x90] sm:$0xff] }
  0x1a   :  { %v3388_v30 = vpack.c.bf16 %v118_v28, %v114_v27  ;;  %v117_v33 = vld [vmem:[#allocation2 + $0xb0] sm:$0xff]  ;;  %v3262_v34 = vpack.c.bf16 %v115_v31, %v111_v29  ;;  %v120_v35 = vld [vmem:[#allocation2 + $0xc8] sm:$0xff]  ;;  %v122_v37 = vld [vmem:[#allocation2 + $0xd8] sm:$0xff] }
  0x1b   :  { %3259 = vmatpush1.bf16.msra.mxu0 %v3258_v21  ;;  %v124_v36 = vld [vmem:[#allocation2 + $0xe8] sm:$0xff]  ;;  %v3390_v38 = vpack.c.bf16 %v117_v33, %v113_v32  ;;  %v126_v40 = vld [vmem:[#allocation2 + $0xf8] sm:$0xff]  ;;  %v119_v41 = vld [vmem:[#allocation2 + $0xc0] sm:$0xff] }
  0x1c   :  { %3387 = vmatpush1.bf16.msra.mxu1 %v3386_v25  ;;  %3261 = vmatprep.subr.bf16.mxu0 %v3260_v26  ;;  %v3264_v39 = vpack.c.bf16 %v124_v36, %v120_v35  ;;  %v123_v42 = vld [vmem:[#allocation2 + $0xe0] sm:$0xff]  ;;  %v3392_v43 = vpack.c.bf16 %v126_v40, %v122_v37  ;;  %v121_v44 = vld [vmem:[#allocation2 + $0xd0] sm:$0xff]  ;;  %v128_v46 = vld [vmem:[#allocation2 + $0x108] sm:$0xff] }
  0x1d   :  { %3389 = vmatprep.subr.bf16.mxu1 %v3388_v30  ;;  %v125_v45 = vld [vmem:[#allocation2 + $0xf0] sm:$0xff]  ;;  %v132_v47 = vld [vmem:[#allocation2 + $0x128] sm:$0xff]  ;;  %v130_v48 = vld [vmem:[#allocation2 + $0x118] sm:$0xff]  ;;  %v3266_v50 = vpack.c.bf16 %v123_v42, %v119_v41 }
  0x1e   :  { %v134_v49 = vld [vmem:[#allocation2 + $0x138] sm:$0xff]  ;;  %v3394_v51 = vpack.c.bf16 %v125_v45, %v121_v44  ;;  %v3268_v52 = vpack.c.bf16 %v132_v47, %v128_v46  ;;  %v127_v53 = vld [vmem:[#allocation2 + $0x100] sm:$0xff]  ;;  %v129_v55 = vld [vmem:[#allocation2 + $0x110] sm:$0xff] }
  0x1f   :  { %3263 = vmatpush1.bf16.msra.mxu0 %v3262_v34  ;;  %v131_v54 = vld [vmem:[#allocation2 + $0x120] sm:$0xff]  ;;  %v3396_v56 = vpack.c.bf16 %v134_v49, %v130_v48  ;;  %v133_v57 = vld [vmem:[#allocation2 + $0x130] sm:$0xff]  ;;  %v136_v58 = vld [vmem:[#allocation2 + $0x148] sm:$0xff] }
  0x20   :  { %3391 = vmatpush1.bf16.msra.mxu1 %v3390_v38  ;;  %3265 = vmatprep.subr.bf16.mxu0 %v3264_v39  ;;  %v140_v59 = vld [vmem:[#allocation2 + $0x168] sm:$0xff]  ;;  %v138_v60 = vld [vmem:[#allocation2 + $0x158] sm:$0xff]  ;;  %v3270_v62 = vpack.c.bf16 %v131_v54, %v127_v53  ;;  %v3398_v63 = vpack.c.bf16 %v133_v57, %v129_v55  ;;  %v135_v1 = vld [vmem:[#allocation2 + $0x140] sm:$0xff] }
  0x21   :  { %3393 = vmatprep.subr.bf16.mxu1 %v3392_v43  ;;  %v142_v61 = vld [vmem:[#allocation2 + $0x178] sm:$0xff]  ;;  %v3272_v0 = vpack.c.bf16 %v140_v59, %v136_v58  ;;  %v139_v2 = vld [vmem:[#allocation2 + $0x160] sm:$0xff]  ;;  %v137_v3 = vld [vmem:[#allocation2 + $0x150] sm:$0xff] }
  0x22   :  { %v3400_v4 = vpack.c.bf16 %v142_v61, %v138_v60  ;;  %v141_v5 = vld [vmem:[#allocation2 + $0x170] sm:$0xff]  ;;  %v144_v6 = vld [vmem:[#allocation2 + $0x188] sm:$0xff]  ;;  %v146_v8 = vld [vmem:[#allocation2 + $0x198] sm:$0xff]  ;;  %v3274_v10 = vpack.c.bf16 %v139_v2, %v135_v1 }
  0x23   :  { %3267 = vmatpush1.bf16.msra.mxu0 %v3266_v50  ;;  %v148_v7 = vld [vmem:[#allocation2 + $0x1a8] sm:$0xff]  ;;  %v150_v9 = vld [vmem:[#allocation2 + $0x1b8] sm:$0xff]  ;;  %v3402_v11 = vpack.c.bf16 %v141_v5, %v137_v3  ;;  %v143_v13 = vld [vmem:[#allocation2 + $0x180] sm:$0xff] }
  0x24   :  { %3395 = vmatpush1.bf16.msra.mxu1 %v3394_v51  ;;  %3269 = vmatprep.subr.bf16.mxu0 %v3268_v52  ;;  %v3276_v12 = vpack.c.bf16 %v148_v7, %v144_v6  ;;  %v147_v14 = vld [vmem:[#allocation2 + $0x1a0] sm:$0xff]  ;;  %v145_v15 = vld [vmem:[#allocation2 + $0x190] sm:$0xff]  ;;  %v3404_v16 = vpack.c.bf16 %v150_v9, %v146_v8  ;;  %v152_v18 = vld [vmem:[#allocation2 + $0x1c8] sm:$0xff] }
  0x25   :  { %3397 = vmatprep.subr.bf16.mxu1 %v3396_v56  ;;  %v149_v17 = vld [vmem:[#allocation2 + $0x1b0] sm:$0xff]  ;;  %v156_v19 = vld [vmem:[#allocation2 + $0x1e8] sm:$0xff]  ;;  %v154_v20 = vld [vmem:[#allocation2 + $0x1d8] sm:$0xff]  ;;  %v3278_v22 = vpack.c.bf16 %v147_v14, %v143_v13 }
  0x26   :  { %v158_v21 = vld [vmem:[#allocation2 + $0x1f8] sm:$0xff]  ;;  %v3406_v23 = vpack.c.bf16 %v149_v17, %v145_v15  ;;  %v3280_v24 = vpack.c.bf16 %v156_v19, %v152_v18  ;;  %v151_v25 = vld [vmem:[#allocation2 + $0x1c0] sm:$0xff]  ;;  %v153_v27 = vld [vmem:[#allocation2 + $0x1d0] sm:$0xff] }
  0x27   :  { %3271 = vmatpush1.bf16.msra.mxu0 %v3270_v62  ;;  %v155_v26 = vld [vmem:[#allocation2 + $0x1e0] sm:$0xff]  ;;  %v3408_v28 = vpack.c.bf16 %v158_v21, %v154_v20  ;;  %v157_v29 = vld [vmem:[#allocation2 + $0x1f0] sm:$0xff]  ;;  %v160_v30 = vld [vmem:[#allocation2 + $0x208] sm:$0xff] }
  0x28   :  { %3399 = vmatpush1.bf16.msra.mxu1 %v3398_v63  ;;  %3273 = vmatprep.subr.bf16.mxu0 %v3272_v0  ;;  %v164_v31 = vld [vmem:[#allocation2 + $0x228] sm:$0xff]  ;;  %v162_v32 = vld [vmem:[#allocation2 + $0x218] sm:$0xff]  ;;  %v3282_v34 = vpack.c.bf16 %v155_v26, %v151_v25  ;;  %v3410_v35 = vpack.c.bf16 %v157_v29, %v153_v27  ;;  %v159_v37 = vld [vmem:[#allocation2 + $0x200] sm:$0xff] }
  0x29   :  { %3401 = vmatprep.subr.bf16.mxu1 %v3400_v4  ;;  %v166_v33 = vld [vmem:[#allocation2 + $0x238] sm:$0xff]  ;;  %v3284_v36 = vpack.c.bf16 %v164_v31, %v160_v30  ;;  %v163_v38 = vld [vmem:[#allocation2 + $0x220] sm:$0xff]  ;;  %v161_v39 = vld [vmem:[#allocation2 + $0x210] sm:$0xff] }
  0x2a   :  { %v3412_v40 = vpack.c.bf16 %v166_v33, %v162_v32  ;;  %v165_v41 = vld [vmem:[#allocation2 + $0x230] sm:$0xff]  ;;  %v168_v42 = vld [vmem:[#allocation2 + $0x248] sm:$0xff]  ;;  %v170_v44 = vld [vmem:[#allocation2 + $0x258] sm:$0xff]  ;;  %v3286_v46 = vpack.c.bf16 %v163_v38, %v159_v37 }
  0x2b   :  { %3275 = vmatpush1.bf16.msra.mxu0 %v3274_v10  ;;  %v172_v43 = vld [vmem:[#allocation2 + $0x268] sm:$0xff]  ;;  %v174_v45 = vld [vmem:[#allocation2 + $0x278] sm:$0xff]  ;;  %v3414_v47 = vpack.c.bf16 %v165_v41, %v161_v39  ;;  %v167_v49 = vld [vmem:[#allocation2 + $0x240] sm:$0xff] }
  0x2c   :  { %3403 = vmatpush1.bf16.msra.mxu1 %v3402_v11  ;;  %3277 = vmatprep.subr.bf16.mxu0 %v3276_v12  ;;  %v3288_v48 = vpack.c.bf16 %v172_v43, %v168_v42  ;;  %v171_v50 = vld [vmem:[#allocation2 + $0x260] sm:$0xff]  ;;  %v169_v51 = vld [vmem:[#allocation2 + $0x250] sm:$0xff]  ;;  %v3416_v52 = vpack.c.bf16 %v174_v45, %v170_v44  ;;  %v176_v54 = vld [vmem:[#allocation2 + $0x288] sm:$0xff] }
  0x2d   :  { %3405 = vmatprep.subr.bf16.mxu1 %v3404_v16  ;;  %v173_v53 = vld [vmem:[#allocation2 + $0x270] sm:$0xff]  ;;  %v180_v55 = vld [vmem:[#allocation2 + $0x2a8] sm:$0xff]  ;;  %v178_v56 = vld [vmem:[#allocation2 + $0x298] sm:$0xff]  ;;  %v3290_v58 = vpack.c.bf16 %v171_v50, %v167_v49 }
  0x2e   :  { %v182_v57 = vld [vmem:[#allocation2 + $0x2b8] sm:$0xff]  ;;  %v3418_v59 = vpack.c.bf16 %v173_v53, %v169_v51  ;;  %v3292_v60 = vpack.c.bf16 %v180_v55, %v176_v54  ;;  %v175_v61 = vld [vmem:[#allocation2 + $0x280] sm:$0xff]  ;;  %v177_v63 = vld [vmem:[#allocation2 + $0x290] sm:$0xff] }
  0x2f   :  { %3279 = vmatpush1.bf16.msra.mxu0 %v3278_v22  ;;  %v179_v62 = vld [vmem:[#allocation2 + $0x2a0] sm:$0xff]  ;;  %v3420_v0 = vpack.c.bf16 %v182_v57, %v178_v56  ;;  %v181_v1 = vld [vmem:[#allocation2 + $0x2b0] sm:$0xff]  ;;  %v184_v2 = vld [vmem:[#allocation2 + $0x2c8] sm:$0xff] }
  0x30   :  { %3407 = vmatpush1.bf16.msra.mxu1 %v3406_v23  ;;  %3281 = vmatprep.subr.bf16.mxu0 %v3280_v24  ;;  %v188_v3 = vld [vmem:[#allocation2 + $0x2e8] sm:$0xff]  ;;  %v186_v4 = vld [vmem:[#allocation2 + $0x2d8] sm:$0xff]  ;;  %v3294_v6 = vpack.c.bf16 %v179_v62, %v175_v61  ;;  %v183_v7 = vld [vmem:[#allocation2 + $0x2c0] sm:$0xff]  ;;  %v3422_v8 = vpack.c.bf16 %v181_v1, %v177_v63 }
  0x31   :  { %3409 = vmatprep.subr.bf16.mxu1 %v3408_v28  ;;  %v190_v5 = vld [vmem:[#allocation2 + $0x2f8] sm:$0xff]  ;;  %v3296_v9 = vpack.c.bf16 %v188_v3, %v184_v2  ;;  %v187_v10 = vld [vmem:[#allocation2 + $0x2e0] sm:$0xff]  ;;  %v185_v11 = vld [vmem:[#allocation2 + $0x2d0] sm:$0xff] }
  0x32   :  { %v189_v12 = vld [vmem:[#allocation2 + $0x2f0] sm:$0xff]  ;;  %v3424_v13 = vpack.c.bf16 %v190_v5, %v186_v4  ;;  %v192_v14 = vld [vmem:[#allocation2 + $0x308] sm:$0xff]  ;;  %v194_v17 = vld [vmem:[#allocation2 + $0x318] sm:$0xff]  ;;  %v3298_v19 = vpack.c.bf16 %v187_v10, %v183_v7 }
  0x33   :  { %3283 = vmatpush1.bf16.msra.mxu0 %v3282_v34  ;;  %v196_v15 = vld [vmem:[#allocation2 + $0x328] sm:$0xff]  ;;  %v198_v18 = vld [vmem:[#allocation2 + $0x338] sm:$0xff]  ;;  %v3426_v20 = vpack.c.bf16 %v189_v12, %v185_v11  ;;  %v191_v22 = vld [vmem:[#allocation2 + $0x300] sm:$0xff] }
  0x34   :  { %3411 = vmatpush1.bf16.msra.mxu1 %v3410_v35  ;;  %3285 = vmatprep.subr.bf16.mxu0 %v3284_v36  ;;  %v80_v16 = vld [vmem:[%s6234_s0 + $0x8] sm:$0xff]  ;;  %v3300_v21 = vpack.c.bf16 %v196_v15, %v192_v14  ;;  %v195_v23 = vld [vmem:[#allocation2 + $0x320] sm:$0xff]  ;;  %v193_v24 = vld [vmem:[#allocation2 + $0x310] sm:$0xff]  ;;  %v3428_v25 = vpack.c.bf16 %v198_v18, %v194_v17 }
  0x35   :  { %3413 = vmatprep.subr.bf16.mxu1 %v3412_v40  ;;  %437 = vmatprep.mubr.f32.mxu0 %v80_v16  ;;  %v197_v26 = vld [vmem:[#allocation2 + $0x330] sm:$0xff]  ;;  %v200_v27 = vld [vmem:[#allocation2 + $0x348] sm:$0xff]  ;;  %v202_v29 = vld [vmem:[#allocation2 + $0x358] sm:$0xff]  ;;  %v3302_v31 = vpack.c.bf16 %v195_v23, %v191_v22 }
  0x36   :  { %615 = vmatprep.mubr.f32.mxu1 %v80_v16  ;;  %v204_v28 = vld [vmem:[#allocation2 + $0x368] sm:$0xff]  ;;  %v206_v30 = vld [vmem:[#allocation2 + $0x378] sm:$0xff]  ;;  %v3430_v32 = vpack.c.bf16 %v197_v26, %v193_v24  ;;  %v199_v34 = vld [vmem:[#allocation2 + $0x340] sm:$0xff] }
  0x37   :  { %3287 = vmatpush1.bf16.msra.mxu0 %v3286_v46  ;;  %v3304_v33 = vpack.c.bf16 %v204_v28, %v200_v27  ;;  %v203_v35 = vld [vmem:[#allocation2 + $0x360] sm:$0xff]  ;;  %v201_v36 = vld [vmem:[#allocation2 + $0x350] sm:$0xff]  ;;  %v3432_v37 = vpack.c.bf16 %v206_v30, %v202_v29  ;;  %v208_v39 = vld [vmem:[#allocation2 + $0x388] sm:$0xff] }
  0x38   :  { %3415 = vmatpush1.bf16.msra.mxu1 %v3414_v47  ;;  %3289 = vmatprep.subr.bf16.mxu0 %v3288_v48  ;;  %v205_v38 = vld [vmem:[#allocation2 + $0x370] sm:$0xff]  ;;  %v212_v40 = vld [vmem:[#allocation2 + $0x3a8] sm:$0xff]  ;;  %v210_v41 = vld [vmem:[#allocation2 + $0x398] sm:$0xff]  ;;  %v3306_v43 = vpack.c.bf16 %v203_v35, %v199_v34 }
  0x39   :  { %3417 = vmatprep.subr.bf16.mxu1 %v3416_v52  ;;  %v214_v42 = vld [vmem:[#allocation2 + $0x3b8] sm:$0xff]  ;;  %v3434_v44 = vpack.c.bf16 %v205_v38, %v201_v36  ;;  %v3308_v45 = vpack.c.bf16 %v212_v40, %v208_v39  ;;  %v207_v46 = vld [vmem:[#allocation2 + $0x380] sm:$0xff]  ;;  %v209_v48 = vld [vmem:[#allocation2 + $0x390] sm:$0xff] }
  0x3a   :  { %v211_v47 = vld [vmem:[#allocation2 + $0x3a0] sm:$0xff]  ;;  %v3436_v49 = vpack.c.bf16 %v214_v42, %v210_v41  ;;  %v213_v50 = vld [vmem:[#allocation2 + $0x3b0] sm:$0xff]  ;;  %v216_v51 = vld [vmem:[#allocation2 + $0x3c8] sm:$0xff] }
  0x3b   :  { %3291 = vmatpush1.bf16.msra.mxu0 %v3290_v58  ;;  %v220_v52 = vld [vmem:[#allocation2 + $0x3e8] sm:$0xff]  ;;  %v218_v53 = vld [vmem:[#allocation2 + $0x3d8] sm:$0xff]  ;;  %v3310_v55 = vpack.c.bf16 %v211_v47, %v207_v46  ;;  %v3438_v56 = vpack.c.bf16 %v213_v50, %v209_v48  ;;  %v215_v58 = vld [vmem:[#allocation2 + $0x3c0] sm:$0xff] }
  0x3c   :  { %3419 = vmatpush1.bf16.msra.mxu1 %v3418_v59  ;;  %3293 = vmatprep.subr.bf16.mxu0 %v3292_v60  ;;  %v222_v54 = vld [vmem:[#allocation2 + $0x3f8] sm:$0xff]  ;;  %v3312_v57 = vpack.c.bf16 %v220_v52, %v216_v51  ;;  %v219_v59 = vld [vmem:[#allocation2 + $0x3e0] sm:$0xff]  ;;  %v217_v60 = vld [vmem:[#allocation2 + $0x3d0] sm:$0xff] }
  0x3d   :  { %3421 = vmatprep.subr.bf16.mxu1 %v3420_v0  ;;  %v3440_v61 = vpack.c.bf16 %v222_v54, %v218_v53  ;;  %v221_v62 = vld [vmem:[#allocation2 + $0x3f0] sm:$0xff]  ;;  %v224_v63 = vld [vmem:[#allocation2 + $0x408] sm:$0xff]  ;;  %v226_v1 = vld [vmem:[#allocation2 + $0x418] sm:$0xff]  ;;  %v3314_v3 = vpack.c.bf16 %v219_v59, %v215_v58 }
  0x3e   :  { %v228_v0 = vld [vmem:[#allocation2 + $0x428] sm:$0xff]  ;;  %v230_v2 = vld [vmem:[#allocation2 + $0x438] sm:$0xff]  ;;  %v3442_v4 = vpack.c.bf16 %v221_v62, %v217_v60  ;;  %v227_v7 = vld [vmem:[#allocation2 + $0x420] sm:$0xff] }
  0x3f   :  { %3295 = vmatpush1.bf16.msra.mxu0 %v3294_v6  ;;  %v3316_v5 = vpack.c.bf16 %v228_v0, %v224_v63  ;;  %v223_v6 = vld [vmem:[#allocation2 + $0x400] sm:$0xff]  ;;  %v229_v10 = vld [vmem:[#allocation2 + $0x430] sm:$0xff]  ;;  %v232_v11 = vld [vmem:[#allocation2 + $0x448] sm:$0xff] }
  0x40   :  { %3423 = vmatpush1.bf16.msra.mxu1 %v3422_v8  ;;  %3297 = vmatprep.subr.bf16.mxu0 %v3296_v9  ;;  %v225_v8 = vld [vmem:[#allocation2 + $0x410] sm:$0xff]  ;;  %v3444_v9 = vpack.c.bf16 %v230_v2, %v226_v1  ;;  %v236_v12 = vld [vmem:[#allocation2 + $0x468] sm:$0xff]  ;;  %v238_v14 = vld [vmem:[#allocation2 + $0x478] sm:$0xff]  ;;  %v3318_v16 = vpack.c.bf16 %v227_v7, %v223_v6 }
  0x41   :  { %3425 = vmatprep.subr.bf16.mxu1 %v3424_v13  ;;  %v234_v13 = vld [vmem:[#allocation2 + $0x458] sm:$0xff]  ;;  %v79_v15 = vld [vmem:[%s6234_s0] sm:$0xff]  ;;  %v3446_v17 = vpack.c.bf16 %v229_v10, %v225_v8  ;;  %v3320_v18 = vpack.c.bf16 %v236_v12, %v232_v11  ;;  %v237_v23 = vld [vmem:[#allocation2 + $0x470] sm:$0xff] }
  0x42   :  { %v3448_v22 = vpack.c.bf16 %v238_v14, %v234_v13  ;;  %v240_v24 = vld [vmem:[#allocation2 + $0x488] sm:$0xff]  ;;  %v242_v26 = vld [vmem:[#allocation2 + $0x498] sm:$0xff]  ;;  %v245_v35 = vld [vmem:[#allocation2 + $0x4b0] sm:$0xff] }
  0x43   :  { %3299 = vmatpush1.bf16.msra.mxu0 %v3298_v19  ;;  %v231_v19 = vld [vmem:[#allocation2 + $0x440] sm:$0xff]  ;;  %v246_v27 = vld [vmem:[#allocation2 + $0x4b8] sm:$0xff]  ;;  %v248_v36 = vld [vmem:[#allocation2 + $0x4c8] sm:$0xff] }
  0x44   :  { %3427 = vmatpush1.bf16.msra.mxu1 %v3426_v20  ;;  %3301 = vmatprep.subr.bf16.mxu0 %v3300_v21  ;;  %v235_v20 = vld [vmem:[#allocation2 + $0x460] sm:$0xff]  ;;  %v233_v21 = vld [vmem:[#allocation2 + $0x450] sm:$0xff]  ;;  %v3452_v34 = vpack.c.bf16 %v246_v27, %v242_v26  ;;  %v250_v38 = vld [vmem:[#allocation2 + $0x4d8] sm:$0xff] }
  0x45   :  { %3429 = vmatprep.subr.bf16.mxu1 %v3428_v25  ;;  %v244_v25 = vld [vmem:[#allocation2 + $0x4a8] sm:$0xff]  ;;  %v3322_v28 = vpack.c.bf16 %v235_v20, %v231_v19  ;;  %v3450_v29 = vpack.c.bf16 %v237_v23, %v233_v21  ;;  %v254_v39 = vld [vmem:[#allocation2 + $0x4f8] sm:$0xff]  ;;  %v253_v47 = vld [vmem:[#allocation2 + $0x4f0] sm:$0xff] }
  0x46   :  { %v3324_v30 = vpack.c.bf16 %v244_v25, %v240_v24  ;;  %v3456_v46 = vpack.c.bf16 %v254_v39, %v250_v38  ;;  %v256_v48 = vld [vmem:[#allocation2 + $0x508] sm:$0xff]  ;;  %v258_v50 = vld [vmem:[#allocation2 + $0x518] sm:$0xff]  ;;  %v255_v53 = vld [vmem:[#allocation2 + $0x500] sm:$0xff] }
  0x47   :  { %3303 = vmatpush1.bf16.msra.mxu0 %v3302_v31  ;;  %v239_v31 = vld [vmem:[#allocation2 + $0x480] sm:$0xff]  ;;  %v262_v51 = vld [vmem:[#allocation2 + $0x538] sm:$0xff]  ;;  %v261_v58 = vld [vmem:[#allocation2 + $0x530] sm:$0xff] }
  0x48   :  { %3431 = vmatpush1.bf16.msra.mxu1 %v3430_v32  ;;  %3305 = vmatprep.subr.bf16.mxu0 %v3304_v33  ;;  %v243_v32 = vld [vmem:[#allocation2 + $0x4a0] sm:$0xff]  ;;  %v241_v33 = vld [vmem:[#allocation2 + $0x490] sm:$0xff]  ;;  %v264_v59 = vld [vmem:[#allocation2 + $0x548] sm:$0xff]  ;;  %v3460_v60 = vpack.c.bf16 %v262_v51, %v258_v50 }
  0x49   :  { %3433 = vmatprep.subr.bf16.mxu1 %v3432_v37  ;;  %v252_v37 = vld [vmem:[#allocation2 + $0x4e8] sm:$0xff]  ;;  %v3326_v40 = vpack.c.bf16 %v243_v32, %v239_v31  ;;  %v3454_v41 = vpack.c.bf16 %v245_v35, %v241_v33  ;;  %v259_v54 = vld [vmem:[#allocation2 + $0x520] sm:$0xff]  ;;  %v266_v0 = vld [vmem:[#allocation2 + $0x558] sm:$0xff] }
  0x4a   :  { %v3328_v42 = vpack.c.bf16 %v252_v37, %v248_v36  ;;  %v84_v62 = vld [vmem:[%s6234_s0 + $0x28] sm:$0xff]  ;;  %v83_v63 = vld [vmem:[%s6234_s0 + $0x20] sm:$0xff]  ;;  %v270_v1 = vld [vmem:[#allocation2 + $0x578] sm:$0xff]  ;;  %v3334_v2 = vpack.c.bf16 %v259_v54, %v255_v53 }
  0x4b   :  { %3307 = vmatpush1.bf16.msra.mxu0 %v3306_v43  ;;  %v247_v43 = vld [vmem:[#allocation2 + $0x4c0] sm:$0xff]  ;;  %v265_v7 = vld [vmem:[#allocation2 + $0x550] sm:$0xff]  ;;  %v88_v8 = vld [vmem:[%s6234_s0 + $0x48] sm:$0xff]  ;;  %v3464_v10 = vpack.c.bf16 %v270_v1, %v266_v0 }
  0x4c   :  { %3435 = vmatpush1.bf16.msra.mxu1 %v3434_v44  ;;  %3309 = vmatprep.subr.bf16.mxu0 %v3308_v45  ;;  %v251_v44 = vld [vmem:[#allocation2 + $0x4e0] sm:$0xff]  ;;  %v249_v45 = vld [vmem:[#allocation2 + $0x4d0] sm:$0xff]  ;;  %v272_v12 = vld [vmem:[#allocation2 + $0x588] sm:$0xff] }
  0x4d   :  { %3437 = vmatprep.subr.bf16.mxu1 %v3436_v49  ;;  %v260_v49 = vld [vmem:[#allocation2 + $0x528] sm:$0xff]  ;;  %v3330_v52 = vpack.c.bf16 %v251_v44, %v247_v43  ;;  %v269_v11 = vld [vmem:[#allocation2 + $0x570] sm:$0xff]  ;;  %v274_v14 = vld [vmem:[#allocation2 + $0x598] sm:$0xff] }
  0x4e   :  { %v276_v13 = vld [vmem:[#allocation2 + $0x5a8] sm:$0xff]  ;;  %v3466_v19 = vpack.c.bf16 %v269_v11, %v265_v7  ;;  %v275_v21 = vld [vmem:[#allocation2 + $0x5a0] sm:$0xff]  ;;  %v277_v25 = vld [vmem:[#allocation2 + $0x5b0] sm:$0xff] }
  0x4f   :  { %3311 = vmatpush1.bf16.msra.mxu0 %v3310_v55  ;;  %v3458_v55 = vpack.c.bf16 %v253_v47, %v249_v45  ;;  %v3340_v20 = vpack.c.bf16 %v276_v13, %v272_v12  ;;  %v91_v23 = vld [vmem:[%s6234_s0 + $0x60] sm:$0xff]  ;;  %v280_v26 = vld [vmem:[#allocation2 + $0x5c8] sm:$0xff]  ;;  %v82_v31 = vld [vmem:[%s6234_s0 + $0x18] sm:$0xff] }
  0x50   :  { %3439 = vmatpush1.bf16.msra.mxu1 %v3438_v56  ;;  %3313 = vmatprep.subr.bf16.mxu0 %v3312_v57  ;;  %v3332_v56 = vpack.c.bf16 %v260_v49, %v256_v48  ;;  %v257_v57 = vld [vmem:[#allocation2 + $0x510] sm:$0xff]  ;;  %v284_v27 = vld [vmem:[#allocation2 + $0x5e8] sm:$0xff]  ;;  %v283_v35 = vld [vmem:[#allocation2 + $0x5e0] sm:$0xff] }
  0x51   :  { %3441 = vmatprep.subr.bf16.mxu1 %v3440_v61  ;;  %v268_v61 = vld [vmem:[#allocation2 + $0x568] sm:$0xff]  ;;  %v3344_v33 = vpack.c.bf16 %v284_v27, %v280_v26  ;;  %v281_v36 = vld [vmem:[#allocation2 + $0x5d0] sm:$0xff]  ;;  %v291_v47 = vld [vmem:[#allocation2 + $0x620] sm:$0xff] }
  0x52   :  { %v3336_v6 = vpack.c.bf16 %v268_v61, %v264_v59  ;;  %v285_v38 = vld [vmem:[#allocation2 + $0x5f0] sm:$0xff]  ;;  %v288_v39 = vld [vmem:[#allocation2 + $0x608] sm:$0xff]  ;;  %v298_v53 = vld [vmem:[#allocation2 + $0x658] sm:$0xff] }
  0x53   :  { %3315 = vmatpush1.bf16.msra.mxu0 %v3314_v3  ;;  %v263_v3 = vld [vmem:[#allocation2 + $0x540] sm:$0xff]  ;;  %v3474_v44 = vpack.c.bf16 %v285_v38, %v281_v36  ;;  %v289_v48 = vld [vmem:[#allocation2 + $0x610] sm:$0xff]  ;;  %v296_v51 = vld [vmem:[#allocation2 + $0x648] sm:$0xff] }
  0x54   :  { %3443 = vmatpush1.bf16.msra.mxu1 %v3442_v4  ;;  %3317 = vmatprep.subr.bf16.mxu0 %v3316_v5  ;;  %v267_v4 = vld [vmem:[#allocation2 + $0x560] sm:$0xff]  ;;  %v3462_v5 = vpack.c.bf16 %v261_v58, %v257_v57  ;;  %v293_v50 = vld [vmem:[#allocation2 + $0x630] sm:$0xff]  ;;  %v302_v54 = vld [vmem:[#allocation2 + $0x678] sm:$0xff] }
  0x55   :  { %3445 = vmatprep.subr.bf16.mxu1 %v3444_v9  ;;  %v87_v9 = vld [vmem:[%s6234_s0 + $0x40] sm:$0xff]  ;;  %v3480_v61 = vpack.c.bf16 %v302_v54, %v298_v53  ;;  %v308_v0 = vld [vmem:[#allocation2 + $0x6a8] sm:$0xff]  ;;  %v306_v1 = vld [vmem:[#allocation2 + $0x698] sm:$0xff] }
  0x56   :  { %438 = vmatmul.mubr.f32.vlgmr.msra.gmra.mrb[0].mxu0 %v79_v15  ;;  %v295_v58 = vld [vmem:[#allocation2 + $0x640] sm:$0xff]  ;;  %v312_v11 = vld [vmem:[#allocation2 + $0x6c8] sm:$0xff]  ;;  %v314_v13 = vld [vmem:[#allocation2 + $0x6d8] sm:$0xff] }
  0x57   :  { %3319 = vmatpush1.bf16.msra.mxu0 %v3318_v16  ;;  %616 = vmatmul.mubr.f32.vlgmr.msra.gmra.mrb[0].mxu1 %v79_v15  ;;  %v278_v15 = vld [vmem:[#allocation2 + $0x5b8] sm:$0xff]  ;;  %v3338_v16 = vpack.c.bf16 %v267_v4, %v263_v3  ;;  %v299_v59 = vld [vmem:[#allocation2 + $0x660] sm:$0xff]  ;;  %v316_v12 = vld [vmem:[#allocation2 + $0x6e8] sm:$0xff] }
  0x58   :  { %3447 = vmatpush1.bf16.msra.mxu1 %v3446_v17  ;;  %3321 = vmatprep.subr.bf16.mxu0 %v3320_v18  ;;  %v271_v17 = vld [vmem:[#allocation2 + $0x580] sm:$0xff]  ;;  %v92_v18 = vld [vmem:[%s6234_s0 + $0x68] sm:$0xff]  ;;  %v3468_v24 = vpack.c.bf16 %v278_v15, %v274_v14  ;;  %v3354_v3 = vpack.c.bf16 %v299_v59, %v295_v58  ;;  %v318_v14 = vld [vmem:[#allocation2 + $0x6f8] sm:$0xff] }
  0x59   :  { %3449 = vmatprep.subr.bf16.mxu1 %v3448_v22  ;;  %443 = vmatprep.mubr.f32.mxu0 %v84_v62  ;;  %v273_v22 = vld [vmem:[#allocation2 + $0x590] sm:$0xff]  ;;  %v307_v7 = vld [vmem:[#allocation2 + $0x6a0] sm:$0xff]  ;;  %v326_v26 = vld [vmem:[#allocation2 + $0x738] sm:$0xff] }
  0x5a   :  { %621 = vmatprep.mubr.f32.mxu1 %v84_v62  ;;  %444 = vmatmul.mubr.f32.gmra.mrb[2].mxu0 %v83_v63  ;;  %v3470_v32 = vpack.c.bf16 %v277_v25, %v273_v22  ;;  %v301_v62 = vld [vmem:[#allocation2 + $0x670] sm:$0xff]  ;;  %v322_v25 = vld [vmem:[#allocation2 + $0x718] sm:$0xff]  ;;  %v332_v36 = vld [vmem:[#allocation2 + $0x768] sm:$0xff] }
  0x5b   :  { %3323 = vmatpush1.bf16.msra.mxu0 %v3322_v28  ;;  %622 = vmatmul.mubr.f32.gmra.mrb[2].mxu1 %v83_v63  ;;  %v282_v28 = vld [vmem:[#allocation2 + $0x5d8] sm:$0xff]  ;;  %v304_v63 = vld [vmem:[#allocation2 + $0x688] sm:$0xff]  ;;  %v317_v22 = vld [vmem:[#allocation2 + $0x6f0] sm:$0xff] }
  0x5c   :  { %3451 = vmatpush1.bf16.msra.mxu1 %v3450_v29  ;;  %3325 = vmatprep.subr.bf16.mxu0 %v3324_v30  ;;  %v286_v29 = vld [vmem:[#allocation2 + $0x5f8] sm:$0xff]  ;;  %v3342_v30 = vpack.c.bf16 %v275_v21, %v271_v17  ;;  %v3360_v17 = vpack.c.bf16 %v316_v12, %v312_v11  ;;  %v3488_v21 = vpack.c.bf16 %v318_v14, %v314_v13  ;;  %v335_v54 = vld [vmem:[#allocation2 + $0x780] sm:$0xff]  ;;  %v341_v58 = vld [vmem:[#allocation2 + $0x7b0] sm:$0xff] }
  0x5d   :  { %3453 = vmatprep.subr.bf16.mxu1 %v3452_v34  ;;  %449 = vmatprep.mubr.f32.mxu0 %v88_v8  ;;  %v279_v34 = vld [vmem:[#allocation2 + $0x5c0] sm:$0xff]  ;;  %v3472_v37 = vpack.c.bf16 %v286_v29, %v282_v28  ;;  %v334_v38 = vld [vmem:[#allocation2 + $0x778] sm:$0xff]  ;;  %v344_v59 = vld [vmem:[#allocation2 + $0x7c8] sm:$0xff] }
  0x5e   :  { %627 = vmatprep.mubr.f32.mxu1 %v88_v8  ;;  %450 = vmatmul.mubr.f32.gmra.mrb[4].mxu0 %v87_v9  ;;  %v3346_v43 = vpack.c.bf16 %v283_v35, %v279_v34  ;;  %v305_v8 = vld [vmem:[#allocation2 + $0x690] sm:$0xff]  ;;  %v328_v35 = vld [vmem:[#allocation2 + $0x748] sm:$0xff]  ;;  %v90_v12 = vld [vmem:[%s6234_s0 + $0x58] sm:$0xff] }
  0x5f   :  { %3327 = vmatpush1.bf16.msra.mxu0 %v3326_v40  ;;  %628 = vmatmul.mubr.f32.gmra.mrb[4].mxu1 %v87_v9  ;;  %v292_v40 = vld [vmem:[#allocation2 + $0x628] sm:$0xff]  ;;  %v325_v34 = vld [vmem:[#allocation2 + $0x730] sm:$0xff]  ;;  %v94_v14 = vld [vmem:[%s6234_s0 + $0x78] sm:$0xff] }
  0x60   :  { %3455 = vmatpush1.bf16.msra.mxu1 %v3454_v41  ;;  %3329 = vmatprep.subr.bf16.mxu0 %v3328_v42  ;;  %v290_v41 = vld [vmem:[#allocation2 + $0x618] sm:$0xff]  ;;  %v3348_v45 = vpack.c.bf16 %v292_v40, %v288_v39  ;;  %v85_v11 = vld [vmem:[%s6234_s0 + $0x30] sm:$0xff] }
  0x61   :  { %3457 = vmatprep.subr.bf16.mxu1 %v3456_v46  ;;  %455 = vmatprep.mubr.f32.mxu0 %v92_v18  ;;  %v294_v42 = vld [vmem:[#allocation2 + $0x638] sm:$0xff]  ;;  %v287_v46 = vld [vmem:[#allocation2 + $0x600] sm:$0xff]  ;;  %v89_v13 = vld [vmem:[%s6234_s0 + $0x50] sm:$0xff] }
  0x62   :  { %633 = vmatprep.mubr.f32.mxu1 %v92_v18  ;;  %456 = vmatmul.mubr.f32.gmra.mrb[6].mxu0 %v91_v23  ;;  %v3476_v49 = vpack.c.bf16 %v294_v42, %v290_v41  ;;  %v311_v18 = vld [vmem:[#allocation2 + $0x6c0] sm:$0xff]  ;;  %v3368_v41 = vpack.c.bf16 %v332_v36, %v328_v35  ;;  %v66_v35 = vld [vmem:[%s6239_s5 + $0xb8] sm:$0xff] }
  0x63   :  { %3331 = vmatpush1.bf16.msra.mxu0 %v3330_v52  ;;  %634 = vmatmul.mubr.f32.gmra.mrb[6].mxu1 %v91_v23  ;;  %v300_v52 = vld [vmem:[#allocation2 + $0x668] sm:$0xff]  ;;  %v327_v42 = vld [vmem:[#allocation2 + $0x740] sm:$0xff] }
  0x64   :  { %3459 = vmatpush1.bf16.msra.mxu1 %v3458_v55  ;;  %3333 = vmatprep.subr.bf16.mxu0 %v3332_v56  ;;  %v3350_v55 = vpack.c.bf16 %v291_v47, %v287_v46  ;;  %v3478_v56 = vpack.c.bf16 %v293_v50, %v289_v48  ;;  %v3352_v57 = vpack.c.bf16 %v300_v52, %v296_v51  ;;  %v320_v23 = vld [vmem:[#allocation2 + $0x708] sm:$0xff]  ;;  %v333_v46 = vld [vmem:[#allocation2 + $0x770] sm:$0xff]  ;;  %v342_v50 = vld [vmem:[#allocation2 + $0x7b8] sm:$0xff] }
  0x65   :  { %3461 = vmatprep.subr.bf16.mxu1 %v3460_v60  ;;  %526 = vmatprep.mubr.f32.mxu0 %v82_v31  ;;  %v297_v60 = vld [vmem:[#allocation2 + $0x650] sm:$0xff]  ;;  %v336_v47 = vld [vmem:[#allocation2 + $0x788] sm:$0xff] }
  0x66   :  { %704 = vmatprep.mubr.f32.mxu1 %v82_v31  ;;  %v3482_v4 = vpack.c.bf16 %v301_v62, %v297_v60  ;;  %v323_v31 = vld [vmem:[#allocation2 + $0x720] sm:$0xff]  ;;  %v340_v48 = vld [vmem:[#allocation2 + $0x7a8] sm:$0xff]  ;;  %v350_v62 = vld [vmem:[#allocation2 + $0x7f8] sm:$0xff] }
  0x67   :  { %3335 = vmatpush1.bf16.msra.mxu0 %v3334_v2  ;;  %v310_v2 = vld [vmem:[#allocation2 + $0x6b8] sm:$0xff]  ;;  %v3372_v53 = vpack.c.bf16 %v340_v48, %v336_v47  ;;  %v348_v60 = vld [vmem:[#allocation2 + $0x7e8] sm:$0xff] }
  0x68   :  { %3463 = vmatpush1.bf16.msra.mxu1 %v3462_v5  ;;  %3337 = vmatprep.subr.bf16.mxu0 %v3336_v6  ;;  %v3356_v5 = vpack.c.bf16 %v308_v0, %v304_v63  ;;  %v303_v6 = vld [vmem:[#allocation2 + $0x680] sm:$0xff]  ;;  %v3484_v9 = vpack.c.bf16 %v310_v2, %v306_v1  ;;  %v3376_v1 = vpack.c.bf16 %v348_v60, %v344_v59 }
  0x69   :  { %3465 = vmatprep.subr.bf16.mxu1 %v3464_v10  ;;  %v309_v10 = vld [vmem:[#allocation2 + $0x6b0] sm:$0xff]  ;;  %v3358_v15 = vpack.c.bf16 %v307_v7, %v303_v6  ;;  %v343_v2 = vld [vmem:[#allocation2 + $0x7c0] sm:$0xff] }
  0x6a   :  { %v349_v6 = vld [vmem:[#allocation2 + $0x7f0] sm:$0xff] }
  0x6b   :  { %3339 = vmatpush1.bf16.msra.mxu0 %v3338_v16  ;;  %v3486_v16 = vpack.c.bf16 %v309_v10, %v305_v8  ;;  %v86_v10 = vld [vmem:[%s6234_s0 + $0x38] sm:$0xff] }
  0x6c   :  { %3467 = vmatpush1.bf16.msra.mxu1 %v3466_v19  ;;  %3341 = vmatprep.subr.bf16.mxu0 %v3340_v20  ;;  %v315_v19 = vld [vmem:[#allocation2 + $0x6e0] sm:$0xff]  ;;  %v313_v20 = vld [vmem:[#allocation2 + $0x6d0] sm:$0xff] }
  0x6d   :  { %3469 = vmatprep.subr.bf16.mxu1 %v3468_v24  ;;  %v324_v24 = vld [vmem:[#allocation2 + $0x728] sm:$0xff]  ;;  %v3362_v27 = vpack.c.bf16 %v315_v19, %v311_v18  ;;  %v3490_v28 = vpack.c.bf16 %v317_v22, %v313_v20  ;;  %v43_v19 = vld [vmem:[%s6239_s5] sm:$0xff]  ;;  %v61_v22 = vld [vmem:[%s6239_s5 + $0x90] sm:$0xff] }
  0x6e   :  { %v3364_v29 = vpack.c.bf16 %v324_v24, %v320_v23  ;;  %v44_v20 = vld [vmem:[%s6239_s5 + $0x8] sm:$0xff]  ;;  %v62_v23 = vld [vmem:[%s6239_s5 + $0x98] sm:$0xff] }
  0x6f   :  { %3343 = vmatpush1.bf16.msra.mxu0 %v3342_v30  ;;  %v319_v30 = vld [vmem:[#allocation2 + $0x700] sm:$0xff]  ;;  %v4347_v24 = vpack.c.bf16 %v62_v23, %v61_v22 }
  0x70   :  { %3471 = vmatpush1.bf16.msra.mxu1 %v3470_v32  ;;  %3345 = vmatprep.subr.bf16.mxu0 %v3344_v33  ;;  %v321_v32 = vld [vmem:[#allocation2 + $0x710] sm:$0xff]  ;;  %v3492_v33 = vpack.c.bf16 %v326_v26, %v322_v25  ;;  %v3366_v39 = vpack.c.bf16 %v323_v31, %v319_v30  ;;  %v46_v26 = vld [vmem:[%s6239_s5 + $0x18] sm:$0xff]  ;;  %v47_v31 = vld [vmem:[%s6239_s5 + $0x20] sm:$0xff] }
  0x71   :  { %3473 = vmatprep.subr.bf16.mxu1 %v3472_v37  ;;  %v330_v37 = vld [vmem:[#allocation2 + $0x758] sm:$0xff]  ;;  %v3494_v40 = vpack.c.bf16 %v325_v34, %v321_v32  ;;  %v45_v25 = vld [vmem:[%s6239_s5 + $0x10] sm:$0xff]  ;;  %v48_v32 = vld [vmem:[%s6239_s5 + $0x28] sm:$0xff] }
  0x72   :  { %v65_v34 = vld [vmem:[%s6239_s5 + $0xb0] sm:$0xff] }
  0x73   :  { %3347 = vmatpush1.bf16.msra.mxu0 %v3346_v43  ;;  %v331_v43 = vld [vmem:[#allocation2 + $0x760] sm:$0xff]  ;;  %v4387_v36 = vpack.c.bf16 %v66_v35, %v65_v34 }
  0x74   :  { %3475 = vmatpush1.bf16.msra.mxu1 %v3474_v44  ;;  %3349 = vmatprep.subr.bf16.mxu0 %v3348_v45  ;;  %v329_v44 = vld [vmem:[#allocation2 + $0x750] sm:$0xff]  ;;  %v3496_v45 = vpack.c.bf16 %v334_v38, %v330_v37  ;;  %v3370_v51 = vpack.c.bf16 %v331_v43, %v327_v42  ;;  %v50_v38 = vld [vmem:[%s6239_s5 + $0x38] sm:$0xff]  ;;  %v51_v42 = vld [vmem:[%s6239_s5 + $0x40] sm:$0xff] }
  0x75   :  { %3477 = vmatprep.subr.bf16.mxu1 %v3476_v49  ;;  %v338_v49 = vld [vmem:[#allocation2 + $0x798] sm:$0xff]  ;;  %v3498_v52 = vpack.c.bf16 %v333_v46, %v329_v44  ;;  %v49_v37 = vld [vmem:[%s6239_s5 + $0x30] sm:$0xff]  ;;  %v52_v44 = vld [vmem:[%s6239_s5 + $0x48] sm:$0xff] }
  0x76   :  { %v70_v46 = vld [vmem:[%s6239_s5 + $0xd8] sm:$0xff]  ;;  %v4421_v47 = vpack.c.bf16 %v52_v44, %v51_v42 }
  0x77   :  { %3351 = vmatpush1.bf16.msra.mxu0 %v3350_v55  ;;  %v339_v55 = vld [vmem:[#allocation2 + $0x7a0] sm:$0xff] }
  0x78   :  { %3479 = vmatpush1.bf16.msra.mxu1 %v3478_v56  ;;  %3353 = vmatprep.subr.bf16.mxu0 %v3352_v57  ;;  %v337_v56 = vld [vmem:[#allocation2 + $0x790] sm:$0xff]  ;;  %v3500_v57 = vpack.c.bf16 %v342_v50, %v338_v49  ;;  %v3374_v63 = vpack.c.bf16 %v339_v55, %v335_v54  ;;  %v54_v50 = vld [vmem:[%s6239_s5 + $0x58] sm:$0xff]  ;;  %v55_v55 = vld [vmem:[%s6239_s5 + $0x60] sm:$0xff] }
  0x79   :  { %3481 = vmatprep.subr.bf16.mxu1 %v3480_v61  ;;  %v346_v61 = vld [vmem:[#allocation2 + $0x7d8] sm:$0xff]  ;;  %v3502_v0 = vpack.c.bf16 %v341_v58, %v337_v56  ;;  %v53_v49 = vld [vmem:[%s6239_s5 + $0x50] sm:$0xff]  ;;  %v56_v56 = vld [vmem:[%s6239_s5 + $0x68] sm:$0xff] }
  0x7a   :  { %v74_v58 = vld [vmem:[%s6239_s5 + $0xf8] sm:$0xff]  ;;  %v4461_v59 = vpack.c.bf16 %v56_v56, %v55_v55 }
  0x7b   :  { %3355 = vmatpush1.bf16.msra.mxu0 %v3354_v3  ;;  %v347_v3 = vld [vmem:[#allocation2 + $0x7e0] sm:$0xff] }
  0x7c   :  { %3483 = vmatpush1.bf16.msra.mxu1 %v3482_v4  ;;  %3357 = vmatprep.subr.bf16.mxu0 %v3356_v5  ;;  %v3504_v4 = vpack.c.bf16 %v350_v62, %v346_v61  ;;  %v345_v5 = vld [vmem:[#allocation2 + $0x7d0] sm:$0xff]  ;;  %v3378_v7 = vpack.c.bf16 %v347_v3, %v343_v2  ;;  %v58_v62 = vld [vmem:[%s6239_s5 + $0x78] sm:$0xff] }
  0x7d   :  { %3485 = vmatprep.subr.bf16.mxu1 %v3484_v9  ;;  %v3506_v8 = vpack.c.bf16 %v349_v6, %v345_v5  ;;  %v81_v9 = vld [vmem:[%s6234_s0 + $0x10] sm:$0xff] }
  0x7e   :  { %v57_v61 = vld [vmem:[%s6239_s5 + $0x70] sm:$0xff] }
  0x7f   :  { %3359 = vmatpush1.bf16.msra.mxu0 %v3358_v15  ;;  %v93_v15 = vld [vmem:[%s6234_s0 + $0x70] sm:$0xff] }
  0x80   :  { %3487 = vmatpush1.bf16.msra.mxu1 %v3486_v16  ;;  %3361 = vmatprep.subr.bf16.mxu0 %v3360_v17  ;;  %v59_v16 = vld [vmem:[%s6239_s5 + $0x80] sm:$0xff]  ;;  %v60_v17 = vld [vmem:[%s6239_s5 + $0x88] sm:$0xff] }
  0x81   :  { %3489 = vmatprep.subr.bf16.mxu1 %v3488_v21  ;;  %v4327_v18 = vpack.c.bf16 %v60_v17, %v59_v16  ;;  %v4335_v21 = vpack.c.bf16 %v44_v20, %v43_v19 }
  0x83   :  { %3363 = vmatpush1.bf16.msra.mxu0 %v3362_v27  ;;  %v4355_v27 = vpack.c.bf16 %v46_v26, %v45_v25 }
  0x84   :  { %3491 = vmatpush1.bf16.msra.mxu1 %v3490_v28  ;;  %3365 = vmatprep.subr.bf16.mxu0 %v3364_v29  ;;  %v63_v28 = vld [vmem:[%s6239_s5 + $0xa0] sm:$0xff]  ;;  %v64_v29 = vld [vmem:[%s6239_s5 + $0xa8] sm:$0xff] }
  0x85   :  { %3493 = vmatprep.subr.bf16.mxu1 %v3492_v33  ;;  %v4367_v30 = vpack.c.bf16 %v64_v29, %v63_v28  ;;  %v4375_v33 = vpack.c.bf16 %v48_v32, %v47_v31 }
  0x87   :  { %3367 = vmatpush1.bf16.msra.mxu0 %v3366_v39  ;;  %v4395_v39 = vpack.c.bf16 %v50_v38, %v49_v37 }
  0x88   :  { %3495 = vmatpush1.bf16.msra.mxu1 %v3494_v40  ;;  %3369 = vmatprep.subr.bf16.mxu0 %v3368_v41  ;;  %v67_v40 = vld [vmem:[%s6239_s5 + $0xc0] sm:$0xff]  ;;  %v68_v41 = vld [vmem:[%s6239_s5 + $0xc8] sm:$0xff] }
  0x89   :  { %3497 = vmatprep.subr.bf16.mxu1 %v3496_v45  ;;  %v4408_v43 = vpack.c.bf16 %v68_v41, %v67_v40  ;;  %v69_v45 = vld [vmem:[%s6239_s5 + $0xd0] sm:$0xff] }
  0x8a   :  { %v4425_v48 = vpack.c.bf16 %v70_v46, %v69_v45 }
  0x8b   :  { %3371 = vmatpush1.bf16.msra.mxu0 %v3370_v51  ;;  %v71_v51 = vld [vmem:[%s6239_s5 + $0xe0] sm:$0xff] }
  0x8c   :  { %3499 = vmatpush1.bf16.msra.mxu1 %v3498_v52  ;;  %3373 = vmatprep.subr.bf16.mxu0 %v3372_v53  ;;  %v72_v52 = vld [vmem:[%s6239_s5 + $0xe8] sm:$0xff]  ;;  %v4441_v53 = vpack.c.bf16 %v54_v50, %v53_v49 }
  0x8d   :  { %3501 = vmatprep.subr.bf16.mxu1 %v3500_v57  ;;  %v4445_v54 = vpack.c.bf16 %v72_v52, %v71_v51  ;;  %v73_v57 = vld [vmem:[%s6239_s5 + $0xf0] sm:$0xff] }
  0x8e   :  { %v4465_v60 = vpack.c.bf16 %v74_v58, %v73_v57 }
  0x8f   :  { %3375 = vmatpush1.bf16.msra.mxu0 %v3374_v63  ;;  %v4475_v63 = vpack.c.bf16 %v58_v62, %v57_v61 }
  0x90   :  { %3503 = vmatpush1.bf16.msra.mxu1 %v3502_v0  ;;  %3377 = vmatprep.subr.bf16.mxu0 %v3376_v1  ;;  %v353_v0 = vlaneseq }
  0x91   :  { %3505 = vmatprep.subr.bf16.mxu1 %v3504_v4  ;;  %v351_v4 = vld [vmem:[%s6236_s2] sm:$0xf] }
  0x92   :  { %v4481_v1 = vshrl.u32 %v353_v0, 7 }
  0x93   :  { %3379 = vmatpush1.bf16.msra.mxu0 %v3378_v7 }
  0x94   :  { %3507 = vmatpush1.bf16.msra.mxu1 %v3506_v8  ;;  %3509 = vmatprep.subr.bf16.mxu0 %v4327_v18  ;;  %v4484_v2 = vsub.s32 0, %v4481_v1  ;;  %v363_v3 = vsub.s32 2, %v4481_v1  ;;  %v367_v5 = vsub.s32 3, %v4481_v1  ;;  %v359_v8 = vsub.s32 1, %v4481_v1 }
  0x95   :  { %3541 = vmatprep.subr.bf16.mxu1 %v4327_v18 }
  0x96   :  { %527 = vmatmul.mubr.f32.vlgmr.msra.gmra.mrb[0].mxu0 %v81_v9  ;;  %v4492_v6 = vrot.slane %v351_v4, %v4484_v2  ;;  %v4496_v7 = vrot.slane %v351_v4, %v363_v3 }
  0x97   :  { %705 = vmatmul.mubr.f32.vlgmr.msra.gmra.mrb[0].mxu1 %v81_v9  ;;  %532 = vmatprep.mubr.f32.mxu0 %v86_v10 }
  0x98   :  { %710 = vmatprep.mubr.f32.mxu1 %v86_v10  ;;  %3511 = vmatpush3.bf16.msra.mxu0 %v4335_v21 }
  0x99   :  { %3543 = vmatpush3.bf16.msra.mxu1 %v4335_v21  ;;  %3513 = vmatprep.subr.bf16.mxu0 %v4347_v24 }
  0x9a   :  { %533 = vmatmul.mubr.f32.gmra.mrb[2].mxu0 %v85_v11  ;;  %3545 = vmatprep.subr.bf16.mxu1 %v4347_v24 }
  0x9b   :  { %711 = vmatmul.mubr.f32.gmra.mrb[2].mxu1 %v85_v11  ;;  %538 = vmatprep.mubr.f32.mxu0 %v90_v12 }
  0x9c   :  { %716 = vmatprep.mubr.f32.mxu1 %v90_v12  ;;  %3515 = vmatpush3.bf16.msra.mxu0 %v4355_v27  ;;  %v4501_v12 = vrot.slane %v351_v4, %v367_v5 }
  0x9d   :  { %3547 = vmatpush3.bf16.msra.mxu1 %v4355_v27  ;;  %3517 = vmatprep.subr.bf16.mxu0 %v4367_v30 }
  0x9e   :  { %539 = vmatmul.mubr.f32.gmra.mrb[4].mxu0 %v89_v13  ;;  %3549 = vmatprep.subr.bf16.mxu1 %v4367_v30 }
  0x9f   :  { %717 = vmatmul.mubr.f32.gmra.mrb[4].mxu1 %v89_v13  ;;  %544 = vmatprep.mubr.f32.mxu0 %v94_v14 }
  0xa0   :  { %722 = vmatprep.mubr.f32.mxu1 %v94_v14  ;;  %3519 = vmatpush3.bf16.msra.mxu0 %v4375_v33 }
  0xa1   :  { %3551 = vmatpush3.bf16.msra.mxu1 %v4375_v33  ;;  %3521 = vmatprep.subr.bf16.mxu0 %v4387_v36 }
  0xa2   :  { %545 = vmatmul.mubr.f32.gmra.mrb[6].mxu0 %v93_v15  ;;  %3553 = vmatprep.subr.bf16.mxu1 %v4387_v36 }
  0xa3   :  { %723 = vmatmul.mubr.f32.gmra.mrb[6].mxu1 %v93_v15  ;;  %v4509_v15 = vrot.slane %v351_v4, %v359_v8 }
  0xa4   :  { %3523 = vmatpush3.bf16.msra.mxu0 %v4395_v39 }
  0xa5   :  { %3555 = vmatpush3.bf16.msra.mxu1 %v4395_v39  ;;  %3525 = vmatprep.subr.bf16.mxu0 %v4408_v43 }
  0xa6   :  { %3557 = vmatprep.subr.bf16.mxu1 %v4408_v43 }
  0xa8   :  { %3527 = vmatpush3.bf16.msra.mxu0 %v4421_v47 }
  0xa9   :  { %3559 = vmatpush3.bf16.msra.mxu1 %v4421_v47  ;;  %3529 = vmatprep.subr.bf16.mxu0 %v4425_v48 }
  0xaa   :  { %3561 = vmatprep.subr.bf16.mxu1 %v4425_v48 }
  0xac   :  { %3531 = vmatpush3.bf16.msra.mxu0 %v4441_v53 }
  0xad   :  { %3563 = vmatpush3.bf16.msra.mxu1 %v4441_v53  ;;  %3533 = vmatprep.subr.bf16.mxu0 %v4445_v54 }
  0xae   :  { %3565 = vmatprep.subr.bf16.mxu1 %v4445_v54 }
  0xb0   :  { %3535 = vmatpush3.bf16.msra.mxu0 %v4461_v59 }
  0xb1   :  { %3567 = vmatpush3.bf16.msra.mxu1 %v4461_v59  ;;  %3537 = vmatprep.subr.bf16.mxu0 %v4465_v60 }
  0xb2   :  { %3569 = vmatprep.subr.bf16.mxu1 %v4465_v60 }
  0xb4   :  { %3539 = vmatpush3.bf16.msra.mxu0 %v4475_v63 }
  0xb5   :  { %3571 = vmatpush3.bf16.msra.mxu1 %v4475_v63 }
 0x169   :  { %v528_v9 = vpop.f32.mrb[0].mxu0 }
 0x16a   :  { %v706_v10 = vpop.f32.mrb[0].mxu1  ;;  %v530_v11 = vpop.f32.mrb[1].mxu0  ;;  %v4504_v13 = vadd.f32 %v528_v9, %v4492_v6 }
 0x16b   :  { %v4044_v14 = vadd.f32 %v706_v10, %v4496_v7  ;;  %v708_v16 = vpop.f32.mrb[1].mxu1  ;;  %v4514_v26 = vadd.f32 %v530_v11, %v4509_v15 }
 0x16c   :  { %v4045_v19 = vadd.f32 %v708_v16, %v4501_v12  ;;  %v794_v23 = vmul.f32 1.442695, %v4504_v13  ;;  %v738_v35 = vmul.f32 0.33333334, %v4504_v13  ;;  %v729_v58 = vmul.f32 0.5, %v4504_v13 }
 0x16d   :  { %v842_v17 = vsub.f32 0.0, %v4044_v14  ;;  %v534_v20 = vpop.f32.mrb[2].mxu0  ;;  %v796_v40 = vmul.f32 1.442695, %v4514_v26  ;;  %v739_v50 = vmul.f32 0.33333334, %v4514_v26 }
 0x16e   :  { %v712_v22 = vpop.f32.mrb[2].mxu1  ;;  %v843_v28 = vsub.f32 0.0, %v4045_v19  ;;  %v536_v29 = vpop.f32.mrb[3].mxu0  ;;  %v4520_v41 = vadd.f32 %v534_v20, %v4492_v6  ;;  %v746_v49 = vadd.f32 1.0, %v738_v35  ;;  %v730_v20 = vmul.f32 0.5, %v4514_v26 }
 0x16f   :  { %v850_v25 = vmul.f32 1.442695, %v842_v17  ;;  %v714_v31 = vpop.f32.mrb[3].mxu1  ;;  %v4046_v32 = vadd.f32 %v712_v22, %v4496_v7  ;;  %v4532_v57 = vadd.f32 %v536_v29, %v4509_v15  ;;  %v747_v9 = vadd.f32 1.0, %v739_v50 }
 0x170   :  { %v852_v37 = vmul.f32 1.442695, %v843_v28  ;;  %v4047_v51 = vadd.f32 %v714_v31, %v4501_v12  ;;  %v798_v55 = vmul.f32 1.442695, %v4520_v41  ;;  %v754_v4 = vmul.f32 %v746_v49, %v729_v58 }
 0x171   :  { %4104 = vpow2.f32 %v850_v25  ;;  %v540_v34 = vpop.f32.mrb[4].mxu0  ;;  %v844_v45 = vsub.f32 0.0, %v4046_v32  ;;  %v740_v14 = vmul.f32 0.33333334, %v4520_v41  ;;  %v800_v16 = vmul.f32 1.442695, %v4532_v57 }
 0x172   :  { %v718_v38 = vpop.f32.mrb[4].mxu1  ;;  %4106 = vpow2.f32 %v794_v23  ;;  %v4522_v42 = vpop.f32.mrb[5].mxu0  ;;  %v845_v61 = vsub.f32 0.0, %v4047_v51  ;;  %v778_v17 = vand.u32 2147483647, %v4504_v13  ;;  %v762_v28 = vadd.f32 1.0, %v754_v4 }
 0x173   :  { %4108 = vpow2.f32 %v852_v37  ;;  %v720_v44 = vpop.f32.mrb[5].mxu1  ;;  %v854_v56 = vmul.f32 1.442695, %v844_v45  ;;  %v4048_v23 = vadd.f32 %v718_v38, %v4496_v7  ;;  %v755_v29 = vmul.f32 %v747_v9, %v730_v20 }
 0x174   :  { %4110 = vpow2.f32 %v796_v40  ;;  %v856_v10 = vmul.f32 1.442695, %v845_v61  ;;  %v741_v31 = vmul.f32 0.33333334, %v4532_v57  ;;  %v748_v35 = vadd.f32 1.0, %v740_v14 }
 0x175   :  { %v4524_v46 = vpop.f32.mrb[6].mxu0  ;;  %4112 = vpow2.f32 %v854_v56  ;;  %v4546_v37 = vadd.f32 %v540_v34, %v4492_v6  ;;  %vm4548_vm0 = vcmp.lt.f32.partialorder %v778_v17, 0.01  ;;  %vm826_vm1 = vcmp.gt.f32.partialorder %v4504_v13, 0.0 }
 0x176   :  { %v4528_v52 = vpop.f32.mrb[6].mxu1  ;;  %v4535_v62 = vpop.f32.mrb[7].mxu0  ;;  %4114 = vpow2.f32 %v798_v55  ;;  %v779_v38 = vand.u32 2147483647, %v4514_v26  ;;  %v846_v45 = vsub.f32 0.0, %v4048_v23  ;;  %v731_v51 = vmul.f32 0.5, %v4520_v41 }
 0x177   :  { %v4537_v0 = vpop.f32.mrb[7].mxu1  ;;  %4116 = vpow2.f32 %v856_v10  ;;  %v4049_v55 = vadd.f32 %v720_v44, %v4501_v12  ;;  %v763_v56 = vadd.f32 1.0, %v755_v29  ;;  %vm827_vm2 = vcmp.gt.f32.partialorder %v4514_v26, 0.0 }
 0x178   :  { %v749_v34 = vadd.f32 1.0, %v741_v31  ;;  %v858_v58 = vmul.f32 1.442695, %v846_v45  ;;  %v770_v4 = vmul.f32 %v4504_v13, %v762_v28  ;;  %v756_v9 = vmul.f32 %v748_v35, %v731_v51 }
 0x179   :  { %v780_v10 = vand.u32 2147483647, %v4520_v41  ;;  %v732_v17 = vmul.f32 0.5, %v4532_v57  ;;  %vm4563_vm3 = vcmp.lt.f32.partialorder %v779_v38, 0.01  ;;  %v847_v23 = vsub.f32 0.0, %v4049_v55 }
 0x17a   :  { %v771_v28 = vmul.f32 %v4514_v26, %v763_v56  ;;  %v742_v31 = vmul.f32 0.33333334, %v4546_v37  ;;  %vm828_vm4 = vcmp.gt.f32.partialorder %v4520_v41, 0.0  ;;  %vm829_vm7 = vcmp.gt.f32.partialorder %v4532_v57, 0.0 }
 0x17b   :  { %v4105_v11 = vpop.eup %4104  ;;  %v757_v29 = vmul.f32 %v749_v34, %v732_v17  ;;  %v860_v40 = vmul.f32 1.442695, %v847_v23  ;;  %vm4579_vm5 = vcmp.lt.f32.partialorder %v780_v10, 0.01  ;;  %vm830_vm9 = vcmp.gt.f32.partialorder %v4546_v37, 0.0 }
 0x17c   :  { %v866_v19 = vadd.f32 1.0, %v4105_v11  ;;  %v4107_v22 = vpop.eup %4106  ;;  %v802_v11 = vmul.f32 1.442695, %v4546_v37 }
 0x17d   :  { %v4109_v25 = vpop.eup %4108  ;;  %v2828_v50 = vadd.f32 -1.0, %v4107_v22  ;;  %v4569_v22 = vadd.f32 %v4522_v42, %v4509_v15 }
 0x17e   :  { %4118 = vrcp.f32 %v866_v19  ;;  %v867_v32 = vadd.f32 1.0, %v4109_v25  ;;  %v4111_v49 = vpop.eup %4110 }
 0x17f   :  { %4120 = vpow2.f32 %v800_v16  ;;  %v4113_v61 = vpop.eup %4112  ;;  %v2829_v14 = vadd.f32 -1.0, %v4111_v49  ;;  %v818_v44 = vsel %vm4548_vm0, %v770_v4, %v2828_v50  ;;  %v4050_v50 = vadd.f32 %v4528_v52, %v4496_v7 }
 0x180   :  { %4122 = vrcp.f32 %v867_v32  ;;  %v868_v16 = vadd.f32 1.0, %v4113_v61  ;;  %v4115_v19 = vpop.eup %4114  ;;  %v764_v32 = vadd.f32 1.0, %v756_v9  ;;  %v834_v42 = vsel %vm826_vm1, %v4504_v13, %v818_v44 }
 0x181   :  { %4124 = vpow2.f32 %v858_v58  ;;  %v4117_v25 = vpop.eup %4116  ;;  %v819_v45 = vsel %vm4563_vm3, %v771_v28, %v2829_v14  ;;  %v2830_v56 = vadd.f32 -1.0, %v4115_v19  ;;  %v804_v34 = vmul.f32 1.442695, %v4569_v22 }
 0x182   :  { %4126 = vrcp.f32 %v868_v16  ;;  %v869_v35 = vadd.f32 1.0, %v4117_v25  ;;  %v765_v58 = vadd.f32 1.0, %v757_v29  ;;  %v750_v61 = vadd.f32 1.0, %v742_v31 }
 0x183   :  { %4128 = vpow2.f32 %v802_v11  ;;  %v4590_v13 = vadd.f32 %v4524_v46, %v4492_v6  ;;  %v835_v9 = vsel %vm827_vm2, %v4514_v26, %v819_v45  ;;  %v772_v7 = vmul.f32 %v4520_v41, %v764_v32 }
 0x184   :  { %4130 = vrcp.f32 %v869_v35  ;;  %v781_v52 = vand.u32 2147483647, %v4532_v57  ;;  %v848_v10 = vsub.f32 0.0, %v4050_v50  ;;  %v733_v16 = vmul.f32 0.5, %v4546_v37 }
 0x185   :  { %4132 = vpow2.f32 %v860_v40  ;;  %v743_v17 = vmul.f32 0.33333334, %v4569_v22  ;;  %v820_v6 = vsel %vm4579_vm5, %v772_v7, %v2830_v56  ;;  %v4051_v26 = vadd.f32 %v4537_v0, %v4501_v12 }
 0x186   :  { %4134 = vpow2.f32 %v804_v34  ;;  %v862_v46 = vmul.f32 1.442695, %v848_v10  ;;  %v773_v44 = vmul.f32 %v4532_v57, %v765_v58  ;;  %v758_v20 = vmul.f32 %v750_v61, %v733_v16 }
 0x187   :  { %v806_v23 = vmul.f32 1.442695, %v4590_v13  ;;  %v4609_v25 = vadd.f32 %v4535_v62, %v4509_v15  ;;  %vm4611_vm6 = vcmp.lt.f32.partialorder %v781_v52, 0.01  ;;  %v849_v31 = vsub.f32 0.0, %v4051_v26 }
 0x188   :  { %v4119_v38 = vpop.eup %4118  ;;  %4136 = vpow2.f32 %v862_v46  ;;  %v836_v12 = vsel %vm828_vm4, %v4520_v41, %v820_v6  ;;  %v751_v35 = vadd.f32 1.0, %v743_v17  ;;  %v744_v40 = vmul.f32 0.33333334, %v4590_v13 }
 0x189   :  { %v4121_v51 = vpop.eup %4120  ;;  %v4585_v55 = vmul.f32 %v4119_v38, %v834_v42  ;;  %v864_v38 = vmul.f32 1.442695, %v849_v31  ;;  %v766_v42 = vadd.f32 1.0, %v758_v20  ;;  %v734_v45 = vmul.f32 0.5, %v4569_v22 }
 0x18a   :  { %v4123_v4 = vpop.eup %4122  ;;  %v2831_v14 = vadd.f32 -1.0, %v4121_v51  ;;  %v808_v49 = vmul.f32 1.442695, %v4609_v25  ;;  %v782_v51 = vand.u32 2147483647, %v4546_v37  ;;  %v736_v28 = vmul.f32 0.5, %v4609_v25 }
 0x18b   :  { %v4597_v11 = vmul.f32 %v4123_v4, %v835_v9  ;;  %v4125_v19 = vpop.eup %4124  ;;  %v759_v61 = vmul.f32 %v751_v35, %v734_v45  ;;  %v752_v9 = vadd.f32 1.0, %v744_v40  ;;  %v745_v7 = vmul.f32 0.33333334, %v4609_v25 }
 0x18c   :  { %v870_v29 = vadd.f32 1.0, %v4125_v19  ;;  %v4127_v32 = vpop.eup %4126  ;;  %v821_v0 = vsel %vm4611_vm6, %v773_v44, %v2831_v14  ;;  %v774_v52 = vmul.f32 %v4546_v37, %v766_v42  ;;  %vm790_vm8 = vcmp.lt.f32.partialorder %v782_v51, 0.01 }
 0x18d   :  { %v4129_v15 = vpop.eup %4128  ;;  %v4621_v62 = vmul.f32 %v4127_v32, %v836_v12  ;;  %v837_v50 = vsel %vm829_vm7, %v4532_v57, %v821_v0  ;;  %v735_v57 = vmul.f32 0.5, %v4590_v13  ;;  %v767_v16 = vadd.f32 1.0, %v759_v61 }
 0x18e   :  { %4138 = vrcp.f32 %v870_v29  ;;  %v4131_v41 = vpop.eup %4130  ;;  %v2832_v58 = vadd.f32 -1.0, %v4129_v15  ;;  %v783_v6 = vand.u32 2147483647, %v4569_v22  ;;  %v753_v26 = vadd.f32 1.0, %v745_v7 }
 0x18f   :  { %4140 = vpow2.f32 %v806_v23  ;;  %v4133_v56 = vpop.eup %4132  ;;  %v4628_v34 = vmul.f32 %v4131_v41, %v837_v50  ;;  %v760_v46 = vmul.f32 %v752_v9, %v735_v57  ;;  %v775_v32 = vmul.f32 %v4569_v22, %v767_v16 }
 0x190   :  { %4142 = vpow2.f32 %v864_v38  ;;  %v871_v4 = vadd.f32 1.0, %v4133_v56  ;;  %v4135_v10 = vpop.eup %4134  ;;  %v822_v14 = vsel %vm790_vm8, %v774_v52, %v2832_v58  ;;  %vm791_vm10 = vcmp.lt.f32.partialorder %v783_v6, 0.01 }
 0x191   :  { %4144 = vpow2.f32 %v808_v49  ;;  %v2833_v19 = vadd.f32 -1.0, %v4135_v10  ;;  %v838_v23 = vsel %vm830_vm9, %v4546_v37, %v822_v14  ;;  %v768_v0 = vadd.f32 1.0, %v760_v46 }
 0x192   :  { %4146 = vrcp.f32 %v871_v4  ;;  %v4137_v17 = vpop.eup %4136  ;;  %v761_v35 = vmul.f32 %v753_v26, %v736_v28  ;;  %v784_v40 = vand.u32 2147483647, %v4590_v13  ;;  %vm831_vm11 = vcmp.gt.f32.partialorder %v4569_v22, 0.0 }
 0x193   :  { %v872_v44 = vadd.f32 1.0, %v4137_v17  ;;  %v823_v15 = vsel %vm791_vm10, %v775_v32, %v2833_v19  ;;  %v776_v41 = vmul.f32 %v4590_v13, %v768_v0  ;;  %v785_v56 = vand.u32 2147483647, %v4609_v25 }
 0x194   :  { %v839_v49 = vsel %vm831_vm11, %v4569_v22, %v823_v15  ;;  %v769_v50 = vadd.f32 1.0, %v761_v35  ;;  %vm792_vm12 = vcmp.lt.f32.partialorder %v784_v40, 0.01  ;;  %v912_v58 = vmul.f32 %v4621_v62, %v4621_v62 }
 0x195   :  { %4148 = vrcp.f32 %v872_v44  ;;  %vm832_vm13 = vcmp.gt.f32.partialorder %v4590_v13, 0.0  ;;  %v910_v9 = vmul.f32 %v4585_v55, %v4585_v55  ;;  %v892_v22 = vadd.f32 %v4621_v62, %v4585_v55 }
 0x196   :  { %v777_v52 = vmul.f32 %v4609_v25, %v769_v50  ;;  %vm793_vm14 = vcmp.lt.f32.partialorder %v785_v56, 0.01  ;;  %v913_v14 = vmul.f32 %v4628_v34, %v4628_v34  ;;  %vm833_vm15 = vcmp.gt.f32.partialorder %v4609_v25, 0.0 }
 0x197   :  { %v918_v46 = vadd.f32 %v912_v58, %v910_v9  ;;  %v911_v26 = vmul.f32 %v4597_v11, %v4597_v11  ;;  %vm1086_vm0 = vcmask 130048   ;;  %vm1332_vm1 = vcmask 1040384  }
 0x198   :  { %v4139_v20 = vpop.eup %4138  ;;  %vm1377_vm2 = vcmask 1046528  }
 0x199   :  { %v4141_v29 = vpop.eup %4140  ;;  %v4637_v31 = vmul.f32 %v4139_v20, %v838_v23  ;;  %v927_v32 = vadd.f32 %v913_v14, %v911_v26 }
 0x19a   :  { %v4143_v12 = vpop.eup %4142  ;;  %v2834_v42 = vadd.f32 -1.0, %v4141_v29 }
 0x19b   :  { %v873_v38 = vadd.f32 1.0, %v4143_v12  ;;  %v4145_v45 = vpop.eup %4144  ;;  %v914_v7 = vmul.f32 %v4637_v31, %v4637_v31  ;;  %v893_v6 = vadd.f32 %v892_v22, %v4637_v31 }
 0x19c   :  { %v4147_v37 = vpop.eup %4146  ;;  %v824_v61 = vsel %vm792_vm12, %v776_v41, %v2834_v42  ;;  %v2835_v4 = vadd.f32 -1.0, %v4145_v45 }
 0x19d   :  { %4150 = vrcp.f32 %v873_v38  ;;  %v4644_v51 = vmul.f32 %v4147_v37, %v839_v49  ;;  %v840_v57 = vsel %vm832_vm13, %v4590_v13, %v824_v61  ;;  %v901_v13 = vadd.f32 %v4628_v34, %v4597_v11 }
 0x19e   :  { %v825_v17 = vsel %vm793_vm14, %v777_v52, %v2835_v4  ;;  %v919_v23 = vadd.f32 %v918_v46, %v914_v7 }
 0x19f   :  { %v4149_v10 = vpop.eup %4148  ;;  %v915_v19 = vmul.f32 %v4644_v51, %v4644_v51  ;;  %v841_v29 = vsel %vm833_vm15, %v4609_v25, %v825_v17  ;;  %v902_v0 = vadd.f32 %v901_v13, %v4644_v51 }
 0x1a0   :  { %v4660_v16 = vmul.f32 %v4149_v10, %v840_v57 }
 0x1a1   :  { %v928_v40 = vadd.f32 %v927_v32, %v915_v19  ;;  %v77_v32 = vld [vmem:[%s6240_s6 + $0x10] sm:$0xff] }
 0x1a2   :  { %v894_v44 = vadd.f32 %v893_v6, %v4660_v16  ;;  %v916_v20 = vmul.f32 %v4660_v16, %v4660_v16 }
 0x1a4   :  { %v895_v35 = vrot.slane %v894_v44, 4  ;;  %v920_v15 = vadd.f32 %v919_v23, %v916_v20  ;;  %v76_v20 = vld [vmem:[%s6240_s6 + $0x8] sm:$0xff]  ;;  %v78_v23 = vld [vmem:[%s6240_s6 + $0x18] sm:$0xff] }
 0x1a6   :  { %v896_v42 = vadd.f32 %v895_v35, %v894_v44  ;;  %v921_v37 = vrot.slane %v920_v15, 4 }
 0x1a7   :  { %v4151_v28 = vpop.eup %4150 }
 0x1a8   :  { %v4674_v12 = vmul.f32 %v4151_v28, %v841_v29  ;;  %v897_v41 = vrot.slane %v896_v42, 2  ;;  %v922_v56 = vadd.f32 %v921_v37, %v920_v15  ;;  %v75_v28 = vld [vmem:[%s6240_s6] sm:$0xff]  ;;  %v4689_v29 = vpack.c.bf16 %v78_v23, %v76_v20  ;;  %v2839_v15 = vld [vmem:[%s6237_s3 + $0x408] sm:$0xff]  ;;  %v2849_v23 = vld [vmem:[%s6237_s3 + $0x458] sm:$0xff] }
 0x1a9   :  { %v4696_v35 = vpack.c.bf16 %v77_v32, %v75_v28  ;;  %v2846_v28 = vld [vmem:[%s6237_s3 + $0x440] sm:$0xff] }
 0x1aa   :  { %v903_v38 = vadd.f32 %v902_v0, %v4674_v12  ;;  %v917_v45 = vmul.f32 %v4674_v12, %v4674_v12  ;;  %v923_v61 = vrot.slane %v922_v56, 2  ;;  %v898_v4 = vadd.f32 %v897_v41, %v896_v42  ;;  %3573 = vmatprep.subr.bf16.mxu0 %v4689_v29  ;;  %3577 = vmatprep.subr.bf16.mxu1 %v4689_v29  ;;  %v2850_v32 = vld [vmem:[%s6237_s3 + $0x460] sm:$0xff] }
 0x1ab   :  { %v6243_v0 = vmov 0.0  }
 0x1ac   :  { %v904_v49 = vrot.slane %v903_v38, 4  ;;  %v929_v50 = vadd.f32 %v928_v40, %v917_v45  ;;  %v924_v7 = vadd.f32 %v923_v61, %v922_v56  ;;  %v899_v57 = vrot.slane %v898_v4, 1  ;;  %v2843_v40 = vld [vmem:[%s6237_s3 + $0x428] sm:$0xff]  ;;  %v2845_v45 = vld [vmem:[%s6237_s3 + $0x438] sm:$0xff] }
 0x1ad   :  { %v3580_v42 = vpack.c.bf16 %v2843_v40, %v2839_v15  ;;  %v2853_v15 = vld [vmem:[%s6237_s3 + $0x478] sm:$0xff]  ;;  %v2855_v40 = vld [vmem:[%s6237_s3 + $0x488] sm:$0xff] }
 0x1ae   :  { %v905_v25 = vadd.f32 %v904_v49, %v903_v38  ;;  %v930_v58 = vrot.slane %v929_v50, 4  ;;  %v925_v6 = vrot.slane %v924_v7, 1  ;;  %v900_v19 = vadd.f32 %v899_v57, %v898_v4  ;;  %v2841_v38 = vld [vmem:[%s6237_s3 + $0x418] sm:$0xff]  ;;  %v890_v57 = vld [vmem:[%s6241_s7] sm:$0x1] }
 0x1af   :  { %v3644_v37 = vpack.c.bf16 %v2845_v45, %v2841_v38  ;;  %v2859_v38 = vld [vmem:[%s6237_s3 + $0x4a8] sm:$0xff] }
 0x1b0   :  { %v906_v9 = vrot.slane %v905_v25, 2  ;;  %v931_v22 = vadd.f32 %v930_v58, %v929_v50  ;;  %v926_v44 = vadd.f32 %v925_v6, %v924_v7 }
 0x1b2   :  { %v907_v52 = vadd.f32 %v906_v9, %v905_v25  ;;  %v932_v10 = vrot.slane %v931_v22, 2 }
 0x1b4   :  { %v908_v14 = vrot.slane %v907_v52, 1  ;;  %v933_v17 = vadd.f32 %v932_v10, %v931_v22  ;;  %v2842_v10 = vld [vmem:[%s6237_s3 + $0x420] sm:$0xff] }
 0x1b6   :  { %v909_v46 = vadd.f32 %v908_v14, %v907_v52  ;;  %v934_v26 = vrot.slane %v933_v17, 1  ;;  %v2838_v52 = vld [vmem:[%s6237_s3 + $0x400] sm:$0xff]  ;;  %v2847_v14 = vld [vmem:[%s6237_s3 + $0x448] sm:$0xff] }
 0x1b8   :  { %1000 = vmatprep.mubr.f32.mxu0 %v909_v46  ;;  %v935_v13 = vadd.f32 %v934_v26, %v933_v17  ;;  %v2851_v17 = vld [vmem:[%s6237_s3 + $0x468] sm:$0xff]  ;;  %v891_v46 = vld [vmem:[%s6241_s7 + $0x1] sm:$0x1]  ;;  %v3582_v26 = vpack.c.bf16 %v2842_v10, %v2838_v52 }
 0x1b9   :  { %1001 = vmatmul.mubr.f32.vlgmr.msra.gmra.mrb[8].mxu0 %v900_v19  ;;  %v2840_v19 = vld [vmem:[%s6237_s3 + $0x410] sm:$0xff]  ;;  %v3584_v20 = vpack.c.bf16 %v2851_v17, %v2847_v14 }
 0x1ba   :  { %1070 = vmatprep.mubr.f32.mxu1 %v935_v13  ;;  %1154 = vmatprep.mubr.f32.mxu0 %v6243_v0  ;;  %v2844_v13 = vld [vmem:[%s6237_s3 + $0x430] sm:$0xff] }
 0x1bb   :  { %1071 = vmatmul.mubr.f32.vlgmr.msra.gmra.mrb[8].mxu1 %v926_v44  ;;  %3575 = vmatpush1.bf16.msra.mxu0 %v4696_v35  ;;  %v3646_v45 = vpack.c.bf16 %v2844_v13, %v2840_v19  ;;  %v2860_v14 = vld [vmem:[%s6237_s3 + $0x4b0] sm:$0xff]  ;;  %v2866_v19 = vld [vmem:[%s6237_s3 + $0x4e0] sm:$0xff]  ;;  %v2869_v13 = vld [vmem:[%s6237_s3 + $0x4f8] sm:$0xff] }
 0x1bc   :  { %1228 = vmatprep.mubr.f32.mxu1 %v6243_v0  ;;  %3579 = vmatpush1.bf16.msra.mxu1 %v4696_v35 }
 0x1bd   :  { %3581 = vmatprep.subr.bf16.mxu0 %v3580_v42  ;;  %3645 = vmatprep.subr.bf16.mxu1 %v3644_v37  ;;  %v3586_v37 = vpack.c.bf16 %v2850_v32, %v2846_v28  ;;  %v2864_v32 = vld [vmem:[%s6237_s3 + $0x4d0] sm:$0xff] }
 0x28c   :  { %v3144_v49 = vpop.f32.mrb[8].mxu0 }
 0x28d   :  { %v3145_v41 = vpop.f32.mrb[9].mxu0 }
 0x28e   :  { %v3146_v50 = vadd.f32 %v3145_v41, %v3144_v49  ;;  %v3179_v56 = vpop.f32.mrb[8].mxu1  ;;  %v2848_v49 = vld [vmem:[%s6237_s3 + $0x450] sm:$0xff] }
 0x28f   :  { %v3180_v25 = vpop.f32.mrb[9].mxu1  ;;  %v2852_v41 = vld [vmem:[%s6237_s3 + $0x470] sm:$0xff] }
 0x290   :  { %v1077_v58 = vmul.f32 0.001953125, %v3146_v50  ;;  %v3181_v61 = vadd.f32 %v3180_v25, %v3179_v56  ;;  %v3648_v56 = vpack.c.bf16 %v2853_v15, %v2849_v23  ;;  %v3588_v25 = vpack.c.bf16 %v2859_v38, %v2855_v40  ;;  %v2868_v15 = vld [vmem:[%s6237_s3 + $0x4f0] sm:$0xff] }
 0x291   :  { %v3650_v52 = vpack.c.bf16 %v2852_v41, %v2848_v49  ;;  %v2877_v49 = vld [vmem:[%s6237_s3 + $0x538] sm:$0xff]  ;;  %v2879_v41 = vld [vmem:[%s6237_s3 + $0x548] sm:$0xff] }
 0x292   :  { %v1079_v4 = vmul.f32 %v1077_v58, %v1077_v58  ;;  %v1078_v9 = vmul.f32 0.001953125, %v3181_v61  ;;  %v2857_v61 = vld [vmem:[%s6237_s3 + $0x498] sm:$0xff] }
 0x294   :  { %v1080_v22 = vsub.f32 %v1078_v9, %v1079_v4  ;;  %v2858_v4 = vld [vmem:[%s6237_s3 + $0x4a0] sm:$0xff]  ;;  %v2861_v9 = vld [vmem:[%s6237_s3 + $0x4b8] sm:$0xff] }
 0x295   :  { %v3652_v17 = vpack.c.bf16 %v2861_v9, %v2857_v61  ;;  %v2872_v61 = vld [vmem:[%s6237_s3 + $0x510] sm:$0xff] }
 0x296   :  { %v1081_v7 = vadd.f32 1e-05, %v1080_v22  ;;  %v2863_v22 = vld [vmem:[%s6237_s3 + $0x4c8] sm:$0xff] }
 0x298   :  { %4152 = vrsqrt.f32 %v1081_v7  ;;  %v2867_v7 = vld [vmem:[%s6237_s3 + $0x4e8] sm:$0xff] }
 0x2a2   :  { %v4153_v6 = vpop.eup %4152 }
 0x2a3   :  { %v1083_v44 = vmul.f32 %v4153_v6, %v890_v57  ;;  %v2856_v57 = vld [vmem:[%s6237_s3 + $0x490] sm:$0xff]  ;;  %v3592_v6 = vpack.c.bf16 %v2867_v7, %v2863_v22  ;;  %v2881_v22 = vld [vmem:[%s6237_s3 + $0x558] sm:$0xff]  ;;  %v2878_v7 = vld [vmem:[%s6237_s3 + $0x540] sm:$0xff] }
 0x2a4   :  { %v3654_v23 = vpack.c.bf16 %v2860_v14, %v2856_v57  ;;  %v2887_v57 = vld [vmem:[%s6237_s3 + $0x588] sm:$0xff] }
 0x2a5   :  { %2836 = vmatmul.mubr.msk.f32.vlgmr.msra.gmra.mrb[10].mxu0 %vm1086_vm0, %v1083_v44  ;;  %v1084_v42 = vmul.f32 %v1083_v44, %v1077_v58  ;;  %v2854_v58 = vld [vmem:[%s6237_s3 + $0x480] sm:$0xff]  ;;  %v2871_v44 = vld [vmem:[%s6237_s3 + $0x508] sm:$0xff] }
 0x2a6   :  { %3583 = vmatpush1.bf16.msra.mxu0 %v3582_v26  ;;  %v3590_v10 = vpack.c.bf16 %v2858_v4, %v2854_v58  ;;  %v2862_v26 = vld [vmem:[%s6237_s3 + $0x4c0] sm:$0xff]  ;;  %v2876_v58 = vld [vmem:[%s6237_s3 + $0x530] sm:$0xff]  ;;  %v2891_v14 = vld [vmem:[%s6237_s3 + $0x5a8] sm:$0xff] }
 0x2a7   :  { %v1085_v50 = vsub.f32 %v891_v46, %v1084_v42  ;;  %3585 = vmatprep.subr.bf16.mxu0 %v3584_v20  ;;  %v2865_v46 = vld [vmem:[%s6237_s3 + $0x4d8] sm:$0xff]  ;;  %v2875_v20 = vld [vmem:[%s6237_s3 + $0x528] sm:$0xff]  ;;  %v3594_v28 = vpack.c.bf16 %v2866_v19, %v2862_v26  ;;  %v2884_v26 = vld [vmem:[%s6237_s3 + $0x570] sm:$0xff] }
 0x2a8   :  { %v3656_v40 = vpack.c.bf16 %v2869_v13, %v2865_v46  ;;  %v3596_v38 = vpack.c.bf16 %v2875_v20, %v2871_v44  ;;  %v2873_v42 = vld [vmem:[%s6237_s3 + $0x518] sm:$0xff]  ;;  %v2880_v46 = vld [vmem:[%s6237_s3 + $0x550] sm:$0xff]  ;;  %v3604_v13 = vpack.c.bf16 %v2891_v14, %v2887_v57  ;;  %v2886_v20 = vld [vmem:[%s6237_s3 + $0x580] sm:$0xff] }
 0x2a9   :  { %2837 = vmatmul.mubr.msk.f32.vlgmr.msra.gmra.mrb[10].mxu1 %vm1086_vm0, %v1085_v50  ;;  %v2883_v50 = vld [vmem:[%s6237_s3 + $0x568] sm:$0xff]  ;;  %v3660_v4 = vpack.c.bf16 %v2877_v49, %v2873_v42  ;;  %v2889_v44 = vld [vmem:[%s6237_s3 + $0x598] sm:$0xff]  ;;  %v2888_v42 = vld [vmem:[%s6237_s3 + $0x590] sm:$0xff] }
 0x2aa   :  { %3647 = vmatpush1.bf16.msra.mxu1 %v3646_v45  ;;  %3587 = vmatpush1.bf16.msra.mxu0 %v3586_v37  ;;  %v2870_v45 = vld [vmem:[%s6237_s3 + $0x500] sm:$0xff]  ;;  %v3600_v9 = vpack.c.bf16 %v2883_v50, %v2879_v41  ;;  %v2897_v41 = vld [vmem:[%s6237_s3 + $0x5d8] sm:$0xff] }
 0x2ab   :  { %3649 = vmatprep.subr.bf16.mxu1 %v3648_v56  ;;  %3589 = vmatprep.subr.bf16.mxu0 %v3588_v25  ;;  %v2874_v37 = vld [vmem:[%s6237_s3 + $0x520] sm:$0xff]  ;;  %v3658_v56 = vpack.c.bf16 %v2868_v15, %v2864_v32  ;;  %v2895_v32 = vld [vmem:[%s6237_s3 + $0x5c8] sm:$0xff]  ;;  %v2905_v57 = vld [vmem:[%s6237_s3 + $0x618] sm:$0xff] }
 0x2ac   :  { %v3598_v25 = vpack.c.bf16 %v2874_v37, %v2870_v45  ;;  %v2899_v15 = vld [vmem:[%s6237_s3 + $0x5e8] sm:$0xff]  ;;  %v2892_v45 = vld [vmem:[%s6237_s3 + $0x5b0] sm:$0xff]  ;;  %v2894_v50 = vld [vmem:[%s6237_s3 + $0x5c0] sm:$0xff] }
 0x2ad   :  { %v3608_v49 = vpack.c.bf16 %v2899_v15, %v2895_v32  ;;  %v2902_v14 = vld [vmem:[%s6237_s3 + $0x600] sm:$0xff]  ;;  %v2913_v32 = vld [vmem:[%s6237_s3 + $0x658] sm:$0xff] }
 0x2ae   :  { %3651 = vmatpush1.bf16.msra.mxu1 %v3650_v52  ;;  %3591 = vmatpush1.bf16.msra.mxu0 %v3590_v10  ;;  %v2882_v52 = vld [vmem:[%s6237_s3 + $0x560] sm:$0xff]  ;;  %v2885_v10 = vld [vmem:[%s6237_s3 + $0x578] sm:$0xff] }
 0x2af   :  { %3653 = vmatprep.subr.bf16.mxu1 %v3652_v17  ;;  %3593 = vmatprep.subr.bf16.mxu0 %v3592_v6  ;;  %v3662_v17 = vpack.c.bf16 %v2876_v58, %v2872_v61  ;;  %v3602_v6 = vpack.c.bf16 %v2882_v52, %v2878_v7  ;;  %v3664_v19 = vpack.c.bf16 %v2885_v10, %v2881_v22  ;;  %v2903_v61 = vld [vmem:[%s6237_s3 + $0x608] sm:$0xff]  ;;  %v2896_v22 = vld [vmem:[%s6237_s3 + $0x5d0] sm:$0xff]  ;;  %v2910_v15 = vld [vmem:[%s6237_s3 + $0x640] sm:$0xff] }
 0x2b0   :  { %v2907_v58 = vld [vmem:[%s6237_s3 + $0x628] sm:$0xff]  ;;  %v2900_v7 = vld [vmem:[%s6237_s3 + $0x5f0] sm:$0xff] }
 0x2b1   :  { %v3612_v10 = vpack.c.bf16 %v2907_v58, %v2903_v61  ;;  %v2921_v61 = vld [vmem:[%s6237_s3 + $0x698] sm:$0xff]  ;;  %v2918_v58 = vld [vmem:[%s6237_s3 + $0x680] sm:$0xff] }
 0x2b2   :  { %3655 = vmatpush1.bf16.msra.mxu1 %v3654_v23  ;;  %3595 = vmatpush1.bf16.msra.mxu0 %v3594_v28  ;;  %v2890_v23 = vld [vmem:[%s6237_s3 + $0x5a0] sm:$0xff]  ;;  %v2893_v28 = vld [vmem:[%s6237_s3 + $0x5b8] sm:$0xff] }
 0x2b3   :  { %3657 = vmatprep.subr.bf16.mxu1 %v3656_v40  ;;  %3597 = vmatprep.subr.bf16.mxu0 %v3596_v38  ;;  %v3666_v40 = vpack.c.bf16 %v2884_v26, %v2880_v46  ;;  %v3606_v38 = vpack.c.bf16 %v2890_v23, %v2886_v20  ;;  %v3668_v37 = vpack.c.bf16 %v2893_v28, %v2889_v44  ;;  %v2911_v46 = vld [vmem:[%s6237_s3 + $0x648] sm:$0xff]  ;;  %v2904_v44 = vld [vmem:[%s6237_s3 + $0x610] sm:$0xff] }
 0x2b4   :  { %v2915_v26 = vld [vmem:[%s6237_s3 + $0x668] sm:$0xff]  ;;  %v2908_v20 = vld [vmem:[%s6237_s3 + $0x630] sm:$0xff] }
 0x2b5   :  { %v3616_v28 = vpack.c.bf16 %v2915_v26, %v2911_v46  ;;  %v2929_v46 = vld [vmem:[%s6237_s3 + $0x6d8] sm:$0xff]  ;;  %v2926_v26 = vld [vmem:[%s6237_s3 + $0x6c0] sm:$0xff] }
 0x2b6   :  { %3659 = vmatpush1.bf16.msra.mxu1 %v3658_v56  ;;  %3599 = vmatpush1.bf16.msra.mxu0 %v3598_v25  ;;  %v2898_v56 = vld [vmem:[%s6237_s3 + $0x5e0] sm:$0xff]  ;;  %v2901_v25 = vld [vmem:[%s6237_s3 + $0x5f8] sm:$0xff] }
 0x2b7   :  { %3661 = vmatprep.subr.bf16.mxu1 %v3660_v4  ;;  %3601 = vmatprep.subr.bf16.mxu0 %v3600_v9  ;;  %v3670_v4 = vpack.c.bf16 %v2892_v45, %v2888_v42  ;;  %v3610_v9 = vpack.c.bf16 %v2898_v56, %v2894_v50  ;;  %v3672_v52 = vpack.c.bf16 %v2901_v25, %v2897_v41  ;;  %v2919_v42 = vld [vmem:[%s6237_s3 + $0x688] sm:$0xff]  ;;  %v2912_v41 = vld [vmem:[%s6237_s3 + $0x650] sm:$0xff] }
 0x2b8   :  { %v2923_v45 = vld [vmem:[%s6237_s3 + $0x6a8] sm:$0xff]  ;;  %v2916_v50 = vld [vmem:[%s6237_s3 + $0x670] sm:$0xff] }
 0x2b9   :  { %v3620_v25 = vpack.c.bf16 %v2923_v45, %v2919_v42  ;;  %v2937_v42 = vld [vmem:[%s6237_s3 + $0x718] sm:$0xff]  ;;  %v2934_v45 = vld [vmem:[%s6237_s3 + $0x700] sm:$0xff] }
 0x2ba   :  { %3663 = vmatpush1.bf16.msra.mxu1 %v3662_v17  ;;  %3603 = vmatpush1.bf16.msra.mxu0 %v3602_v6  ;;  %v2906_v17 = vld [vmem:[%s6237_s3 + $0x620] sm:$0xff]  ;;  %v2909_v6 = vld [vmem:[%s6237_s3 + $0x638] sm:$0xff] }
 0x2bb   :  { %3665 = vmatprep.subr.bf16.mxu1 %v3664_v19  ;;  %3605 = vmatprep.subr.bf16.mxu0 %v3604_v13  ;;  %v3674_v19 = vpack.c.bf16 %v2900_v7, %v2896_v22  ;;  %v3614_v13 = vpack.c.bf16 %v2906_v17, %v2902_v14  ;;  %v3676_v23 = vpack.c.bf16 %v2909_v6, %v2905_v57  ;;  %v2927_v22 = vld [vmem:[%s6237_s3 + $0x6c8] sm:$0xff]  ;;  %v2920_v57 = vld [vmem:[%s6237_s3 + $0x690] sm:$0xff] }
 0x2bc   :  { %v2931_v7 = vld [vmem:[%s6237_s3 + $0x6e8] sm:$0xff]  ;;  %v2924_v14 = vld [vmem:[%s6237_s3 + $0x6b0] sm:$0xff] }
 0x2bd   :  { %v3624_v6 = vpack.c.bf16 %v2931_v7, %v2927_v22  ;;  %v2942_v22 = vld [vmem:[%s6237_s3 + $0x740] sm:$0xff] }
 0x2be   :  { %3667 = vmatpush1.bf16.msra.mxu1 %v3666_v40  ;;  %3607 = vmatpush1.bf16.msra.mxu0 %v3606_v38  ;;  %v2914_v40 = vld [vmem:[%s6237_s3 + $0x660] sm:$0xff]  ;;  %v2917_v38 = vld [vmem:[%s6237_s3 + $0x678] sm:$0xff] }
 0x2bf   :  { %3669 = vmatprep.subr.bf16.mxu1 %v3668_v37  ;;  %3609 = vmatprep.subr.bf16.mxu0 %v3608_v49  ;;  %v3678_v37 = vpack.c.bf16 %v2908_v20, %v2904_v44  ;;  %v3618_v49 = vpack.c.bf16 %v2914_v40, %v2910_v15  ;;  %v3680_v56 = vpack.c.bf16 %v2917_v38, %v2913_v32  ;;  %v2935_v44 = vld [vmem:[%s6237_s3 + $0x708] sm:$0xff]  ;;  %v2928_v32 = vld [vmem:[%s6237_s3 + $0x6d0] sm:$0xff]  ;;  %v2946_v7 = vld [vmem:[%s6237_s3 + $0x760] sm:$0xff] }
 0x2c0   :  { %v2939_v20 = vld [vmem:[%s6237_s3 + $0x728] sm:$0xff]  ;;  %v2932_v15 = vld [vmem:[%s6237_s3 + $0x6f0] sm:$0xff] }
 0x2c1   :  { %v3628_v38 = vpack.c.bf16 %v2939_v20, %v2935_v44  ;;  %v2953_v44 = vld [vmem:[%s6237_s3 + $0x798] sm:$0xff] }
 0x2c2   :  { %3671 = vmatpush1.bf16.msra.mxu1 %v3670_v4  ;;  %3611 = vmatpush1.bf16.msra.mxu0 %v3610_v9  ;;  %v2922_v4 = vld [vmem:[%s6237_s3 + $0x6a0] sm:$0xff]  ;;  %v2925_v9 = vld [vmem:[%s6237_s3 + $0x6b8] sm:$0xff] }
 0x2c3   :  { %3673 = vmatprep.subr.bf16.mxu1 %v3672_v52  ;;  %3613 = vmatprep.subr.bf16.mxu0 %v3612_v10  ;;  %v3682_v52 = vpack.c.bf16 %v2916_v50, %v2912_v41  ;;  %v3622_v10 = vpack.c.bf16 %v2922_v4, %v2918_v58  ;;  %v3684_v17 = vpack.c.bf16 %v2925_v9, %v2921_v61  ;;  %v2943_v41 = vld [vmem:[%s6237_s3 + $0x748] sm:$0xff]  ;;  %v2936_v61 = vld [vmem:[%s6237_s3 + $0x710] sm:$0xff] }
 0x2c4   :  { %v2947_v50 = vld [vmem:[%s6237_s3 + $0x768] sm:$0xff]  ;;  %v2940_v4 = vld [vmem:[%s6237_s3 + $0x730] sm:$0xff] }
 0x2c5   :  { %v3632_v9 = vpack.c.bf16 %v2947_v50, %v2943_v41  ;;  %v2961_v41 = vld [vmem:[%s6237_s3 + $0x7d8] sm:$0xff] }
 0x2c6   :  { %3675 = vmatpush1.bf16.msra.mxu1 %v3674_v19  ;;  %3615 = vmatpush1.bf16.msra.mxu0 %v3614_v13  ;;  %v2930_v19 = vld [vmem:[%s6237_s3 + $0x6e0] sm:$0xff]  ;;  %v2933_v13 = vld [vmem:[%s6237_s3 + $0x6f8] sm:$0xff] }
 0x2c7   :  { %3677 = vmatprep.subr.bf16.mxu1 %v3676_v23  ;;  %3617 = vmatprep.subr.bf16.mxu0 %v3616_v28  ;;  %v3686_v23 = vpack.c.bf16 %v2924_v14, %v2920_v57  ;;  %v3626_v28 = vpack.c.bf16 %v2930_v19, %v2926_v26  ;;  %v3688_v40 = vpack.c.bf16 %v2933_v13, %v2929_v46  ;;  %v2948_v46 = vld [vmem:[%s6237_s3 + $0x770] sm:$0xff]  ;;  %v2951_v19 = vld [vmem:[%s6237_s3 + $0x788] sm:$0xff] }
 0x2c8   :  { %v3694_v57 = vpack.c.bf16 %v2940_v4, %v2936_v61  ;;  %v3634_v14 = vpack.c.bf16 %v2946_v7, %v2942_v22  ;;  %v2955_v13 = vld [vmem:[%s6237_s3 + $0x7a8] sm:$0xff]  ;;  %v2962_v61 = vld [vmem:[%s6237_s3 + $0x7e0] sm:$0xff]  ;;  %v2964_v22 = vld [vmem:[%s6237_s3 + $0x7f0] sm:$0xff] }
 0x2c9   :  { %v3636_v20 = vpack.c.bf16 %v2955_v13, %v2951_v19  ;;  %v5119_v19 = vld [vmem:[%s6237_s3 + $0x10] sm:$0xff] }
 0x2ca   :  { %3679 = vmatpush1.bf16.msra.mxu1 %v3678_v37  ;;  %3619 = vmatpush1.bf16.msra.mxu0 %v3618_v49  ;;  %v2938_v37 = vld [vmem:[%s6237_s3 + $0x720] sm:$0xff]  ;;  %v2941_v49 = vld [vmem:[%s6237_s3 + $0x738] sm:$0xff]  ;;  %v1424_v13 = vld [vmem:[%s6237_s3 + $0x30] sm:$0xff] }
 0x2cb   :  { %3681 = vmatprep.subr.bf16.mxu1 %v3680_v56  ;;  %3621 = vmatprep.subr.bf16.mxu0 %v3620_v25  ;;  %v3690_v56 = vpack.c.bf16 %v2932_v15, %v2928_v32  ;;  %v3630_v25 = vpack.c.bf16 %v2938_v37, %v2934_v45  ;;  %v3692_v58 = vpack.c.bf16 %v2941_v49, %v2937_v42  ;;  %v2954_v32 = vld [vmem:[%s6237_s3 + $0x7a0] sm:$0xff]  ;;  %v2956_v42 = vld [vmem:[%s6237_s3 + $0x7b0] sm:$0xff]  ;;  %v2959_v37 = vld [vmem:[%s6237_s3 + $0x7c8] sm:$0xff] }
 0x2cc   :  { %v2963_v49 = vld [vmem:[%s6237_s3 + $0x7e8] sm:$0xff] }
 0x2cd   :  { %v3640_v50 = vpack.c.bf16 %v2963_v49, %v2959_v37  ;;  %v5163_v37 = vld [vmem:[%s6237_s3 + $0x70] sm:$0xff] }
 0x2ce   :  { %3683 = vmatpush1.bf16.msra.mxu1 %v3682_v52  ;;  %3623 = vmatpush1.bf16.msra.mxu0 %v3622_v10  ;;  %v2945_v52 = vld [vmem:[%s6237_s3 + $0x758] sm:$0xff] }
 0x2cf   :  { %3685 = vmatprep.subr.bf16.mxu1 %v3684_v17  ;;  %3625 = vmatprep.subr.bf16.mxu0 %v3624_v6  ;;  %v2949_v10 = vld [vmem:[%s6237_s3 + $0x778] sm:$0xff]  ;;  %v2944_v6 = vld [vmem:[%s6237_s3 + $0x750] sm:$0xff] }
 0x2d0   :  { %v3696_v17 = vpack.c.bf16 %v2949_v10, %v2945_v52  ;;  %v3698_v26 = vpack.c.bf16 %v2948_v46, %v2944_v6  ;;  %v1419_v52 = vld [vmem:[%s6237_s3 + $0x8] sm:$0xff]  ;;  %v5109_v46 = vld [vmem:[%s6237_s3] sm:$0xff] }
 0x2d1   :  { %v1423_v10 = vld [vmem:[%s6237_s3 + $0x28] sm:$0xff] }
 0x2d2   :  { %3687 = vmatpush1.bf16.msra.mxu1 %v3686_v23  ;;  %3627 = vmatpush1.bf16.msra.mxu0 %v3626_v28  ;;  %v2957_v23 = vld [vmem:[%s6237_s3 + $0x7b8] sm:$0xff]  ;;  %v2950_v28 = vld [vmem:[%s6237_s3 + $0x780] sm:$0xff] }
 0x2d3   :  { %3689 = vmatprep.subr.bf16.mxu1 %v3688_v40  ;;  %3629 = vmatprep.subr.bf16.mxu0 %v3628_v38  ;;  %v3700_v15 = vpack.c.bf16 %v2957_v23, %v2953_v44  ;;  %v3638_v40 = vpack.c.bf16 %v2954_v32, %v2950_v28  ;;  %v2952_v38 = vld [vmem:[%s6237_s3 + $0x790] sm:$0xff]  ;;  %v5127_v44 = vld [vmem:[%s6237_s3 + $0x48] sm:$0xff]  ;;  %v5137_v28 = vld [vmem:[%s6237_s3 + $0x58] sm:$0xff] }
 0x2d4   :  { %v3702_v45 = vpack.c.bf16 %v2956_v42, %v2952_v38  ;;  %v5142_v32 = vld [vmem:[%s6237_s3 + $0x78] sm:$0xff]  ;;  %v5153_v42 = vld [vmem:[%s6237_s3 + $0x60] sm:$0xff] }
 0x2d6   :  { %3691 = vmatpush1.bf16.msra.mxu1 %v3690_v56  ;;  %3631 = vmatpush1.bf16.msra.mxu0 %v3630_v25  ;;  %v2965_v56 = vld [vmem:[%s6237_s3 + $0x7f8] sm:$0xff]  ;;  %v2958_v25 = vld [vmem:[%s6237_s3 + $0x7c0] sm:$0xff] }
 0x2d7   :  { %3693 = vmatprep.subr.bf16.mxu1 %v3692_v58  ;;  %3633 = vmatprep.subr.bf16.mxu0 %v3632_v9  ;;  %v3704_v58 = vpack.c.bf16 %v2965_v56, %v2961_v41  ;;  %v3642_v4 = vpack.c.bf16 %v2962_v61, %v2958_v25  ;;  %v2960_v9 = vld [vmem:[%s6237_s3 + $0x7d0] sm:$0xff]  ;;  %v3776_v25 = vpack.c.bf16 %v5142_v32, %v5137_v28  ;;  %v1439_v28 = vld [vmem:[%s6237_s3 + $0xa8] sm:$0xff]  ;;  %v1437_v32 = vld [vmem:[%s6237_s3 + $0x98] sm:$0xff] }
 0x2d8   :  { %v3706_v7 = vpack.c.bf16 %v2964_v22, %v2960_v9 }
 0x2da   :  { %3695 = vmatpush1.bf16.msra.mxu1 %v3694_v57  ;;  %3635 = vmatpush1.bf16.msra.mxu0 %v3634_v14  ;;  %v1421_v57 = vld [vmem:[%s6237_s3 + $0x18] sm:$0xff]  ;;  %v3708_v14 = vpack.c.bf16 %v1423_v10, %v1419_v52 }
 0x2db   :  { %3697 = vmatprep.subr.bf16.mxu1 %v3696_v17  ;;  %3637 = vmatprep.subr.bf16.mxu0 %v3636_v20  ;;  %v1425_v17 = vld [vmem:[%s6237_s3 + $0x38] sm:$0xff]  ;;  %v5132_v20 = vld [vmem:[%s6237_s3 + $0x68] sm:$0xff] }
 0x2dc   :  { %v3772_v6 = vpack.c.bf16 %v1425_v17, %v1421_v57  ;;  %v3712_v56 = vpack.c.bf16 %v5132_v20, %v5127_v44 }
 0x2de   :  { %3699 = vmatpush1.bf16.msra.mxu1 %v3698_v26  ;;  %3639 = vmatpush1.bf16.msra.mxu0 %v3638_v40  ;;  %v5114_v26 = vld [vmem:[%s6237_s3 + $0x20] sm:$0xff] }
 0x2df   :  { %3701 = vmatprep.subr.bf16.mxu1 %v3700_v15  ;;  %3641 = vmatprep.subr.bf16.mxu0 %v3640_v50  ;;  %v5147_v15 = vld [vmem:[%s6237_s3 + $0x40] sm:$0xff]  ;;  %v3710_v41 = vpack.c.bf16 %v5114_v26, %v5109_v46  ;;  %v3774_v50 = vpack.c.bf16 %v1424_v13, %v5119_v19 }
 0x2e0   :  { %v3714_v9 = vpack.c.bf16 %v5153_v42, %v5147_v15  ;;  %v1446_v15 = vld [vmem:[%s6237_s3 + $0xe0] sm:$0xff]  ;;  %v1444_v42 = vld [vmem:[%s6237_s3 + $0xd0] sm:$0xff] }
 0x2e2   :  { %3703 = vmatpush1.bf16.msra.mxu1 %v3702_v45  ;;  %3643 = vmatpush1.bf16.msra.mxu0 %v3642_v4  ;;  %v5158_v45 = vld [vmem:[%s6237_s3 + $0x50] sm:$0xff] }
 0x2e3   :  { %3705 = vmatprep.subr.bf16.mxu1 %v3704_v58  ;;  %3709 = vmatprep.subr.bf16.mxu0 %v3708_v14  ;;  %v3778_v22 = vpack.c.bf16 %v5163_v37, %v5158_v45  ;;  %v1448_v45 = vld [vmem:[%s6237_s3 + $0xf0] sm:$0xff] }
 0x2e6   :  { %3707 = vmatpush1.bf16.msra.mxu1 %v3706_v7 }
 0x2e7   :  { %3773 = vmatprep.subr.bf16.mxu1 %v3772_v6 }
 0x378   :  { %v1156_v23 = vpop.f32.mrb[10].mxu0 }
 0x379   :  { %v1238_v40 = vrot.slane %v1156_v23, %v4484_v2  ;;  %v1158_v38 = vpop.f32.mrb[11].mxu0 }
 0x37a   :  { %v1242_v49 = vrot.slane %v1158_v38, %v4484_v2 }
 0x37b   :  { %v1243_v61 = vmul.f32 %v1238_v40, %v4585_v55  ;;  %v1245_v58 = vmul.f32 %v1238_v40, %v4621_v62  ;;  %v1247_v7 = vmul.f32 %v1238_v40, %v4637_v31  ;;  %v1249_v52 = vmul.f32 %v1238_v40, %v4660_v16 }
 0x37c   :  { %v1230_v4 = vpop.f32.mrb[10].mxu1  ;;  %v1244_v10 = vmul.f32 %v1242_v49, %v4597_v11  ;;  %v1246_v55 = vmul.f32 %v1242_v49, %v4628_v34  ;;  %v1248_v62 = vmul.f32 %v1242_v49, %v4644_v51  ;;  %v1250_v17 = vmul.f32 %v1242_v49, %v4674_v12  ;;  %v5206_v51 = vld [vmem:[%s6237_s3 + $0x88] sm:$0xff] }
 0x37d   :  { %v1254_v57 = vrot.slane %v1230_v4, %v4484_v2  ;;  %v1232_v14 = vpop.f32.mrb[11].mxu1  ;;  %v1434_v4 = vld [vmem:[%s6237_s3 + $0x80] sm:$0xff] }
 0x37e   :  { %v1258_v6 = vrot.slane %v1232_v14, %v4484_v2  ;;  %v1436_v14 = vld [vmem:[%s6237_s3 + $0x90] sm:$0xff] }
 0x37f   :  { %v5187_v46 = vadd.f32 %v1254_v57, %v1243_v61  ;;  %v5189_v26 = vadd.f32 %v1254_v57, %v1245_v58  ;;  %v5191_v31 = vadd.f32 %v1254_v57, %v1247_v7  ;;  %v5193_v16 = vadd.f32 %v1254_v57, %v1249_v52  ;;  %v1441_v58 = vld [vmem:[%s6237_s3 + $0xb8] sm:$0xff]  ;;  %v1438_v7 = vld [vmem:[%s6237_s3 + $0xa0] sm:$0xff] }
 0x380   :  { %v5195_v11 = vadd.f32 %v1258_v6, %v1244_v10  ;;  %v5197_v19 = vadd.f32 %v1258_v6, %v1246_v55  ;;  %v5199_v13 = vadd.f32 %v1258_v6, %v1248_v62  ;;  %v5201_v34 = vadd.f32 %v1258_v6, %v1250_v17  ;;  %v1443_v6 = vld [vmem:[%s6237_s3 + $0xc8] sm:$0xff] }
 0x381   :  { %v1333_v12 = vrot.slane %v5187_v46, 7  ;;  %v1335_v44 = vrot.slane %v5189_v26, 7  ;;  %v1339_v20 = vrot.slane %v5191_v31, 7  ;;  %v1343_v23 = vrot.slane %v5193_v16, 7 }
 0x382   :  { %1739 = vmatprep.mubr.f32.mxu0 %v5195_v11  ;;  %1828 = vmatprep.mubr.f32.mxu1 %v5195_v11  ;;  %v1334_v40 = vrot.slane %v5195_v11, 7  ;;  %v1337_v38 = vrot.slane %v5197_v19, 7  ;;  %v1341_v49 = vrot.slane %v5199_v13, 7  ;;  %v1345_v61 = vrot.slane %v5201_v34, 7 }
 0x383   :  { %1740 = vmatmul.mubr.f32.vlgmr.msra.gmra.mrb[12].mxu0 %v5187_v46  ;;  %1829 = vmatmul.mubr.f32.vlgmr.msra.gmra.mrb[12].mxu1 %v5187_v46  ;;  %v5238_v52 = vsel %vm1332_vm1, %v1333_v12, %v1335_v44  ;;  %v5241_v10 = vsel %vm1332_vm1, %v1335_v44, %v1339_v20  ;;  %v5244_v57 = vsel %vm1332_vm1, %v1339_v20, %v1343_v23  ;;  %v1447_v44 = vld [vmem:[%s6237_s3 + $0xe8] sm:$0xff]  ;;  %v1381_v20 = vrot.slane %v5195_v11, 1 }
 0x384   :  { %3711 = vmatpush1.bf16.msra.mxu0 %v3710_v41  ;;  %3775 = vmatpush1.bf16.msra.mxu1 %v3774_v50  ;;  %v5252_v55 = vsel %vm1332_vm1, %v1334_v40, %v1337_v38  ;;  %v5255_v62 = vsel %vm1332_vm1, %v1337_v38, %v1341_v49  ;;  %v5258_v17 = vsel %vm1332_vm1, %v1341_v49, %v1345_v61  ;;  %v1440_v50 = vld [vmem:[%s6237_s3 + $0xb0] sm:$0xff]  ;;  %v1382_v23 = vrot.slane %v5197_v19, 1  ;;  %v1445_v61 = vld [vmem:[%s6237_s3 + $0xd8] sm:$0xff] }
 0x385   :  { %1745 = vmatprep.mubr.f32.mxu0 %v5197_v19  ;;  %1834 = vmatprep.mubr.f32.mxu1 %v5197_v19  ;;  %v3716_v41 = vpack.c.bf16 %v1439_v28, %v5206_v51  ;;  %v3780_v38 = vpack.c.bf16 %v1441_v58, %v1437_v32  ;;  %v3718_v51 = vpack.c.bf16 %v1438_v7, %v1434_v4  ;;  %v1378_v28 = vrot.slane %v5187_v46, 1  ;;  %v1449_v19 = vld [vmem:[%s6237_s3 + $0xf8] sm:$0xff]  ;;  %v1442_v7 = vld [vmem:[%s6237_s3 + $0xc0] sm:$0xff]  ;;  %v2995_v46 = vld [vmem:[%s6237_s3 + $0x8a8] sm:$0xff] }
 0x386   :  { %3713 = vmatprep.subr.bf16.mxu0 %v3712_v56  ;;  %3777 = vmatprep.subr.bf16.mxu1 %v3776_v25  ;;  %v1379_v49 = vrot.slane %v5189_v26, 1  ;;  %v5285_v56 = vsel %vm1377_vm2, %v1381_v20, %v1382_v23  ;;  %v1386_v25 = vrot.slane %v5199_v13, 1  ;;  %v1384_v32 = vrot.slane %v5191_v31, 1 }
 0x387   :  { %1746 = vmatmul.mubr.f32.gmra.mrb[14].mxu0 %v5189_v26  ;;  %1835 = vmatmul.mubr.f32.gmra.mrb[14].mxu1 %v5189_v26  ;;  %v1390_v58 = vrot.slane %v5201_v34, 1  ;;  %v3782_v26 = vpack.c.bf16 %v1440_v50, %v1436_v14  ;;  %v3720_v4 = vpack.c.bf16 %v1447_v44, %v1443_v6  ;;  %v1388_v0 = vrot.slane %v5193_v16, 1  ;;  %v1451_v50 = vld [vmem:[%s6237_s3 + $0x108] sm:$0xff] }
 0x388   :  { %3715 = vmatpush1.bf16.msra.mxu0 %v3714_v9  ;;  %3779 = vmatpush1.bf16.msra.mxu1 %v3778_v22  ;;  %v5300_v20 = vsel %vm1377_vm2, %v1378_v28, %v1379_v49  ;;  %v5315_v37 = vsel %vm1377_vm2, %v1382_v23, %v1386_v25  ;;  %v5318_v9 = vsel %vm1377_vm2, %v1379_v49, %v1384_v32  ;;  %v1276_v14 = vand.u32 15, %v4481_v1  ;;  %v1453_v23 = vld [vmem:[%s6237_s3 + $0x118] sm:$0xff]  ;;  %v1454_v49 = vld [vmem:[%s6237_s3 + $0x120] sm:$0xff] }
 0x389   :  { %1751 = vmatprep.mubr.f32.mxu0 %v5199_v13  ;;  %1840 = vmatprep.mubr.f32.mxu1 %v5199_v13  ;;  %v5323_v22 = vsel %vm1377_vm2, %v1386_v25, %v1390_v58  ;;  %v3784_v13 = vpack.c.bf16 %v1449_v19, %v1445_v61  ;;  %v5330_v6 = vsel %vm1377_vm2, %v1384_v32, %v1388_v0  ;;  %v5333_v44 = vsel %vm1377_vm2, %v1388_v0, 0.0  ;;  %v1452_v61 = vld [vmem:[%s6237_s3 + $0x110] sm:$0xff]  ;;  %v1459_v19 = vld [vmem:[%s6237_s3 + $0x148] sm:$0xff] }
 0x38a   :  { %3717 = vmatprep.subr.bf16.mxu0 %v3716_v41  ;;  %3781 = vmatprep.subr.bf16.mxu1 %v3780_v38  ;;  %v1455_v41 = vld [vmem:[%s6237_s3 + $0x128] sm:$0xff]  ;;  %v1457_v38 = vld [vmem:[%s6237_s3 + $0x138] sm:$0xff]  ;;  %v3722_v0 = vpack.c.bf16 %v1446_v15, %v1442_v7  ;;  %v3786_v28 = vpack.c.bf16 %v1448_v45, %v1444_v42  ;;  %vm5363_vm3 = vcmp.ge.s32.totalorder %v1276_v14, 1  ;;  %v1458_v14 = vld [vmem:[%s6237_s3 + $0x140] sm:$0xff] }
 0x38b   :  { %1752 = vmatmul.mubr.f32.gmra.mrb[16].mxu0 %v5191_v31  ;;  %1841 = vmatmul.mubr.f32.gmra.mrb[16].mxu1 %v5191_v31  ;;  %v1450_v31 = vld [vmem:[%s6237_s3 + $0x100] sm:$0xff]  ;;  %v3724_v32 = vpack.c.bf16 %v1455_v41, %v1451_v50  ;;  %v1463_v7 = vld [vmem:[%s6237_s3 + $0x168] sm:$0xff]  ;;  %v1461_v15 = vld [vmem:[%s6237_s3 + $0x158] sm:$0xff] }
 0x38c   :  { %3719 = vmatpush1.bf16.msra.mxu0 %v3718_v51  ;;  %3783 = vmatpush1.bf16.msra.mxu1 %v3782_v26  ;;  %v1456_v51 = vld [vmem:[%s6237_s3 + $0x130] sm:$0xff]  ;;  %v3788_v26 = vpack.c.bf16 %v1457_v38, %v1453_v23  ;;  %v1465_v42 = vld [vmem:[%s6237_s3 + $0x178] sm:$0xff]  ;;  %v3726_v45 = vpack.c.bf16 %v1454_v49, %v1450_v31  ;;  %v1462_v50 = vld [vmem:[%s6237_s3 + $0x160] sm:$0xff] }
 0x38d   :  { %1757 = vmatprep.mubr.f32.mxu0 %v5201_v34  ;;  %1846 = vmatprep.mubr.f32.mxu1 %v5201_v34  ;;  %v3792_v11 = vpack.c.bf16 %v1465_v42, %v1461_v15  ;;  %v1464_v41 = vld [vmem:[%s6237_s3 + $0x170] sm:$0xff]  ;;  %v1467_v23 = vld [vmem:[%s6237_s3 + $0x188] sm:$0xff]  ;;  %v3730_v31 = vpack.c.bf16 %v1462_v50, %v1458_v14  ;;  %v1474_v50 = vld [vmem:[%s6237_s3 + $0x1c0] sm:$0xff] }
 0x38e   :  { %3721 = vmatprep.subr.bf16.mxu0 %v3720_v4  ;;  %3785 = vmatprep.subr.bf16.mxu1 %v3784_v13  ;;  %v1356_v4 = vsel %vm1332_vm1, 0.0, %v1334_v40  ;;  %v3790_v13 = vpack.c.bf16 %v1456_v51, %v1452_v61  ;;  %v1460_v40 = vld [vmem:[%s6237_s3 + $0x150] sm:$0xff]  ;;  %v1471_v38 = vld [vmem:[%s6237_s3 + $0x1a8] sm:$0xff]  ;;  %v1466_v61 = vld [vmem:[%s6237_s3 + $0x180] sm:$0xff] }
 0x38f   :  { %1758 = vmatmul.mubr.f32.gmra.mrb[18].mxu0 %v5193_v16  ;;  %1847 = vmatmul.mubr.f32.gmra.mrb[18].mxu1 %v5193_v16  ;;  %v3728_v16 = vpack.c.bf16 %v1463_v7, %v1459_v19  ;;  %v3794_v49 = vpack.c.bf16 %v1464_v41, %v1460_v40  ;;  %v1470_v51 = vld [vmem:[%s6237_s3 + $0x1a0] sm:$0xff]  ;;  %v3732_v19 = vpack.c.bf16 %v1471_v38, %v1467_v23  ;;  %v1472_v7 = vld [vmem:[%s6237_s3 + $0x1b0] sm:$0xff]  ;;  %v1475_v15 = vld [vmem:[%s6237_s3 + $0x1c8] sm:$0xff] }
 0x390   :  { %3723 = vmatpush1.bf16.msra.mxu0 %v3722_v0  ;;  %3787 = vmatpush1.bf16.msra.mxu1 %v3786_v28  ;;  %v1469_v0 = vld [vmem:[%s6237_s3 + $0x198] sm:$0xff]  ;;  %v1479_v42 = vld [vmem:[%s6237_s3 + $0x1e8] sm:$0xff]  ;;  %v1476_v41 = vld [vmem:[%s6237_s3 + $0x1d0] sm:$0xff] }
 0x391   :  { %2966 = vmatprep.mubr.msk.f32.mxu0 %vm5363_vm3, %v1356_v4  ;;  %2970 = vmatprep.mubr.msk.f32.mxu1 %vm5363_vm3, %v1356_v4  ;;  %v1473_v28 = vld [vmem:[%s6237_s3 + $0x1b8] sm:$0xff]  ;;  %v1480_v23 = vld [vmem:[%s6237_s3 + $0x1f0] sm:$0xff]  ;;  %v1483_v38 = vld [vmem:[%s6237_s3 + $0x208] sm:$0xff] }
 0x392   :  { %3725 = vmatprep.subr.bf16.mxu0 %v3724_v32  ;;  %3789 = vmatprep.subr.bf16.mxu1 %v3788_v26  ;;  %v3796_v32 = vpack.c.bf16 %v1473_v28, %v1469_v0  ;;  %v1468_v26 = vld [vmem:[%s6237_s3 + $0x190] sm:$0xff]  ;;  %v1477_v4 = vld [vmem:[%s6237_s3 + $0x1d8] sm:$0xff]  ;;  %v1487_v0 = vld [vmem:[%s6237_s3 + $0x228] sm:$0xff] }
 0x393   :  { %v3798_v14 = vpack.c.bf16 %v1472_v7, %v1468_v26  ;;  %v1485_v28 = vld [vmem:[%s6237_s3 + $0x218] sm:$0xff]  ;;  %v1484_v7 = vld [vmem:[%s6237_s3 + $0x210] sm:$0xff] }
 0x394   :  { %3727 = vmatpush1.bf16.msra.mxu0 %v3726_v45  ;;  %3791 = vmatpush1.bf16.msra.mxu1 %v3790_v13  ;;  %v1481_v45 = vld [vmem:[%s6237_s3 + $0x1f8] sm:$0xff]  ;;  %v3734_v13 = vpack.c.bf16 %v1470_v51, %v1466_v61  ;;  %v3802_v61 = vpack.c.bf16 %v1480_v23, %v1476_v41  ;;  %v1482_v51 = vld [vmem:[%s6237_s3 + $0x200] sm:$0xff]  ;;  %v1492_v23 = vld [vmem:[%s6237_s3 + $0x250] sm:$0xff] }
 0x395   :  { %3729 = vmatprep.subr.bf16.mxu0 %v3728_v16  ;;  %3793 = vmatprep.subr.bf16.mxu1 %v3792_v11  ;;  %v1478_v16 = vld [vmem:[%s6237_s3 + $0x1e0] sm:$0xff]  ;;  %v3736_v11 = vpack.c.bf16 %v1479_v42, %v1475_v15  ;;  %v3800_v40 = vpack.c.bf16 %v1481_v45, %v1477_v4  ;;  %v1488_v15 = vld [vmem:[%s6237_s3 + $0x230] sm:$0xff]  ;;  %v1491_v42 = vld [vmem:[%s6237_s3 + $0x248] sm:$0xff] }
 0x396   :  { %v1495_v4 = vld [vmem:[%s6237_s3 + $0x268] sm:$0xff]  ;;  %v1493_v45 = vld [vmem:[%s6237_s3 + $0x258] sm:$0xff] }
 0x398   :  { %3731 = vmatpush1.bf16.msra.mxu0 %v3730_v31  ;;  %3795 = vmatpush1.bf16.msra.mxu1 %v3794_v49  ;;  %v1489_v31 = vld [vmem:[%s6237_s3 + $0x238] sm:$0xff]  ;;  %v3738_v49 = vpack.c.bf16 %v1478_v16, %v1474_v50  ;;  %v3806_v50 = vpack.c.bf16 %v1488_v15, %v1484_v7  ;;  %v1490_v16 = vld [vmem:[%s6237_s3 + $0x240] sm:$0xff]  ;;  %v1500_v15 = vld [vmem:[%s6237_s3 + $0x290] sm:$0xff] }
 0x399   :  { %3733 = vmatprep.subr.bf16.mxu0 %v3732_v19  ;;  %3797 = vmatprep.subr.bf16.mxu1 %v3796_v32  ;;  %v1486_v19 = vld [vmem:[%s6237_s3 + $0x220] sm:$0xff]  ;;  %v3740_v32 = vpack.c.bf16 %v1487_v0, %v1483_v38  ;;  %v3804_v26 = vpack.c.bf16 %v1489_v31, %v1485_v28  ;;  %v1496_v38 = vld [vmem:[%s6237_s3 + $0x270] sm:$0xff]  ;;  %v1499_v0 = vld [vmem:[%s6237_s3 + $0x288] sm:$0xff] }
 0x39a   :  { %v1503_v28 = vld [vmem:[%s6237_s3 + $0x2a8] sm:$0xff]  ;;  %v1501_v31 = vld [vmem:[%s6237_s3 + $0x298] sm:$0xff] }
 0x39c   :  { %3735 = vmatpush1.bf16.msra.mxu0 %v3734_v13  ;;  %3799 = vmatpush1.bf16.msra.mxu1 %v3798_v14  ;;  %v1497_v13 = vld [vmem:[%s6237_s3 + $0x278] sm:$0xff]  ;;  %v3742_v14 = vpack.c.bf16 %v1486_v19, %v1482_v51  ;;  %v3810_v51 = vpack.c.bf16 %v1496_v38, %v1492_v23  ;;  %v1498_v19 = vld [vmem:[%s6237_s3 + $0x280] sm:$0xff]  ;;  %v1508_v38 = vld [vmem:[%s6237_s3 + $0x2d0] sm:$0xff] }
 0x39d   :  { %3737 = vmatprep.subr.bf16.mxu0 %v3736_v11  ;;  %3801 = vmatprep.subr.bf16.mxu1 %v3800_v40  ;;  %v1494_v11 = vld [vmem:[%s6237_s3 + $0x260] sm:$0xff]  ;;  %v3744_v40 = vpack.c.bf16 %v1495_v4, %v1491_v42  ;;  %v3808_v41 = vpack.c.bf16 %v1497_v13, %v1493_v45  ;;  %v1504_v42 = vld [vmem:[%s6237_s3 + $0x2b0] sm:$0xff]  ;;  %v1507_v4 = vld [vmem:[%s6237_s3 + $0x2c8] sm:$0xff] }
 0x39e   :  { %v1511_v45 = vld [vmem:[%s6237_s3 + $0x2e8] sm:$0xff]  ;;  %v1509_v13 = vld [vmem:[%s6237_s3 + $0x2d8] sm:$0xff] }
 0x3a0   :  { %3739 = vmatpush1.bf16.msra.mxu0 %v3738_v49  ;;  %3803 = vmatpush1.bf16.msra.mxu1 %v3802_v61  ;;  %v1505_v49 = vld [vmem:[%s6237_s3 + $0x2b8] sm:$0xff]  ;;  %v3746_v61 = vpack.c.bf16 %v1494_v11, %v1490_v16  ;;  %v3814_v16 = vpack.c.bf16 %v1504_v42, %v1500_v15  ;;  %v1506_v11 = vld [vmem:[%s6237_s3 + $0x2c0] sm:$0xff]  ;;  %v1516_v42 = vld [vmem:[%s6237_s3 + $0x310] sm:$0xff] }
 0x3a1   :  { %3741 = vmatprep.subr.bf16.mxu0 %v3740_v32  ;;  %3805 = vmatprep.subr.bf16.mxu1 %v3804_v26  ;;  %v1502_v32 = vld [vmem:[%s6237_s3 + $0x2a0] sm:$0xff]  ;;  %v3748_v26 = vpack.c.bf16 %v1503_v28, %v1499_v0  ;;  %v3812_v7 = vpack.c.bf16 %v1505_v49, %v1501_v31  ;;  %v1512_v0 = vld [vmem:[%s6237_s3 + $0x2f0] sm:$0xff]  ;;  %v1515_v28 = vld [vmem:[%s6237_s3 + $0x308] sm:$0xff] }
 0x3a2   :  { %v1519_v31 = vld [vmem:[%s6237_s3 + $0x328] sm:$0xff]  ;;  %v1517_v49 = vld [vmem:[%s6237_s3 + $0x318] sm:$0xff] }
 0x3a4   :  { %3743 = vmatpush1.bf16.msra.mxu0 %v3742_v14  ;;  %3807 = vmatpush1.bf16.msra.mxu1 %v3806_v50  ;;  %v1513_v14 = vld [vmem:[%s6237_s3 + $0x2f8] sm:$0xff]  ;;  %v3750_v50 = vpack.c.bf16 %v1502_v32, %v1498_v19  ;;  %v3818_v19 = vpack.c.bf16 %v1512_v0, %v1508_v38  ;;  %v1514_v32 = vld [vmem:[%s6237_s3 + $0x300] sm:$0xff]  ;;  %v1524_v0 = vld [vmem:[%s6237_s3 + $0x350] sm:$0xff] }
 0x3a5   :  { %3745 = vmatprep.subr.bf16.mxu0 %v3744_v40  ;;  %3809 = vmatprep.subr.bf16.mxu1 %v3808_v41  ;;  %v1510_v40 = vld [vmem:[%s6237_s3 + $0x2e0] sm:$0xff]  ;;  %v3752_v41 = vpack.c.bf16 %v1511_v45, %v1507_v4  ;;  %v3816_v23 = vpack.c.bf16 %v1513_v14, %v1509_v13  ;;  %v1520_v4 = vld [vmem:[%s6237_s3 + $0x330] sm:$0xff]  ;;  %v1523_v45 = vld [vmem:[%s6237_s3 + $0x348] sm:$0xff] }
 0x3a6   :  { %v1527_v13 = vld [vmem:[%s6237_s3 + $0x368] sm:$0xff]  ;;  %v1525_v14 = vld [vmem:[%s6237_s3 + $0x358] sm:$0xff] }
 0x3a8   :  { %3747 = vmatpush1.bf16.msra.mxu0 %v3746_v61  ;;  %3811 = vmatpush1.bf16.msra.mxu1 %v3810_v51  ;;  %v1521_v61 = vld [vmem:[%s6237_s3 + $0x338] sm:$0xff]  ;;  %v3754_v51 = vpack.c.bf16 %v1510_v40, %v1506_v11  ;;  %v3822_v11 = vpack.c.bf16 %v1520_v4, %v1516_v42  ;;  %v1522_v40 = vld [vmem:[%s6237_s3 + $0x340] sm:$0xff]  ;;  %v1532_v4 = vld [vmem:[%s6237_s3 + $0x390] sm:$0xff] }
 0x3a9   :  { %3749 = vmatprep.subr.bf16.mxu0 %v3748_v26  ;;  %3813 = vmatprep.subr.bf16.mxu1 %v3812_v7  ;;  %v1518_v26 = vld [vmem:[%s6237_s3 + $0x320] sm:$0xff]  ;;  %v3756_v7 = vpack.c.bf16 %v1519_v31, %v1515_v28  ;;  %v3820_v15 = vpack.c.bf16 %v1521_v61, %v1517_v49  ;;  %v1528_v28 = vld [vmem:[%s6237_s3 + $0x370] sm:$0xff]  ;;  %v1531_v31 = vld [vmem:[%s6237_s3 + $0x388] sm:$0xff] }
 0x3aa   :  { %v1535_v49 = vld [vmem:[%s6237_s3 + $0x3a8] sm:$0xff]  ;;  %v1533_v61 = vld [vmem:[%s6237_s3 + $0x398] sm:$0xff] }
 0x3ac   :  { %3751 = vmatpush1.bf16.msra.mxu0 %v3750_v50  ;;  %3815 = vmatpush1.bf16.msra.mxu1 %v3814_v16  ;;  %v1529_v50 = vld [vmem:[%s6237_s3 + $0x378] sm:$0xff]  ;;  %v3758_v16 = vpack.c.bf16 %v1518_v26, %v1514_v32  ;;  %v3826_v32 = vpack.c.bf16 %v1528_v28, %v1524_v0  ;;  %v1530_v26 = vld [vmem:[%s6237_s3 + $0x380] sm:$0xff]  ;;  %v1540_v28 = vld [vmem:[%s6237_s3 + $0x3d0] sm:$0xff] }
 0x3ad   :  { %3753 = vmatprep.subr.bf16.mxu0 %v3752_v41  ;;  %3817 = vmatprep.subr.bf16.mxu1 %v3816_v23  ;;  %v1526_v41 = vld [vmem:[%s6237_s3 + $0x360] sm:$0xff]  ;;  %v3760_v23 = vpack.c.bf16 %v1527_v13, %v1523_v45  ;;  %v3824_v38 = vpack.c.bf16 %v1529_v50, %v1525_v14  ;;  %v1536_v45 = vld [vmem:[%s6237_s3 + $0x3b0] sm:$0xff]  ;;  %v1539_v13 = vld [vmem:[%s6237_s3 + $0x3c8] sm:$0xff] }
 0x3ae   :  { %v1543_v14 = vld [vmem:[%s6237_s3 + $0x3e8] sm:$0xff]  ;;  %v1541_v50 = vld [vmem:[%s6237_s3 + $0x3d8] sm:$0xff] }
 0x3b0   :  { %3755 = vmatpush1.bf16.msra.mxu0 %v3754_v51  ;;  %3819 = vmatpush1.bf16.msra.mxu1 %v3818_v19  ;;  %v1537_v51 = vld [vmem:[%s6237_s3 + $0x3b8] sm:$0xff]  ;;  %v3762_v19 = vpack.c.bf16 %v1526_v41, %v1522_v40  ;;  %v3830_v40 = vpack.c.bf16 %v1536_v45, %v1532_v4  ;;  %v1538_v41 = vld [vmem:[%s6237_s3 + $0x3c0] sm:$0xff]  ;;  %v1270_v45 = vadd.s32 16, %v4481_v1 }
 0x3b1   :  { %3757 = vmatprep.subr.bf16.mxu0 %v3756_v7  ;;  %3821 = vmatprep.subr.bf16.mxu1 %v3820_v15  ;;  %v1534_v7 = vld [vmem:[%s6237_s3 + $0x3a0] sm:$0xff]  ;;  %v3764_v15 = vpack.c.bf16 %v1535_v49, %v1531_v31  ;;  %v3828_v42 = vpack.c.bf16 %v1537_v51, %v1533_v61  ;;  %v1544_v31 = vld [vmem:[%s6237_s3 + $0x3f0] sm:$0xff]  ;;  %v2975_v49 = vld [vmem:[%s6237_s3 + $0x808] sm:$0xff] }
 0x3b2   :  { %v2979_v61 = vld [vmem:[%s6237_s3 + $0x828] sm:$0xff]  ;;  %v2977_v51 = vld [vmem:[%s6237_s3 + $0x818] sm:$0xff]  ;;  %v2978_v4 = vld [vmem:[%s6237_s3 + $0x820] sm:$0xff] }
 0x3b4   :  { %3759 = vmatpush1.bf16.msra.mxu0 %v3758_v16  ;;  %3823 = vmatpush1.bf16.msra.mxu1 %v3822_v11  ;;  %v1545_v16 = vld [vmem:[%s6237_s3 + $0x3f8] sm:$0xff]  ;;  %v3766_v11 = vpack.c.bf16 %v1534_v7, %v1530_v26  ;;  %v3834_v26 = vpack.c.bf16 %v1544_v31, %v1540_v28  ;;  %v3836_v7 = vpack.c.bf16 %v2979_v61, %v2975_v49  ;;  %v2986_v28 = vld [vmem:[%s6237_s3 + $0x860] sm:$0xff]  ;;  %v1355_v31 = vsel %vm1332_vm1, 0.0, %v1333_v12 }
 0x3b5   :  { %3761 = vmatprep.subr.bf16.mxu0 %v3760_v23  ;;  %3825 = vmatprep.subr.bf16.mxu1 %v3824_v38  ;;  %v1542_v23 = vld [vmem:[%s6237_s3 + $0x3e0] sm:$0xff]  ;;  %v3768_v38 = vpack.c.bf16 %v1543_v14, %v1539_v13  ;;  %v3832_v0 = vpack.c.bf16 %v1545_v16, %v1541_v50  ;;  %v2976_v13 = vld [vmem:[%s6237_s3 + $0x810] sm:$0xff]  ;;  %v2983_v50 = vld [vmem:[%s6237_s3 + $0x848] sm:$0xff] }
 0x3b6   :  { %v2980_v14 = vld [vmem:[%s6237_s3 + $0x830] sm:$0xff]  ;;  %v2987_v16 = vld [vmem:[%s6237_s3 + $0x868] sm:$0xff]  ;;  %v2993_v12 = vld [vmem:[%s6237_s3 + $0x898] sm:$0xff] }
 0x3b7   :  { %v3840_v49 = vpack.c.bf16 %v2987_v16, %v2983_v50  ;;  %v2999_v50 = vld [vmem:[%s6237_s3 + $0x8c8] sm:$0xff] }
 0x3b8   :  { %3763 = vmatpush1.bf16.msra.mxu0 %v3762_v19  ;;  %3827 = vmatpush1.bf16.msra.mxu1 %v3826_v32  ;;  %v2981_v19 = vld [vmem:[%s6237_s3 + $0x838] sm:$0xff]  ;;  %v3770_v32 = vpack.c.bf16 %v1542_v23, %v1538_v41  ;;  %v3902_v23 = vpack.c.bf16 %v2980_v14, %v2976_v13  ;;  %v2992_v13 = vld [vmem:[%s6237_s3 + $0x890] sm:$0xff]  ;;  %v3003_v16 = vld [vmem:[%s6237_s3 + $0x8e8] sm:$0xff] }
 0x3b9   :  { %3765 = vmatprep.subr.bf16.mxu0 %v3764_v15  ;;  %3829 = vmatprep.subr.bf16.mxu1 %v3828_v42  ;;  %v3900_v15 = vpack.c.bf16 %v2981_v19, %v2977_v51  ;;  %v2974_v42 = vld [vmem:[%s6237_s3 + $0x800] sm:$0xff]  ;;  %v2984_v51 = vld [vmem:[%s6237_s3 + $0x850] sm:$0xff] }
 0x3ba   :  { %v3838_v41 = vpack.c.bf16 %v2978_v4, %v2974_v42  ;;  %v2988_v19 = vld [vmem:[%s6237_s3 + $0x870] sm:$0xff]  ;;  %v2990_v42 = vld [vmem:[%s6237_s3 + $0x880] sm:$0xff] }
 0x3bb   :  { %v2994_v4 = vld [vmem:[%s6237_s3 + $0x8a0] sm:$0xff]  ;;  %v2996_v14 = vld [vmem:[%s6237_s3 + $0x8b0] sm:$0xff] }
 0x3bc   :  { %3767 = vmatpush1.bf16.msra.mxu0 %v3766_v11  ;;  %3831 = vmatpush1.bf16.msra.mxu1 %v3830_v40  ;;  %v2985_v11 = vld [vmem:[%s6237_s3 + $0x858] sm:$0xff] }
 0x3bd   :  { %3769 = vmatprep.subr.bf16.mxu0 %v3768_v38  ;;  %3833 = vmatprep.subr.bf16.mxu1 %v3832_v0  ;;  %v2989_v40 = vld [vmem:[%s6237_s3 + $0x878] sm:$0xff]  ;;  %v1290_v38 = vand.u32 15, %v1270_v45  ;;  %v2982_v0 = vld [vmem:[%s6237_s3 + $0x840] sm:$0xff] }
 0x3be   :  { %v3904_v61 = vpack.c.bf16 %v2989_v40, %v2985_v11  ;;  %v3001_v11 = vld [vmem:[%s6237_s3 + $0x8d8] sm:$0xff] }
 0x3bf   :  { %vm5707_vm4 = vcmp.ge.s32.totalorder %v1290_v38, 1  ;;  %v3005_v40 = vld [vmem:[%s6237_s3 + $0x8f8] sm:$0xff]  ;;  %v3002_v38 = vld [vmem:[%s6237_s3 + $0x8e0] sm:$0xff] }
 0x3c0   :  { %3771 = vmatpush1.bf16.msra.mxu0 %v3770_v32  ;;  %3835 = vmatpush1.bf16.msra.mxu1 %v3834_v26  ;;  %v2991_v32 = vld [vmem:[%s6237_s3 + $0x888] sm:$0xff]  ;;  %v2997_v26 = vld [vmem:[%s6237_s3 + $0x8b8] sm:$0xff] }
 0x3c1   :  { %3837 = vmatprep.subr.bf16.mxu0 %v3836_v7  ;;  %3901 = vmatprep.subr.bf16.mxu1 %v3900_v15  ;;  %v3842_v7 = vpack.c.bf16 %v2986_v28, %v2982_v0  ;;  %v3906_v15 = vpack.c.bf16 %v2988_v19, %v2984_v51  ;;  %v3844_v45 = vpack.c.bf16 %v2995_v46, %v2991_v32  ;;  %v3009_v51 = vld [vmem:[%s6237_s3 + $0x918] sm:$0xff]  ;;  %v3006_v46 = vld [vmem:[%s6237_s3 + $0x900] sm:$0xff] }
 0x3c2   :  { %v3848_v0 = vpack.c.bf16 %v3003_v16, %v2999_v50  ;;  %v3912_v28 = vpack.c.bf16 %v3005_v40, %v3001_v11  ;;  %v3013_v19 = vld [vmem:[%s6237_s3 + $0x938] sm:$0xff]  ;;  %v3020_v11 = vld [vmem:[%s6237_s3 + $0x970] sm:$0xff]  ;;  %v3023_v40 = vld [vmem:[%s6237_s3 + $0x988] sm:$0xff] }
 0x3c3   :  { %2967 = vmatmul.mubr.msk.f32.vlgmr.msra.gmra.mrb[12].mxu0 %vm5363_vm3, %v1355_v31  ;;  %2971 = vmatmul.mubr.msk.f32.vlgmr.msra.gmra.mrb[12].mxu1 %vm5363_vm3, %v1355_v31  ;;  %v3004_v31 = vld [vmem:[%s6237_s3 + $0x8f0] sm:$0xff]  ;;  %v3916_v25 = vpack.c.bf16 %v3013_v19, %v3009_v51  ;;  %v3031_v19 = vld [vmem:[%s6237_s3 + $0x9c8] sm:$0xff] }
 0x3c4   :  { %1923 = vmatprep.mubr.f32.mxu0 %v5252_v55  ;;  %2012 = vmatprep.mubr.f32.mxu1 %v5252_v55  ;;  %v3908_v55 = vpack.c.bf16 %v2997_v26, %v2993_v12  ;;  %v3010_v12 = vld [vmem:[%s6237_s3 + $0x920] sm:$0xff]  ;;  %v3028_v51 = vld [vmem:[%s6237_s3 + $0x9b0] sm:$0xff] }
 0x3c5   :  { %3839 = vmatpush1.bf16.msra.mxu0 %v3838_v41  ;;  %3903 = vmatpush1.bf16.msra.mxu1 %v3902_v23  ;;  %v3910_v41 = vpack.c.bf16 %v2996_v14, %v2992_v13  ;;  %v2998_v23 = vld [vmem:[%s6237_s3 + $0x8c0] sm:$0xff] }
 0x3c6   :  { %3841 = vmatprep.subr.bf16.mxu0 %v3840_v49  ;;  %3905 = vmatprep.subr.bf16.mxu1 %v3904_v61  ;;  %v3007_v49 = vld [vmem:[%s6237_s3 + $0x908] sm:$0xff]  ;;  %v3850_v32 = vpack.c.bf16 %v3002_v38, %v2998_v23  ;;  %v3014_v13 = vld [vmem:[%s6237_s3 + $0x940] sm:$0xff]  ;;  %v3029_v23 = vld [vmem:[%s6237_s3 + $0x9b8] sm:$0xff] }
 0x3c7   :  { %1924 = vmatmul.mubr.f32.gmra.mrb[14].mxu0 %v5238_v52  ;;  %2013 = vmatmul.mubr.f32.gmra.mrb[14].mxu1 %v5238_v52  ;;  %v3846_v52 = vpack.c.bf16 %v2994_v4, %v2990_v42  ;;  %v3011_v61 = vld [vmem:[%s6237_s3 + $0x928] sm:$0xff]  ;;  %v3017_v4 = vld [vmem:[%s6237_s3 + $0x958] sm:$0xff]  ;;  %v3018_v14 = vld [vmem:[%s6237_s3 + $0x960] sm:$0xff] }
 0x3c8   :  { %2968 = vmatprep.mubr.msk.f32.mxu0 %vm5707_vm4, %v5255_v62  ;;  %2972 = vmatprep.mubr.msk.f32.mxu1 %vm5707_vm4, %v5255_v62  ;;  %v3000_v62 = vld [vmem:[%s6237_s3 + $0x8d0] sm:$0xff]  ;;  %v3852_v26 = vpack.c.bf16 %v3011_v61, %v3007_v49  ;;  %v3019_v42 = vld [vmem:[%s6237_s3 + $0x968] sm:$0xff]  ;;  %v3858_v38 = vpack.c.bf16 %v3018_v14, %v3014_v13  ;;  %v3045_v13 = vld [vmem:[%s6237_s3 + $0xa38] sm:$0xff] }
 0x3c9   :  { %3843 = vmatpush1.bf16.msra.mxu0 %v3842_v7  ;;  %3907 = vmatpush1.bf16.msra.mxu1 %v3906_v15  ;;  %v3012_v7 = vld [vmem:[%s6237_s3 + $0x930] sm:$0xff]  ;;  %v3015_v15 = vld [vmem:[%s6237_s3 + $0x948] sm:$0xff] }
 0x3ca   :  { %3845 = vmatprep.subr.bf16.mxu0 %v3844_v45  ;;  %3909 = vmatprep.subr.bf16.mxu1 %v3908_v55  ;;  %v3021_v45 = vld [vmem:[%s6237_s3 + $0x978] sm:$0xff]  ;;  %v3854_v55 = vpack.c.bf16 %v3010_v12, %v3006_v46  ;;  %v3856_v50 = vpack.c.bf16 %v3019_v42, %v3015_v15  ;;  %v3024_v61 = vld [vmem:[%s6237_s3 + $0x990] sm:$0xff] }
 0x3cb   :  { %2969 = vmatmul.mubr.msk.f32.gmra.mrb[16].mxu0 %vm5707_vm4, %v5241_v10  ;;  %2973 = vmatmul.mubr.msk.f32.gmra.mrb[16].mxu1 %vm5707_vm4, %v5241_v10  ;;  %v3914_v10 = vpack.c.bf16 %v3004_v31, %v3000_v62  ;;  %v3920_v16 = vpack.c.bf16 %v3021_v45, %v3017_v4  ;;  %v3026_v62 = vld [vmem:[%s6237_s3 + $0x9a0] sm:$0xff]  ;;  %v3037_v46 = vld [vmem:[%s6237_s3 + $0x9f8] sm:$0xff]  ;;  %v3032_v42 = vld [vmem:[%s6237_s3 + $0x9d0] sm:$0xff] }
 0x3cc   :  { %1935 = vmatprep.mubr.f32.mxu0 %v5258_v17  ;;  %2024 = vmatprep.mubr.f32.mxu1 %v5258_v17  ;;  %v3008_v17 = vld [vmem:[%s6237_s3 + $0x910] sm:$0xff]  ;;  %v3039_v45 = vld [vmem:[%s6237_s3 + $0xa08] sm:$0xff] }
 0x3cd   :  { %3847 = vmatpush1.bf16.msra.mxu0 %v3846_v52  ;;  %3911 = vmatpush1.bf16.msra.mxu1 %v3910_v41  ;;  %v3027_v52 = vld [vmem:[%s6237_s3 + $0x9a8] sm:$0xff]  ;;  %v3025_v41 = vld [vmem:[%s6237_s3 + $0x998] sm:$0xff]  ;;  %v3036_v4 = vld [vmem:[%s6237_s3 + $0x9f0] sm:$0xff] }
 0x3ce   :  { %3849 = vmatprep.subr.bf16.mxu0 %v3848_v0  ;;  %3913 = vmatprep.subr.bf16.mxu1 %v3912_v28  ;;  %v3022_v28 = vld [vmem:[%s6237_s3 + $0x980] sm:$0xff]  ;;  %v3860_v31 = vpack.c.bf16 %v3027_v52, %v3023_v40  ;;  %v3924_v49 = vpack.c.bf16 %v3029_v23, %v3025_v41  ;;  %v3040_v52 = vld [vmem:[%s6237_s3 + $0xa10] sm:$0xff]  ;;  %v3047_v23 = vld [vmem:[%s6237_s3 + $0xa48] sm:$0xff] }
 0x3cf   :  { %1936 = vmatmul.mubr.f32.gmra.mrb[18].mxu0 %v5244_v57  ;;  %2025 = vmatmul.mubr.f32.gmra.mrb[18].mxu1 %v5244_v57  ;;  %v3918_v57 = vpack.c.bf16 %v3012_v7, %v3008_v17  ;;  %v3862_v12 = vpack.c.bf16 %v3026_v62, %v3022_v28  ;;  %v3034_v17 = vld [vmem:[%s6237_s3 + $0x9e0] sm:$0xff]  ;;  %v3044_v41 = vld [vmem:[%s6237_s3 + $0xa30] sm:$0xff]  ;;  %v3053_v28 = vld [vmem:[%s6237_s3 + $0xa78] sm:$0xff] }
 0x3d0   :  { %2224 = vmatprep.mubr.f32.mxu0 %v5285_v56  ;;  %2313 = vmatprep.mubr.f32.mxu1 %v5285_v56  ;;  %v3016_v56 = vld [vmem:[%s6237_s3 + $0x950] sm:$0xff] }
 0x3d1   :  { %3851 = vmatpush1.bf16.msra.mxu0 %v3850_v32  ;;  %3915 = vmatpush1.bf16.msra.mxu1 %v3914_v10  ;;  %v3922_v0 = vpack.c.bf16 %v3020_v11, %v3016_v56  ;;  %v3035_v32 = vld [vmem:[%s6237_s3 + $0x9e8] sm:$0xff]  ;;  %v3033_v10 = vld [vmem:[%s6237_s3 + $0x9d8] sm:$0xff]  ;;  %v3042_v56 = vld [vmem:[%s6237_s3 + $0xa20] sm:$0xff] }
 0x3d2   :  { %3853 = vmatprep.subr.bf16.mxu0 %v3852_v26  ;;  %3917 = vmatprep.subr.bf16.mxu1 %v3916_v25  ;;  %v3926_v26 = vpack.c.bf16 %v3028_v51, %v3024_v61  ;;  %v3030_v25 = vld [vmem:[%s6237_s3 + $0x9c0] sm:$0xff]  ;;  %v3864_v7 = vpack.c.bf16 %v3035_v32, %v3031_v19  ;;  %v3928_v15 = vpack.c.bf16 %v3037_v46, %v3033_v10  ;;  %v3048_v32 = vld [vmem:[%s6237_s3 + $0xa50] sm:$0xff]  ;;  %v3055_v46 = vld [vmem:[%s6237_s3 + $0xa88] sm:$0xff] }
 0x3d3   :  { %v3866_v14 = vpack.c.bf16 %v3034_v17, %v3030_v25  ;;  %v3050_v61 = vld [vmem:[%s6237_s3 + $0xa60] sm:$0xff]  ;;  %v3052_v10 = vld [vmem:[%s6237_s3 + $0xa70] sm:$0xff]  ;;  %v3061_v25 = vld [vmem:[%s6237_s3 + $0xab8] sm:$0xff] }
 0x3d5   :  { %3855 = vmatpush1.bf16.msra.mxu0 %v3854_v55  ;;  %3919 = vmatpush1.bf16.msra.mxu1 %v3918_v57  ;;  %v3043_v55 = vld [vmem:[%s6237_s3 + $0xa28] sm:$0xff]  ;;  %v3041_v57 = vld [vmem:[%s6237_s3 + $0xa18] sm:$0xff] }
 0x3d6   :  { %3857 = vmatprep.subr.bf16.mxu0 %v3856_v50  ;;  %3921 = vmatprep.subr.bf16.mxu1 %v3920_v16  ;;  %v3930_v50 = vpack.c.bf16 %v3036_v4, %v3032_v42  ;;  %v3038_v16 = vld [vmem:[%s6237_s3 + $0xa00] sm:$0xff]  ;;  %v3868_v11 = vpack.c.bf16 %v3043_v55, %v3039_v45  ;;  %v3932_v40 = vpack.c.bf16 %v3045_v13, %v3041_v57  ;;  %v3056_v55 = vld [vmem:[%s6237_s3 + $0xa90] sm:$0xff]  ;;  %v3063_v13 = vld [vmem:[%s6237_s3 + $0xac8] sm:$0xff] }
 0x3d7   :  { %v3870_v62 = vpack.c.bf16 %v3042_v56, %v3038_v16  ;;  %v3058_v42 = vld [vmem:[%s6237_s3 + $0xaa0] sm:$0xff]  ;;  %v3060_v57 = vld [vmem:[%s6237_s3 + $0xab0] sm:$0xff]  ;;  %v3069_v16 = vld [vmem:[%s6237_s3 + $0xaf8] sm:$0xff] }
 0x3d9   :  { %3859 = vmatpush1.bf16.msra.mxu0 %v3858_v38  ;;  %3923 = vmatpush1.bf16.msra.mxu1 %v3922_v0  ;;  %v3051_v38 = vld [vmem:[%s6237_s3 + $0xa68] sm:$0xff]  ;;  %v3049_v0 = vld [vmem:[%s6237_s3 + $0xa58] sm:$0xff] }
 0x3da   :  { %3861 = vmatprep.subr.bf16.mxu0 %v3860_v31  ;;  %3925 = vmatprep.subr.bf16.mxu1 %v3924_v49  ;;  %v3934_v31 = vpack.c.bf16 %v3044_v41, %v3040_v52  ;;  %v3046_v49 = vld [vmem:[%s6237_s3 + $0xa40] sm:$0xff]  ;;  %v3872_v51 = vpack.c.bf16 %v3051_v38, %v3047_v23  ;;  %v3936_v19 = vpack.c.bf16 %v3053_v28, %v3049_v0  ;;  %v3064_v38 = vld [vmem:[%s6237_s3 + $0xad0] sm:$0xff]  ;;  %v3071_v28 = vld [vmem:[%s6237_s3 + $0xb08] sm:$0xff] }
 0x3db   :  { %v3874_v17 = vpack.c.bf16 %v3050_v61, %v3046_v49  ;;  %v3066_v52 = vld [vmem:[%s6237_s3 + $0xae0] sm:$0xff]  ;;  %v3068_v0 = vld [vmem:[%s6237_s3 + $0xaf0] sm:$0xff]  ;;  %v3077_v49 = vld [vmem:[%s6237_s3 + $0xb38] sm:$0xff] }
 0x3dd   :  { %3863 = vmatpush1.bf16.msra.mxu0 %v3862_v12  ;;  %3927 = vmatpush1.bf16.msra.mxu1 %v3926_v26  ;;  %v3059_v12 = vld [vmem:[%s6237_s3 + $0xaa8] sm:$0xff]  ;;  %v3057_v26 = vld [vmem:[%s6237_s3 + $0xa98] sm:$0xff] }
 0x3de   :  { %3865 = vmatprep.subr.bf16.mxu0 %v3864_v7  ;;  %3929 = vmatprep.subr.bf16.mxu1 %v3928_v15  ;;  %v3938_v7 = vpack.c.bf16 %v3052_v10, %v3048_v32  ;;  %v3054_v15 = vld [vmem:[%s6237_s3 + $0xa80] sm:$0xff]  ;;  %v3876_v4 = vpack.c.bf16 %v3059_v12, %v3055_v46  ;;  %v3940_v45 = vpack.c.bf16 %v3061_v25, %v3057_v26  ;;  %v3072_v12 = vld [vmem:[%s6237_s3 + $0xb10] sm:$0xff]  ;;  %v3079_v25 = vld [vmem:[%s6237_s3 + $0xb48] sm:$0xff] }
 0x3df   :  { %v3878_v56 = vpack.c.bf16 %v3058_v42, %v3054_v15  ;;  %v3074_v32 = vld [vmem:[%s6237_s3 + $0xb20] sm:$0xff]  ;;  %v3076_v26 = vld [vmem:[%s6237_s3 + $0xb30] sm:$0xff]  ;;  %v3085_v15 = vld [vmem:[%s6237_s3 + $0xb78] sm:$0xff] }
 0x3e1   :  { %3867 = vmatpush1.bf16.msra.mxu0 %v3866_v14  ;;  %3931 = vmatpush1.bf16.msra.mxu1 %v3930_v50  ;;  %v3067_v14 = vld [vmem:[%s6237_s3 + $0xae8] sm:$0xff]  ;;  %v3065_v50 = vld [vmem:[%s6237_s3 + $0xad8] sm:$0xff] }
 0x3e2   :  { %3869 = vmatprep.subr.bf16.mxu0 %v3868_v11  ;;  %3933 = vmatprep.subr.bf16.mxu1 %v3932_v40  ;;  %v3942_v11 = vpack.c.bf16 %v3060_v57, %v3056_v55  ;;  %v3062_v40 = vld [vmem:[%s6237_s3 + $0xac0] sm:$0xff]  ;;  %v3880_v41 = vpack.c.bf16 %v3067_v14, %v3063_v13  ;;  %v3944_v23 = vpack.c.bf16 %v3069_v16, %v3065_v50  ;;  %v3080_v14 = vld [vmem:[%s6237_s3 + $0xb50] sm:$0xff]  ;;  %v3087_v16 = vld [vmem:[%s6237_s3 + $0xb88] sm:$0xff] }
 0x3e3   :  { %v3882_v61 = vpack.c.bf16 %v3066_v52, %v3062_v40  ;;  %v3082_v55 = vld [vmem:[%s6237_s3 + $0xb60] sm:$0xff]  ;;  %v3084_v50 = vld [vmem:[%s6237_s3 + $0xb70] sm:$0xff]  ;;  %v3093_v40 = vld [vmem:[%s6237_s3 + $0xbb8] sm:$0xff] }
 0x3e5   :  { %3871 = vmatpush1.bf16.msra.mxu0 %v3870_v62  ;;  %3935 = vmatpush1.bf16.msra.mxu1 %v3934_v31  ;;  %v3075_v62 = vld [vmem:[%s6237_s3 + $0xb28] sm:$0xff]  ;;  %v3073_v31 = vld [vmem:[%s6237_s3 + $0xb18] sm:$0xff] }
 0x3e6   :  { %3873 = vmatprep.subr.bf16.mxu0 %v3872_v51  ;;  %3937 = vmatprep.subr.bf16.mxu1 %v3936_v19  ;;  %v3946_v51 = vpack.c.bf16 %v3068_v0, %v3064_v38  ;;  %v3070_v19 = vld [vmem:[%s6237_s3 + $0xb00] sm:$0xff]  ;;  %v3884_v10 = vpack.c.bf16 %v3075_v62, %v3071_v28  ;;  %v3948_v46 = vpack.c.bf16 %v3077_v49, %v3073_v31  ;;  %v3088_v62 = vld [vmem:[%s6237_s3 + $0xb90] sm:$0xff]  ;;  %v3095_v49 = vld [vmem:[%s6237_s3 + $0xbc8] sm:$0xff] }
 0x3e7   :  { %v3886_v42 = vpack.c.bf16 %v3074_v32, %v3070_v19  ;;  %v3090_v38 = vld [vmem:[%s6237_s3 + $0xba0] sm:$0xff]  ;;  %v3092_v31 = vld [vmem:[%s6237_s3 + $0xbb0] sm:$0xff]  ;;  %v3101_v19 = vld [vmem:[%s6237_s3 + $0xbf8] sm:$0xff] }
 0x3e9   :  { %3875 = vmatpush1.bf16.msra.mxu0 %v3874_v17  ;;  %3939 = vmatpush1.bf16.msra.mxu1 %v3938_v7  ;;  %v3083_v17 = vld [vmem:[%s6237_s3 + $0xb68] sm:$0xff]  ;;  %v3081_v7 = vld [vmem:[%s6237_s3 + $0xb58] sm:$0xff] }
 0x3ea   :  { %3877 = vmatprep.subr.bf16.mxu0 %v3876_v4  ;;  %3941 = vmatprep.subr.bf16.mxu1 %v3940_v45  ;;  %v3950_v4 = vpack.c.bf16 %v3076_v26, %v3072_v12  ;;  %v3078_v45 = vld [vmem:[%s6237_s3 + $0xb40] sm:$0xff]  ;;  %v3888_v57 = vpack.c.bf16 %v3083_v17, %v3079_v25  ;;  %v3952_v13 = vpack.c.bf16 %v3085_v15, %v3081_v7  ;;  %v3096_v17 = vld [vmem:[%s6237_s3 + $0xbd0] sm:$0xff]  ;;  %v1269_v15 = vadd.s32 8, %v4481_v1 }
 0x3eb   :  { %v3890_v52 = vpack.c.bf16 %v3082_v55, %v3078_v45  ;;  %v3098_v25 = vld [vmem:[%s6237_s3 + $0xbe0] sm:$0xff]  ;;  %v3100_v7 = vld [vmem:[%s6237_s3 + $0xbf0] sm:$0xff]  ;;  %v1271_v55 = vadd.s32 24, %v4481_v1 }
 0x3ec   :  { %v1283_v45 = vand.u32 15, %v1269_v15 }
 0x3ed   :  { %3879 = vmatpush1.bf16.msra.mxu0 %v3878_v56  ;;  %3943 = vmatpush1.bf16.msra.mxu1 %v3942_v11  ;;  %v3091_v56 = vld [vmem:[%s6237_s3 + $0xba8] sm:$0xff]  ;;  %v3089_v11 = vld [vmem:[%s6237_s3 + $0xb98] sm:$0xff] }
 0x3ee   :  { %3881 = vmatprep.subr.bf16.mxu0 %v3880_v41  ;;  %3945 = vmatprep.subr.bf16.mxu1 %v3944_v23  ;;  %v3954_v41 = vpack.c.bf16 %v3084_v50, %v3080_v14  ;;  %v3086_v23 = vld [vmem:[%s6237_s3 + $0xb80] sm:$0xff]  ;;  %v3892_v0 = vpack.c.bf16 %v3091_v56, %v3087_v16  ;;  %v3956_v28 = vpack.c.bf16 %v3093_v40, %v3089_v11  ;;  %vm1374_vm5 = vcmp.le.s32.totalorder %v1283_v45, 14 }
 0x3ef   :  { %v3894_v32 = vpack.c.bf16 %v3090_v38, %v3086_v23 }
 0x3f1   :  { %3883 = vmatpush1.bf16.msra.mxu0 %v3882_v61  ;;  %3947 = vmatpush1.bf16.msra.mxu1 %v3946_v51  ;;  %v3099_v61 = vld [vmem:[%s6237_s3 + $0xbe8] sm:$0xff]  ;;  %v3097_v51 = vld [vmem:[%s6237_s3 + $0xbd8] sm:$0xff] }
 0x3f2   :  { %3885 = vmatprep.subr.bf16.mxu0 %v3884_v10  ;;  %3949 = vmatprep.subr.bf16.mxu1 %v3948_v46  ;;  %v3958_v10 = vpack.c.bf16 %v3092_v31, %v3088_v62  ;;  %v3094_v46 = vld [vmem:[%s6237_s3 + $0xbc0] sm:$0xff]  ;;  %v3896_v12 = vpack.c.bf16 %v3099_v61, %v3095_v49  ;;  %v3960_v26 = vpack.c.bf16 %v3101_v19, %v3097_v51 }
 0x3f5   :  { %3887 = vmatpush1.bf16.msra.mxu0 %v3886_v42  ;;  %3951 = vmatpush1.bf16.msra.mxu1 %v3950_v4  ;;  %v3898_v42 = vpack.c.bf16 %v3098_v25, %v3094_v46  ;;  %v3962_v4 = vpack.c.bf16 %v3100_v7, %v3096_v17 }
 0x3f6   :  { %3889 = vmatprep.subr.bf16.mxu0 %v3888_v57  ;;  %3953 = vmatprep.subr.bf16.mxu1 %v3952_v13  ;;  %v1297_v57 = vand.u32 15, %v1271_v55 }
 0x3f8   :  { %vm1376_vm6 = vcmp.le.s32.totalorder %v1297_v57, 14 }
 0x3f9   :  { %3891 = vmatpush1.bf16.msra.mxu0 %v3890_v52  ;;  %3955 = vmatpush1.bf16.msra.mxu1 %v3954_v41 }
 0x3fa   :  { %3893 = vmatprep.subr.bf16.mxu0 %v3892_v0  ;;  %3957 = vmatprep.subr.bf16.mxu1 %v3956_v28 }
 0x3fd   :  { %3895 = vmatpush1.bf16.msra.mxu0 %v3894_v32  ;;  %3959 = vmatpush1.bf16.msra.mxu1 %v3958_v10 }
 0x3fe   :  { %3897 = vmatprep.subr.bf16.mxu0 %v3896_v12  ;;  %3961 = vmatprep.subr.bf16.mxu1 %v3960_v26 }
 0x401   :  { %3899 = vmatpush1.bf16.msra.mxu0 %v3898_v42  ;;  %3963 = vmatpush1.bf16.msra.mxu1 %v3962_v4 }
 0x402   :  { %3965 = vmatprep.subr.bf16.mxu0 %v4327_v18  ;;  %3997 = vmatprep.subr.bf16.mxu1 %v4327_v18  ;;  %v1401_v18 = vsel %vm1377_vm2, %v1390_v58, 0.0 }
 0x404   :  { %2225 = vmatmul.mubr.f32.vlgmr.msra.gmra.mrb[12].mxu0 %v5300_v20  ;;  %2314 = vmatmul.mubr.f32.vlgmr.msra.gmra.mrb[12].mxu1 %v5300_v20 }
 0x405   :  { %3102 = vmatprep.mubr.msk.f32.mxu0 %vm1374_vm5, %v5315_v37  ;;  %3106 = vmatprep.mubr.msk.f32.mxu1 %vm1374_vm5, %v5315_v37 }
 0x406   :  { %3967 = vmatpush3.bf16.msra.mxu0 %v4335_v21  ;;  %3999 = vmatpush3.bf16.msra.mxu1 %v4335_v21  ;;  %v6109_v21 = vld [vmem:[%s6238_s4] sm:$0xf] }
 0x407   :  { %3969 = vmatprep.subr.bf16.mxu0 %v4347_v24  ;;  %4001 = vmatprep.subr.bf16.mxu1 %v4347_v24  ;;  %v2367_v24 = vrot.slane %v6109_v21, %v363_v3  ;;  %v2359_v7 = vrot.slane %v6109_v21, %v4484_v2  ;;  %v2363_v42 = vrot.slane %v6109_v21, %v359_v8 }
 0x408   :  { %3103 = vmatmul.mubr.msk.f32.gmra.mrb[14].mxu0 %vm1374_vm5, %v5318_v9  ;;  %3107 = vmatmul.mubr.msk.f32.gmra.mrb[14].mxu1 %vm1374_vm5, %v5318_v9 }
 0x409   :  { %2236 = vmatprep.mubr.f32.mxu0 %v5323_v22  ;;  %2325 = vmatprep.mubr.f32.mxu1 %v5323_v22 }
 0x40a   :  { %3971 = vmatpush3.bf16.msra.mxu0 %v4355_v27  ;;  %4003 = vmatpush3.bf16.msra.mxu1 %v4355_v27  ;;  %v2371_v27 = vrot.slane %v6109_v21, %v367_v5 }
 0x40b   :  { %3973 = vmatprep.subr.bf16.mxu0 %v4367_v30  ;;  %4005 = vmatprep.subr.bf16.mxu1 %v4367_v30 }
 0x40c   :  { %2237 = vmatmul.mubr.f32.gmra.mrb[16].mxu0 %v5330_v6  ;;  %2326 = vmatmul.mubr.f32.gmra.mrb[16].mxu1 %v5330_v6 }
 0x40d   :  { %3104 = vmatprep.mubr.msk.f32.mxu0 %vm1376_vm6, %v1401_v18  ;;  %3108 = vmatprep.mubr.msk.f32.mxu1 %vm1376_vm6, %v1401_v18 }
 0x40e   :  { %3975 = vmatpush3.bf16.msra.mxu0 %v4375_v33  ;;  %4007 = vmatpush3.bf16.msra.mxu1 %v4375_v33 }
 0x40f   :  { %3977 = vmatprep.subr.bf16.mxu0 %v4387_v36  ;;  %4009 = vmatprep.subr.bf16.mxu1 %v4387_v36 }
 0x410   :  { %3105 = vmatmul.mubr.msk.f32.gmra.mrb[18].mxu0 %vm1376_vm6, %v5333_v44  ;;  %3109 = vmatmul.mubr.msk.f32.gmra.mrb[18].mxu1 %vm1376_vm6, %v5333_v44 }
 0x412   :  { %3979 = vmatpush3.bf16.msra.mxu0 %v4395_v39  ;;  %4011 = vmatpush3.bf16.msra.mxu1 %v4395_v39 }
 0x413   :  { %3981 = vmatprep.subr.bf16.mxu0 %v4408_v43  ;;  %4013 = vmatprep.subr.bf16.mxu1 %v4408_v43 }
 0x416   :  { %3983 = vmatpush3.bf16.msra.mxu0 %v4421_v47  ;;  %4015 = vmatpush3.bf16.msra.mxu1 %v4421_v47 }
 0x417   :  { %3985 = vmatprep.subr.bf16.mxu0 %v4425_v48  ;;  %4017 = vmatprep.subr.bf16.mxu1 %v4425_v48 }
 0x41a   :  { %3987 = vmatpush3.bf16.msra.mxu0 %v4441_v53  ;;  %4019 = vmatpush3.bf16.msra.mxu1 %v4441_v53 }
 0x41b   :  { %3989 = vmatprep.subr.bf16.mxu0 %v4445_v54  ;;  %4021 = vmatprep.subr.bf16.mxu1 %v4445_v54 }
 0x41e   :  { %3991 = vmatpush3.bf16.msra.mxu0 %v4461_v59  ;;  %4023 = vmatpush3.bf16.msra.mxu1 %v4461_v59 }
 0x41f   :  { %3993 = vmatprep.subr.bf16.mxu0 %v4465_v60  ;;  %4025 = vmatprep.subr.bf16.mxu1 %v4465_v60 }
 0x422   :  { %3995 = vmatpush3.bf16.msra.mxu0 %v4475_v63  ;;  %4027 = vmatpush3.bf16.msra.mxu1 %v4475_v63 }
 0x423   :  { %4029 = vmatprep.subr.bf16.mxu0 %v4689_v29  ;;  %4033 = vmatprep.subr.bf16.mxu1 %v4689_v29 }
 0x4d7   :  { %v6117_v30 = vpop.f32.mrb[12].mxu0  ;;  %v2315_v33 = vpop.f32.mrb[12].mxu1 }
 0x4d8   :  { %v2378_v36 = vadd.f32 %v2367_v24, %v2315_v33  ;;  %v6119_v39 = vpop.f32.mrb[13].mxu0  ;;  %v2317_v43 = vpop.f32.mrb[13].mxu1  ;;  %v2376_v57 = vadd.f32 %v2359_v7, %v6117_v30 }
 0x4d9   :  { %v2379_v47 = vadd.f32 %v2371_v27, %v2317_v43 }
 0x4da   :  { %v2392_v48 = vsub.f32 0.0, %v2378_v36 }
 0x4db   :  { %v2393_v53 = vsub.f32 0.0, %v2379_v47  ;;  %v6121_v54 = vpop.f32.mrb[14].mxu0  ;;  %v2321_v59 = vpop.f32.mrb[14].mxu1 }
 0x4dc   :  { %v2400_v60 = vmul.f32 1.442695, %v2392_v48  ;;  %v2382_v63 = vadd.f32 %v2367_v24, %v2321_v59  ;;  %v6123_v3 = vpop.f32.mrb[15].mxu0  ;;  %v2323_v29 = vpop.f32.mrb[15].mxu1  ;;  %v2380_v1 = vadd.f32 %v2359_v7, %v6121_v54 }
 0x4dd   :  { %v2402_v34 = vmul.f32 1.442695, %v2393_v53  ;;  %v2383_v5 = vadd.f32 %v2371_v27, %v2323_v29  ;;  %v2381_v48 = vadd.f32 %v2363_v42, %v6123_v3 }
 0x4de   :  { %4154 = vpow2.f32 %v2400_v60  ;;  %v2394_v58 = vsub.f32 0.0, %v2382_v63 }
 0x4df   :  { %4156 = vpow2.f32 %v2402_v34  ;;  %v2395_v20 = vsub.f32 0.0, %v2383_v5  ;;  %v6125_v37 = vpop.f32.mrb[16].mxu0  ;;  %v2327_v9 = vpop.f32.mrb[16].mxu1 }
 0x4e0   :  { %v2404_v22 = vmul.f32 1.442695, %v2394_v58  ;;  %v2386_v6 = vadd.f32 %v2367_v24, %v2327_v9  ;;  %v6127_v44 = vpop.f32.mrb[17].mxu0  ;;  %v2329_v13 = vpop.f32.mrb[17].mxu1 }
 0x4e1   :  { %v2406_v14 = vmul.f32 1.442695, %v2395_v20  ;;  %v2387_v50 = vadd.f32 %v2371_v27, %v2329_v13  ;;  %v2385_v63 = vadd.f32 %v2363_v42, %v6127_v44 }
 0x4e2   :  { %4158 = vpow2.f32 %v2404_v22  ;;  %v2396_v16 = vsub.f32 0.0, %v2386_v6 }
 0x4e3   :  { %4160 = vpow2.f32 %v2406_v14  ;;  %v2397_v56 = vsub.f32 0.0, %v2387_v50  ;;  %v6129_v11 = vpop.f32.mrb[18].mxu0  ;;  %v2333_v40 = vpop.f32.mrb[18].mxu1 }
 0x4e4   :  { %v2408_v52 = vmul.f32 1.442695, %v2396_v16  ;;  %v2390_v41 = vadd.f32 %v2367_v24, %v2333_v40  ;;  %v6131_v23 = vpop.f32.mrb[19].mxu0  ;;  %v2335_v38 = vpop.f32.mrb[19].mxu1  ;;  %v2377_v24 = vadd.f32 %v2363_v42, %v6119_v39  ;;  %v2384_v39 = vadd.f32 %v2359_v7, %v6125_v37 }
 0x4e5   :  { %v2410_v0 = vmul.f32 1.442695, %v2397_v56  ;;  %v2391_v28 = vadd.f32 %v2371_v27, %v2335_v38  ;;  %v2388_v37 = vadd.f32 %v2359_v7, %v6129_v11  ;;  %v2389_v14 = vadd.f32 %v2363_v42, %v6131_v23 }
 0x4e6   :  { %4162 = vpow2.f32 %v2408_v52  ;;  %v2398_v62 = vsub.f32 0.0, %v2390_v41 }
 0x4e7   :  { %4164 = vpow2.f32 %v2410_v0  ;;  %v2399_v31 = vsub.f32 0.0, %v2391_v28 }
 0x4e8   :  { %v4155_v49 = vpop.eup %4154  ;;  %v2412_v61 = vmul.f32 1.442695, %v2398_v62 }
 0x4e9   :  { %v4157_v51 = vpop.eup %4156  ;;  %v2416_v19 = vadd.f32 1.0, %v4155_v49  ;;  %v2414_v32 = vmul.f32 1.442695, %v2399_v31 }
 0x4ea   :  { %v2417_v10 = vadd.f32 1.0, %v4157_v51  ;;  %4166 = vpow2.f32 %v2412_v61 }
 0x4eb   :  { %4168 = vrcp.f32 %v2416_v19 }
 0x4ec   :  { %v4159_v46 = vpop.eup %4158  ;;  %4170 = vrcp.f32 %v2417_v10 }
 0x4ed   :  { %v4161_v12 = vpop.eup %4160  ;;  %v2418_v26 = vadd.f32 1.0, %v4159_v46  ;;  %4172 = vpow2.f32 %v2414_v32 }
 0x4ee   :  { %v2419_v25 = vadd.f32 1.0, %v4161_v12 }
 0x4ef   :  { %4174 = vrcp.f32 %v2418_v26 }
 0x4f0   :  { %v4163_v17 = vpop.eup %4162  ;;  %4176 = vrcp.f32 %v2419_v25 }
 0x4f1   :  { %v4165_v15 = vpop.eup %4164  ;;  %v2420_v4 = vadd.f32 1.0, %v4163_v17 }
 0x4f2   :  { %v2421_v45 = vadd.f32 1.0, %v4165_v15 }
 0x4f3   :  { %4178 = vrcp.f32 %v2420_v4 }
 0x4f4   :  { %v4167_v55 = vpop.eup %4166  ;;  %4180 = vrcp.f32 %v2421_v45 }
 0x4f5   :  { %v4169_v18 = vpop.eup %4168  ;;  %v2422_v27 = vadd.f32 1.0, %v4167_v55 }
 0x4f6   :  { %v4171_v33 = vpop.eup %4170  ;;  %v6140_v36 = vmul.f32 %v4169_v18, %v2376_v57 }
 0x4f7   :  { %v4173_v43 = vpop.eup %4172  ;;  %v6142_v47 = vmul.f32 %v4171_v33, %v2377_v24  ;;  %4182 = vrcp.f32 %v2422_v27 }
 0x4f8   :  { %v2423_v8 = vadd.f32 1.0, %v4173_v43  ;;  %v2460_v3 = vmul.f32 %v6140_v36, %v6140_v36 }
 0x4f9   :  { %v4175_v21 = vpop.eup %4174  ;;  %v2461_v16 = vmul.f32 %v6142_v47, %v6142_v47 }
 0x4fa   :  { %v4177_v53 = vpop.eup %4176  ;;  %v6146_v30 = vmul.f32 %v4175_v21, %v2380_v1  ;;  %4184 = vrcp.f32 %v2423_v8 }
 0x4fb   :  { %v6148_v59 = vmul.f32 %v4177_v53, %v2381_v48  ;;  %v6257_v48 = vmov 0.0  }
 0x4fc   :  { %v2462_v34 = vmul.f32 %v6146_v30, %v6146_v30  ;;  %v2442_v58 = vadd.f32 %v6146_v30, %v6140_v36 }
 0x4fd   :  { %v4179_v60 = vpop.eup %4178  ;;  %v2463_v22 = vmul.f32 %v6148_v59, %v6148_v59  ;;  %v2451_v50 = vadd.f32 %v6148_v59, %v6142_v47 }
 0x4fe   :  { %v4181_v29 = vpop.eup %4180  ;;  %v6154_v54 = vmul.f32 %v4179_v60, %v2384_v39  ;;  %v2468_v13 = vadd.f32 %v2462_v34, %v2460_v3 }
 0x4ff   :  { %v6156_v5 = vmul.f32 %v4181_v29, %v2385_v63  ;;  %v2477_v0 = vadd.f32 %v2463_v22, %v2461_v16  ;;  %v2440_v22 = vld [vmem:[%s6241_s7 + $0x2] sm:$0x1] }
 0x500   :  { %v2464_v20 = vmul.f32 %v6154_v54, %v6154_v54  ;;  %v2443_v44 = vadd.f32 %v2442_v58, %v6154_v54 }
 0x501   :  { %v4183_v9 = vpop.eup %4182  ;;  %v2465_v56 = vmul.f32 %v6156_v5, %v6156_v5  ;;  %v2452_v23 = vadd.f32 %v2451_v50, %v6156_v5 }
 0x502   :  { %v6167_v6 = vmul.f32 %v4183_v9, %v2388_v37  ;;  %v2469_v41 = vadd.f32 %v2468_v13, %v2464_v20  ;;  %v2441_v13 = vld [vmem:[%s6241_s7 + $0x3] sm:$0x1] }
 0x503   :  { %v2478_v61 = vadd.f32 %v2477_v0, %v2465_v56 }
 0x504   :  { %v4185_v11 = vpop.eup %4184  ;;  %v2444_v40 = vadd.f32 %v2443_v44, %v6167_v6  ;;  %v2466_v52 = vmul.f32 %v6167_v6, %v6167_v6 }
 0x505   :  { %v6180_v38 = vmul.f32 %v4185_v11, %v2389_v14 }
 0x506   :  { %v2445_v28 = vrot.slane %v2444_v40, 4  ;;  %v2470_v62 = vadd.f32 %v2469_v41, %v2466_v52 }
 0x507   :  { %v2453_v31 = vadd.f32 %v2452_v23, %v6180_v38  ;;  %v2467_v49 = vmul.f32 %v6180_v38, %v6180_v38 }
 0x508   :  { %v2446_v51 = vadd.f32 %v2445_v28, %v2444_v40  ;;  %v2471_v19 = vrot.slane %v2470_v62, 4 }
 0x509   :  { %v2454_v32 = vrot.slane %v2453_v31, 4  ;;  %v2479_v10 = vadd.f32 %v2478_v61, %v2467_v49 }
 0x50a   :  { %v2447_v46 = vrot.slane %v2446_v51, 2  ;;  %v2472_v12 = vadd.f32 %v2471_v19, %v2470_v62 }
 0x50b   :  { %v2455_v26 = vadd.f32 %v2454_v32, %v2453_v31  ;;  %v2480_v25 = vrot.slane %v2479_v10, 4 }
 0x50c   :  { %v2448_v17 = vadd.f32 %v2447_v46, %v2446_v51  ;;  %v2473_v7 = vrot.slane %v2472_v12, 2 }
 0x50d   :  { %v2456_v15 = vrot.slane %v2455_v26, 2  ;;  %v2481_v42 = vadd.f32 %v2480_v25, %v2479_v10 }
 0x50e   :  { %v2474_v4 = vadd.f32 %v2473_v7, %v2472_v12  ;;  %v2449_v57 = vrot.slane %v2448_v17, 1 }
 0x50f   :  { %v2457_v45 = vadd.f32 %v2456_v15, %v2455_v26  ;;  %v2482_v55 = vrot.slane %v2481_v42, 2 }
 0x510   :  { %v2475_v27 = vrot.slane %v2474_v4, 1  ;;  %v2450_v1 = vadd.f32 %v2449_v57, %v2448_v17 }
 0x511   :  { %v2458_v18 = vrot.slane %v2457_v45, 1  ;;  %v2483_v24 = vadd.f32 %v2482_v55, %v2481_v42 }
 0x512   :  { %v2476_v21 = vadd.f32 %v2475_v27, %v2474_v4 }
 0x513   :  { %v2459_v33 = vadd.f32 %v2458_v18, %v2457_v45  ;;  %v2484_v43 = vrot.slane %v2483_v24, 1 }
 0x515   :  { %2550 = vmatprep.mubr.f32.mxu0 %v2459_v33  ;;  %v2485_v8 = vadd.f32 %v2484_v43, %v2483_v24 }
 0x516   :  { %2551 = vmatmul.mubr.f32.vlgmr.msra.gmra.mrb[20].mxu0 %v2450_v1 }
 0x517   :  { %2620 = vmatprep.mubr.f32.mxu1 %v2485_v8  ;;  %4031 = vmatpush1.bf16.msra.mxu0 %v4696_v35 }
 0x518   :  { %2621 = vmatmul.mubr.f32.vlgmr.msra.gmra.mrb[20].mxu1 %v2476_v21  ;;  %2702 = vmatprep.mubr.f32.mxu0 %v6257_v48 }
 0x519   :  { %4035 = vmatpush1.bf16.msra.mxu1 %v4696_v35  ;;  %2776 = vmatprep.mubr.f32.mxu1 %v6257_v48 }
 0x5e9   :  { %v3214_v53 = vpop.f32.mrb[20].mxu0 }
 0x5ea   :  { %v3215_v39 = vpop.f32.mrb[21].mxu0 }
 0x5eb   :  { %v3216_v60 = vadd.f32 %v3215_v39, %v3214_v53  ;;  %v3249_v63 = vpop.f32.mrb[20].mxu1 }
 0x5ec   :  { %v3250_v29 = vpop.f32.mrb[21].mxu1 }
 0x5ed   :  { %v2626_v34 = vmul.f32 0.001953125, %v3216_v60  ;;  %v3251_v3 = vadd.f32 %v3250_v29, %v3249_v63 }
 0x5ef   :  { %v2628_v58 = vmul.f32 %v2626_v34, %v2626_v34  ;;  %v2627_v20 = vmul.f32 0.001953125, %v3251_v3 }
 0x5f1   :  { %v2629_v37 = vsub.f32 %v2627_v20, %v2628_v58 }
 0x5f3   :  { %v2630_v9 = vadd.f32 1e-05, %v2629_v37 }
 0x5f5   :  { %4186 = vrsqrt.f32 %v2630_v9 }
 0x5ff   :  { %v4187_v44 = vpop.eup %4186 }
 0x600   :  { %v2632_v35 = vmul.f32 %v4187_v44, %v2440_v22 }
 0x602   :  { %3110 = vmatmul.mubr.msk.f32.vlgmr.msra.gmra.mrb[22].mxu0 %vm1086_vm0, %v2632_v35  ;;  %v2633_v14 = vmul.f32 %v2632_v35, %v2626_v34 }
 0x604   :  { %v2634_v50 = vsub.f32 %v2441_v13, %v2633_v14 }
 0x606   :  { %3111 = vmatmul.mubr.msk.f32.vlgmr.msra.gmra.mrb[22].mxu1 %vm1086_vm0, %v2634_v50 }
 0x6d5   :  { %v2704_v16 = vpop.f32.mrb[22].mxu0 }
 0x6d6   :  { %v2786_v56 = vrot.slane %v2704_v16, %v4484_v2  ;;  %v2706_v11 = vpop.f32.mrb[23].mxu0 }
 0x6d7   :  { %v2790_v40 = vrot.slane %v2706_v11, %v4484_v2 }
 0x6d8   :  { %v2791_v52 = vmul.f32 %v2786_v56, %v6140_v36  ;;  %v2793_v41 = vmul.f32 %v2786_v56, %v6146_v30  ;;  %v2795_v0 = vmul.f32 %v2786_v56, %v6154_v54  ;;  %v2797_v28 = vmul.f32 %v2786_v56, %v6167_v6 }
 0x6d9   :  { %v2778_v23 = vpop.f32.mrb[22].mxu1  ;;  %v2792_v62 = vmul.f32 %v2790_v40, %v6142_v47  ;;  %v2794_v61 = vmul.f32 %v2790_v40, %v6148_v59  ;;  %v2796_v51 = vmul.f32 %v2790_v40, %v6156_v5  ;;  %v2798_v19 = vmul.f32 %v2790_v40, %v6180_v38 }
 0x6da   :  { %v2802_v31 = vrot.slane %v2778_v23, %v4484_v2  ;;  %v2780_v49 = vpop.f32.mrb[23].mxu1 }
 0x6db   :  { %v2806_v36 = vrot.slane %v2780_v49, %v4484_v2 }
 0x6dc   :  { %v2807_v32 = vadd.f32 %v2802_v31, %v2791_v52  ;;  %v2809_v30 = vadd.f32 %v2802_v31, %v2793_v41  ;;  %v2811_v10 = vadd.f32 %v2802_v31, %v2795_v0  ;;  %v2813_v46 = vadd.f32 %v2802_v31, %v2797_v28 }
 0x6dd   :  { %v2808_v54 = vadd.f32 %v2806_v36, %v2792_v62  ;;  %v2810_v12 = vadd.f32 %v2806_v36, %v2794_v61  ;;  %v2812_v6 = vadd.f32 %v2806_v36, %v2796_v51  ;;  %v2814_v26 = vadd.f32 %v2806_v36, %v2798_v19 }
 0x6de   :  { %2815 = vst [vmem:[%s6242_s8] sm:$0xff] %v2807_v32  ;;  %2817 = vst [vmem:[%s6242_s8 + $0x10] sm:$0xff] %v2809_v30 }
 0x6df   :  { %2819 = vst [vmem:[%s6242_s8 + $0x20] sm:$0xff] %v2811_v10  ;;  %2821 = vst [vmem:[%s6242_s8 + $0x30] sm:$0xff] %v2813_v46 }
 0x6e0   :  { %2816 = vst [vmem:[%s6242_s8 + $0x8] sm:$0xff] %v2808_v54  ;;  %2818 = vst [vmem:[%s6242_s8 + $0x18] sm:$0xff] %v2810_v12 }
 0x6e1   :  { %2820 = vst [vmem:[%s6242_s8 + $0x28] sm:$0xff] %v2812_v6  ;;  %2822 = vst [vmem:[%s6242_s8 + $0x38] sm:$0xff] %v2814_v26 }
 0x6e2   :  { %2827 = vsyncpa [#allocation3], 1 }

</bundles_post_ra>
